<compile_context>
chip_gen: v7x
topology: tpu7x:2x2x1
jax: 0.10.0
libtpu: 0.0.40
codegen_flags: <defaults>
</compile_context>

<pallas_src>
import jax
import jax.numpy as jnp
from jax.experimental import pallas as pl
from jax.experimental.pallas import tpu as pltpu


# ------------------------------ Pallas kernel --------------------------------

def _make_kernel(TB):
    """Fused forward kernel for a tile of TB samples per grid step."""
    f32 = jnp.float32
    bf16 = jnp.bfloat16
    S1 = 16 * TB      # lanes after ct1:  (p1, sample)
    S2 = 64 * TB      # lanes after ct2:  (dd2, p1, sample)

    def elu(y):
        # ELU(alpha=1).  No clamp needed: the exp branch may overflow to +inf
        # for large positive y but jnp.where never selects it.
        # TODO(synk): switch to jnp.expm1 once its Mosaic lowering is confirmed
        # on all targets; exp(y)-1 is well within tolerance for this net.
        return jnp.where(y > 0.0, y, jnp.exp(y) - 1.0)

    def kernel(xT_ref, lw_ref, lb_ref,
               w1_ref, b1_ref, w2_ref, b2_ref, w3_ref, b3_ref,
               w4_ref, b4_ref, w5_ref, b5_ref,
               out_ref, a1_ref, a2_ref, a3_ref, a4_ref):
        # ---- Linear(2, 2) + Tanh: VPU f32 broadcast-FMA ----------------------
        xT = xT_ref[...]                                           # (2, TB)
        h = jnp.tanh(lw_ref[:, 0:1] * xT[0:1, :]
                     + lw_ref[:, 1:2] * xT[1:2, :]
                     + lb_ref[...])                                # (2, TB)
        h0, h1 = h[0:1, :], h[1:2, :]

        # ---- ct1: ConvTranspose2d(2, 32, 4, stride=4) + ELU: VPU f32 ---------
        # Input spatial size is 1x1, so this is an outer product of the two
        # latent channels with the (32, 16) weight slab; one TB-wide, TB-aligned
        # store per kernel position p1.
        w10, w11 = w1_ref[0], w1_ref[1]                            # (32, 16)
        b1 = b1_ref[...]                                           # (32, 1)
        for p1 in range(16):
            y = w10[:, p1:p1 + 1] * h0 + w11[:, p1:p1 + 1] * h1 + b1
            a1_ref[:, p1 * TB:(p1 + 1) * TB] = elu(y).astype(bf16)

        # ---- ct2: ConvTranspose2d(32, 16, 2, stride=2) + ELU: MXU bf16 -------
        a1 = a1_ref[...]                                           # (32, 16*TB)
        b2 = b2_ref[...]
        for dd in range(4):                 # (16,32) @ (32,16*TB) per position
            y = jnp.dot(w2_ref[dd], a1, preferred_element_type=f32) + b2
            a2_ref[:, dd * S1:(dd + 1) * S1] = elu(y).astype(bf16)

        # ---- ct3: ConvTranspose2d(16, 8, 2, stride=2) + ELU: MXU bf16 --------
        a2 = a2_ref[...]                                           # (16, 64*TB)
        b3 = b3_ref[...]
        for dd in range(4):                 # (8,16) @ (16,64*TB) per position
            y = jnp.dot(w3_ref[dd], a2, preferred_element_type=f32) + b3
            a3_ref[:, dd * S2:(dd + 1) * S2] = elu(y)              # keep f32

        # ---- ct4: ConvTranspose2d(8, 4, 2, stride=2) + ELU: one f32 dot ------
        # The 4 kernel positions are stacked on M (rows = dd4*4 + cout), so the
        # whole layer is a single (16,8) @ (8,256*TB) dot with a dense 16-row
        # output and one full-slab store.
        y4 = jnp.dot(w4_ref[...], a3_ref[...],
                     preferred_element_type=f32) + b4_ref[...]
        a4_ref[...] = elu(y4)                                      # (16, 256*TB)

        # ---- ct5: ConvTranspose2d(4, 1, 2, stride=2) + ELU: one f32 dot ------
        # Block-diagonal (16,16) weight: rows = dd5*4 + dd4, cols = dd4*4 + c4.
        y5 = jnp.dot(w5_ref[...], a4_ref[...],
                     preferred_element_type=f32) + b5_ref[...]
        out_ref[0] = elu(y5)                                       # (16, 256*TB)

    return kernel


# ------------------------- parameters (deterministic) ------------------------

def init_params(key):
    # Shapes exactly as in ImageNet2d.__init__ (in_dimension=2, ngf=2).
    ks = jax.random.split(key, 12)

    def w(k, shape, fan):
        return jax.random.normal(k, shape, jnp.float32) / jnp.sqrt(float(fan))

    p = {}
    p["lin_w"] = w(ks[0], (2, 2), 2)               # torch Linear: (out, in)
    p["lin_b"] = w(ks[1], (2,), 2)
    p["ct1_w"] = w(ks[2], (2, 32, 4, 4), 32)       # ConvTranspose2d: (Cin, Cout, kH, kW)
    p["ct1_b"] = w(ks[3], (32,), 32)
    p["ct2_w"] = w(ks[4], (32, 16, 2, 2), 128)
    p["ct2_b"] = w(ks[5], (16,), 16)
    p["ct3_w"] = w(ks[6], (16, 8, 2, 2), 64)
    p["ct3_b"] = w(ks[7], (8,), 8)
    p["ct4_w"] = w(ks[8], (8, 4, 2, 2), 32)
    p["ct4_b"] = w(ks[9], (4,), 4)
    p["ct5_w"] = w(ks[10], (4, 1, 2, 2), 16)
    p["ct5_b"] = w(ks[11], (1,), 1)
    return p


def prepare_params(p):
    """Hoisted weight prep: transpose/stack once, MXU-bf16 only for ct2/ct3."""
    f32, bf16 = jnp.float32, jnp.bfloat16

    def t_wb(w):      # (Cin, Cout, kh, kw) -> (kh*kw, Cout, Cin)
        cin, cout, kh, kw = w.shape
        return jnp.transpose(w, (2, 3, 1, 0)).reshape(kh * kw, cout, cin)

    # ct4: stack the 4 kernel positions along M: row = dd4*4 + cout, col = cin.
    w4s = jnp.transpose(p["ct4_w"], (2, 3, 1, 0)).reshape(16, 8)
    b4s = jnp.tile(p["ct4_b"], 4).reshape(16, 1)

    # ct5: block-diagonal over dd4 so one dot yields rows (dd5, dd4):
    #   W5big[dd5*4+dd4, dd4'*4+c4] = delta(dd4, dd4') * w5[c4, 0, dh5, dw5].
    w5m = jnp.transpose(p["ct5_w"], (2, 3, 1, 0)).reshape(4, 4)     # (dd5, c4)
    w5big = (w5m[:, None, None, :]
             * jnp.eye(4, dtype=f32)[None, :, :, None]).reshape(16, 16)

    return dict(
        lin_w=p["lin_w"].astype(f32),                    # (out=2, in=2)
        lin_b=p["lin_b"].reshape(2, 1).astype(f32),
        w1=p["ct1_w"].reshape(2, 32, 16).astype(f32),    # (Cin, Cout, kh*kw)
        b1=p["ct1_b"].reshape(32, 1).astype(f32),
        w2=t_wb(p["ct2_w"]).astype(bf16),                # (4, 16, 32)
        b2=p["ct2_b"].reshape(16, 1).astype(f32),
        w3=t_wb(p["ct3_w"]).astype(bf16),                # (4, 8, 16)
        b3=p["ct3_b"].reshape(8, 1).astype(f32),
        w4s=w4s.astype(f32),                             # (16, 8)
        b4s=b4s.astype(f32),                             # (16, 1)
        w5big=w5big.astype(f32),                         # (16, 16)
        b5=p["ct5_b"].reshape(1, 1).astype(f32),
    )


# --------------------------------- forward -----------------------------------

def _round_up(n, m):
    return ((n + m - 1) // m) * m


def _pick_tile(B):
    # 128 samples/step keeps every store 128-lane aligned and per-step VMEM at
    # ~7.5 MiB (fits every chip's default scoped limit, incl. v7x's 64 MiB
    # physical VMEM).  Tiny batches collapse to a single grid step over the
    # 8-padded batch.  Sweep TB upward (with vmem_limit_bytes) on v5e/v6e if
    # per-step overhead ever dominates again.
    return 128 if B >= 128 else max(8, _round_up(B, 8))


@jax.jit
def imagenet2d_forward(x, prep):
    """x: (B, 2) float32  ->  (B, 64, 64) float32 (the len(a)==2 branch)."""
    B = x.shape[0]
    TB = _pick_tile(B)
    B_pad = _round_up(B, TB)
    ntiles = B_pad // TB
    S3 = 256 * TB

    xT = jnp.pad(x.T.astype(jnp.float32), ((0, 0), (0, B_pad - B)))  # (2, B_pad)

    out = pl.pallas_call(
        _make_kernel(TB),
        out_shape=jax.ShapeDtypeStruct((ntiles, 16, S3), jnp.float32),
        grid=(ntiles,),
        in_specs=[
            pl.BlockSpec((2, TB), lambda i: (0, i)),           # xT (TB samples)
            pl.BlockSpec((2, 2), lambda i: (0, 0)),            # lin_w
            pl.BlockSpec((2, 1), lambda i: (0, 0)),            # lin_b
            pl.BlockSpec((2, 32, 16), lambda i: (0, 0, 0)),    # w1
            pl.BlockSpec((32, 1), lambda i: (0, 0)),           # b1
            pl.BlockSpec((4, 16, 32), lambda i: (0, 0, 0)),    # w2
            pl.BlockSpec((16, 1), lambda i: (0, 0)),           # b2
            pl.BlockSpec((4, 8, 16), lambda i: (0, 0, 0)),     # w3
            pl.BlockSpec((8, 1), lambda i: (0, 0)),            # b3
            pl.BlockSpec((16, 8), lambda i: (0, 0)),           # w4 (stacked M)
            pl.BlockSpec((16, 1), lambda i: (0, 0)),           # b4 (stacked)
            pl.BlockSpec((16, 16), lambda i: (0, 0)),          # w5 (block-diag)
            pl.BlockSpec((1, 1), lambda i: (0, 0)),            # b5
        ],
        out_specs=pl.BlockSpec((1, 16, S3), lambda i: (i, 0, 0)),
        scratch_shapes=[
            pltpu.VMEM((32, 16 * TB), jnp.bfloat16),   # a1  (feeds bf16 MXU)
            pltpu.VMEM((16, 64 * TB), jnp.bfloat16),   # a2  (feeds bf16 MXU)
            pltpu.VMEM((8, 256 * TB), jnp.float32),    # a3  (feeds f32 dot)
            pltpu.VMEM((16, 256 * TB), jnp.float32),   # a4  (feeds f32 dot)
        ],
        compiler_params=pltpu.CompilerParams(
            dimension_semantics=("parallel",)),
    )(xT, prep["lin_w"], prep["lin_b"], prep["w1"], prep["b1"],
      prep["w2"], prep["b2"], prep["w3"], prep["b3"],
      prep["w4s"], prep["b4s"], prep["w5big"], prep["b5"])

    # Undo the in-kernel generation order with one tiny XLA reshape/transpose:
    #   row  = (dh5, dw5, dh4, dw4)
    #   lane = (dh3, dw3, dh2, dw2, dh1, dw1, sample)
    # true pixel: h = 16*dh1 + 8*dh2 + 4*dh3 + 2*dh4 + dh5 (w likewise).
    y = out.reshape(ntiles, 2, 2, 2, 2, 2, 2, 2, 2, 4, 4, TB)
    y = y.transpose(0, 11, 9, 7, 5, 3, 1, 10, 8, 6, 4, 2)
    return y.reshape(B_pad, 64, 64)[:B]


# ---------------------- pure-jnp reference (PyTorch math) ---------------------

_CONVS = [("ct1_w", "ct1_b"), ("ct2_w", "ct2_b"), ("ct3_w", "ct3_b"),
          ("ct4_w", "ct4_b"), ("ct5_w", "ct5_b")]


def _ref_elu(y):
    return jnp.where(y > 0.0, y, jnp.expm1(y))


def imagenet2d_forward_ref(x, p):
    B = x.shape[0]
    h = jnp.tanh(x @ p["lin_w"].T + p["lin_b"])
    img = h.reshape(B, 2, 1, 1)
    for wname, bname in _CONVS:
        W4 = p[wname]
        Cin, Cout, kh, kw = W4.shape
        Bc, _, Hc, Wc = img.shape
        x_flat = img.transpose(0, 2, 3, 1).reshape(Bc * Hc * Wc, Cin)
        y = _ref_elu(x_flat @ W4.reshape(Cin, Cout * kh * kw)
                     + jnp.repeat(p[bname], kh * kw))
        y = y.reshape(Bc, Hc, Wc, Cout, kh, kw).transpose(0, 3, 1, 4, 2, 5)
        img = y.reshape(Bc, Cout, Hc * kh, Wc * kw)
    return img[:, 0, :, :]


# ----------------------------------- main ------------------------------------

if __name__ == "__main__":
    key = jax.random.PRNGKey(0)
    kx, kp = jax.random.split(key)
    params = init_params(kp)
    prep = prepare_params(params)

    # Small deterministic check (batch=2, in_dimension=2) -> (2, 64, 64).
    x_small = jax.random.normal(kx, (2, 2), jnp.float32)
    out_small = jax.block_until_ready(imagenet2d_forward(x_small, prep))
    assert out_small.shape == (2, 64, 64), out_small.shape
    ref_small = imagenet2d_forward_ref(x_small, params)
    err_small = float(jnp.max(jnp.abs(out_small - ref_small)))
    assert jnp.allclose(out_small, ref_small, atol=3e-2, rtol=3e-2), err_small

    # Larger batch exercises the 128-sample-per-step tiled path (padding + 2
    # grid steps), which is where the performance changes live.
    x_big = jax.random.normal(kx, (160, 2), jnp.float32)
    out_big = jax.block_until_ready(imagenet2d_forward(x_big, prep))
    assert out_big.shape == (160, 64, 64), out_big.shape
    ref_big = imagenet2d_forward_ref(x_big, params)
    err_big = float(jnp.max(jnp.abs(out_big - ref_big)))
    assert jnp.allclose(out_big, ref_big, atol=3e-2, rtol=3e-2), err_big

    print("KERNEL_OK")
</pallas_src>

<mosaic_0001>
module attributes {stable_mosaic.version = 11 : i64} {
  func.func @kernel(%arg0: i32, %arg1: memref<2x8xf32, #tpu.memory_space<vmem>>, %arg2: memref<2x2xf32, #tpu.memory_space<vmem>>, %arg3: memref<2x1xf32, #tpu.memory_space<vmem>>, %arg4: memref<2x32x16xf32, #tpu.memory_space<vmem>>, %arg5: memref<32x1xf32, #tpu.memory_space<vmem>>, %arg6: memref<4x16x32xbf16, #tpu.memory_space<vmem>>, %arg7: memref<16x1xf32, #tpu.memory_space<vmem>>, %arg8: memref<4x8x16xbf16, #tpu.memory_space<vmem>>, %arg9: memref<8x1xf32, #tpu.memory_space<vmem>>, %arg10: memref<16x8xf32, #tpu.memory_space<vmem>>, %arg11: memref<16x1xf32, #tpu.memory_space<vmem>>, %arg12: memref<16x16xf32, #tpu.memory_space<vmem>>, %arg13: memref<1x1xf32, #tpu.memory_space<vmem>>, %arg14: memref<1x16x2048xf32, #tpu.memory_space<vmem>>, %arg15: memref<32x128xbf16, #tpu.memory_space<vmem>>, %arg16: memref<16x512xbf16, #tpu.memory_space<vmem>>, %arg17: memref<8x2048xf32, #tpu.memory_space<vmem>>, %arg18: memref<16x2048xf32, #tpu.memory_space<vmem>>) attributes {dimension_semantics = [#tpu.dimension_semantics<parallel>], iteration_bounds = array<i64: 1>, scalar_prefetch = 0 : i64, scratch_operands = 4 : i64, tpu.core_type = #tpu.core_type<tc>, window_params = [{transform_indices = @transform_0, window_bounds = array<i64: 2, 8>}, {pipeline_mode = #tpu.pipeline_mode<synchronous>, transform_indices = @transform_1, window_bounds = array<i64: 2, 2>}, {pipeline_mode = #tpu.pipeline_mode<synchronous>, transform_indices = @transform_2, window_bounds = array<i64: 2, 1>}, {pipeline_mode = #tpu.pipeline_mode<synchronous>, transform_indices = @transform_3, window_bounds = array<i64: 2, 32, 16>}, {pipeline_mode = #tpu.pipeline_mode<synchronous>, transform_indices = @transform_4, window_bounds = array<i64: 32, 1>}, {pipeline_mode = #tpu.pipeline_mode<synchronous>, transform_indices = @transform_5, window_bounds = array<i64: 4, 16, 32>}, {pipeline_mode = #tpu.pipeline_mode<synchronous>, transform_indices = @transform_6, window_bounds = array<i64: 16, 1>}, {pipeline_mode = #tpu.pipeline_mode<synchronous>, transform_indices = @transform_7, window_bounds = array<i64: 4, 8, 16>}, {pipeline_mode = #tpu.pipeline_mode<synchronous>, transform_indices = @transform_8, window_bounds = array<i64: 8, 1>}, {pipeline_mode = #tpu.pipeline_mode<synchronous>, transform_indices = @transform_9, window_bounds = array<i64: 16, 8>}, {pipeline_mode = #tpu.pipeline_mode<synchronous>, transform_indices = @transform_10, window_bounds = array<i64: 16, 1>}, {pipeline_mode = #tpu.pipeline_mode<synchronous>, transform_indices = @transform_11, window_bounds = array<i64: 16, 16>}, {pipeline_mode = #tpu.pipeline_mode<synchronous>, transform_indices = @transform_12, window_bounds = array<i64: 1, 1>}, {transform_indices = @transform_13, window_bounds = array<i64: 1, 16, 2048>}]} {
    %c0 = arith.constant 0 : index
    %c0_0 = arith.constant 0 : index
    %0 = vector.load %arg1[%c0, %c0_0] : memref<2x8xf32, #tpu.memory_space<vmem>>, vector<2x8xf32>
    %c0_1 = arith.constant 0 : index
    %c0_2 = arith.constant 0 : index
    %1 = vector.load %arg2[%c0_1, %c0_2] : memref<2x2xf32, #tpu.memory_space<vmem>>, vector<2x1xf32>
    %2 = vector.extract_strided_slice %0 {offsets = [0, 0], sizes = [1, 8], strides = [1, 1]} : vector<2x8xf32> to vector<1x8xf32>
    %3 = vector.broadcast %1 : vector<2x1xf32> to vector<2x8xf32>
    %4 = vector.broadcast %2 : vector<1x8xf32> to vector<2x8xf32>
    %5 = arith.mulf %3, %4 : vector<2x8xf32>
    %c0_3 = arith.constant 0 : index
    %c1 = arith.constant 1 : index
    %6 = vector.load %arg2[%c0_3, %c1] : memref<2x2xf32, #tpu.memory_space<vmem>>, vector<2x1xf32>
    %7 = vector.extract_strided_slice %0 {offsets = [1, 0], sizes = [1, 8], strides = [1, 1]} : vector<2x8xf32> to vector<1x8xf32>
    %8 = vector.broadcast %6 : vector<2x1xf32> to vector<2x8xf32>
    %9 = vector.broadcast %7 : vector<1x8xf32> to vector<2x8xf32>
    %10 = arith.mulf %8, %9 : vector<2x8xf32>
    %11 = arith.addf %5, %10 : vector<2x8xf32>
    %c0_4 = arith.constant 0 : index
    %c0_5 = arith.constant 0 : index
    %12 = vector.load %arg3[%c0_4, %c0_5] : memref<2x1xf32, #tpu.memory_space<vmem>>, vector<2x1xf32>
    %13 = vector.broadcast %12 : vector<2x1xf32> to vector<2x8xf32>
    %14 = arith.addf %11, %13 : vector<2x8xf32>
    %15 = math.tanh %14 : vector<2x8xf32>
    %16 = vector.extract_strided_slice %15 {offsets = [0, 0], sizes = [1, 8], strides = [1, 1]} : vector<2x8xf32> to vector<1x8xf32>
    %17 = vector.extract_strided_slice %15 {offsets = [1, 0], sizes = [1, 8], strides = [1, 1]} : vector<2x8xf32> to vector<1x8xf32>
    %c0_6 = arith.constant 0 : index
    %c0_7 = arith.constant 0 : index
    %c0_8 = arith.constant 0 : index
    %18 = vector.load %arg4[%c0_6, %c0_7, %c0_8] : memref<2x32x16xf32, #tpu.memory_space<vmem>>, vector<1x32x16xf32>
    %19 = vector.shape_cast %18 : vector<1x32x16xf32> to vector<32x16xf32>
    %c1_9 = arith.constant 1 : index
    %c0_10 = arith.constant 0 : index
    %c0_11 = arith.constant 0 : index
    %20 = vector.load %arg4[%c1_9, %c0_10, %c0_11] : memref<2x32x16xf32, #tpu.memory_space<vmem>>, vector<1x32x16xf32>
    %21 = vector.shape_cast %20 : vector<1x32x16xf32> to vector<32x16xf32>
    %c0_12 = arith.constant 0 : index
    %c0_13 = arith.constant 0 : index
    %22 = vector.load %arg5[%c0_12, %c0_13] : memref<32x1xf32, #tpu.memory_space<vmem>>, vector<32x1xf32>
    %23 = vector.extract_strided_slice %19 {offsets = [0, 0], sizes = [32, 1], strides = [1, 1]} : vector<32x16xf32> to vector<32x1xf32>
    %24 = vector.broadcast %23 : vector<32x1xf32> to vector<32x8xf32>
    %25 = vector.broadcast %16 : vector<1x8xf32> to vector<32x8xf32>
    %26 = arith.mulf %24, %25 : vector<32x8xf32>
    %27 = vector.extract_strided_slice %21 {offsets = [0, 0], sizes = [32, 1], strides = [1, 1]} : vector<32x16xf32> to vector<32x1xf32>
    %28 = vector.broadcast %27 : vector<32x1xf32> to vector<32x8xf32>
    %29 = vector.broadcast %17 : vector<1x8xf32> to vector<32x8xf32>
    %30 = arith.mulf %28, %29 : vector<32x8xf32>
    %31 = arith.addf %26, %30 : vector<32x8xf32>
    %32 = vector.broadcast %22 : vector<32x1xf32> to vector<32x8xf32>
    %33 = arith.addf %31, %32 : vector<32x8xf32>
    %cst = arith.constant 0.000000e+00 : f32
    %34 = vector.broadcast %cst : f32 to vector<32x8xf32>
    %35 = arith.cmpf ogt, %33, %34 : vector<32x8xf32>
    %36 = math.exp %33 : vector<32x8xf32>
    %cst_14 = arith.constant 1.000000e+00 : f32
    %37 = vector.broadcast %cst_14 : f32 to vector<32x8xf32>
    %38 = arith.subf %36, %37 : vector<32x8xf32>
    %39 = arith.select %35, %33, %38 : vector<32x8xi1>, vector<32x8xf32>
    %40 = arith.truncf %39 : vector<32x8xf32> to vector<32x8xbf16>
    %c0_15 = arith.constant 0 : index
    %c0_16 = arith.constant 0 : index
    %41 = vector.load %arg15[%c0_15, %c0_16] : memref<32x128xbf16, #tpu.memory_space<vmem>>, vector<32x8xbf16>
    tpu.vector_store %arg15[%c0_15, %c0_16], %40 {strides = array<i32>} : memref<32x128xbf16, #tpu.memory_space<vmem>>, vector<32x8xbf16>,
    %42 = vector.extract_strided_slice %19 {offsets = [0, 1], sizes = [32, 1], strides = [1, 1]} : vector<32x16xf32> to vector<32x1xf32>
    %43 = vector.broadcast %42 : vector<32x1xf32> to vector<32x8xf32>
    %44 = vector.broadcast %16 : vector<1x8xf32> to vector<32x8xf32>
    %45 = arith.mulf %43, %44 : vector<32x8xf32>
    %46 = vector.extract_strided_slice %21 {offsets = [0, 1], sizes = [32, 1], strides = [1, 1]} : vector<32x16xf32> to vector<32x1xf32>
    %47 = vector.broadcast %46 : vector<32x1xf32> to vector<32x8xf32>
    %48 = vector.broadcast %17 : vector<1x8xf32> to vector<32x8xf32>
    %49 = arith.mulf %47, %48 : vector<32x8xf32>
    %50 = arith.addf %45, %49 : vector<32x8xf32>
    %51 = vector.broadcast %22 : vector<32x1xf32> to vector<32x8xf32>
    %52 = arith.addf %50, %51 : vector<32x8xf32>
    %cst_17 = arith.constant 0.000000e+00 : f32
    %53 = vector.broadcast %cst_17 : f32 to vector<32x8xf32>
    %54 = arith.cmpf ogt, %52, %53 : vector<32x8xf32>
    %55 = math.exp %52 : vector<32x8xf32>
    %cst_18 = arith.constant 1.000000e+00 : f32
    %56 = vector.broadcast %cst_18 : f32 to vector<32x8xf32>
    %57 = arith.subf %55, %56 : vector<32x8xf32>
    %58 = arith.select %54, %52, %57 : vector<32x8xi1>, vector<32x8xf32>
    %59 = arith.truncf %58 : vector<32x8xf32> to vector<32x8xbf16>
    %c0_19 = arith.constant 0 : index
    %c8 = arith.constant 8 : index
    %60 = vector.load %arg15[%c0_19, %c8] : memref<32x128xbf16, #tpu.memory_space<vmem>>, vector<32x8xbf16>
    tpu.vector_store %arg15[%c0_19, %c8], %59 {strides = array<i32>} : memref<32x128xbf16, #tpu.memory_space<vmem>>, vector<32x8xbf16>,
    %61 = vector.extract_strided_slice %19 {offsets = [0, 2], sizes = [32, 1], strides = [1, 1]} : vector<32x16xf32> to vector<32x1xf32>
    %62 = vector.broadcast %61 : vector<32x1xf32> to vector<32x8xf32>
    %63 = vector.broadcast %16 : vector<1x8xf32> to vector<32x8xf32>
    %64 = arith.mulf %62, %63 : vector<32x8xf32>
    %65 = vector.extract_strided_slice %21 {offsets = [0, 2], sizes = [32, 1], strides = [1, 1]} : vector<32x16xf32> to vector<32x1xf32>
    %66 = vector.broadcast %65 : vector<32x1xf32> to vector<32x8xf32>
    %67 = vector.broadcast %17 : vector<1x8xf32> to vector<32x8xf32>
    %68 = arith.mulf %66, %67 : vector<32x8xf32>
    %69 = arith.addf %64, %68 : vector<32x8xf32>
    %70 = vector.broadcast %22 : vector<32x1xf32> to vector<32x8xf32>
    %71 = arith.addf %69, %70 : vector<32x8xf32>
    %cst_20 = arith.constant 0.000000e+00 : f32
    %72 = vector.broadcast %cst_20 : f32 to vector<32x8xf32>
    %73 = arith.cmpf ogt, %71, %72 : vector<32x8xf32>
    %74 = math.exp %71 : vector<32x8xf32>
    %cst_21 = arith.constant 1.000000e+00 : f32
    %75 = vector.broadcast %cst_21 : f32 to vector<32x8xf32>
    %76 = arith.subf %74, %75 : vector<32x8xf32>
    %77 = arith.select %73, %71, %76 : vector<32x8xi1>, vector<32x8xf32>
    %78 = arith.truncf %77 : vector<32x8xf32> to vector<32x8xbf16>
    %c0_22 = arith.constant 0 : index
    %c16 = arith.constant 16 : index
    %79 = vector.load %arg15[%c0_22, %c16] : memref<32x128xbf16, #tpu.memory_space<vmem>>, vector<32x8xbf16>
    tpu.vector_store %arg15[%c0_22, %c16], %78 {strides = array<i32>} : memref<32x128xbf16, #tpu.memory_space<vmem>>, vector<32x8xbf16>,
    %80 = vector.extract_strided_slice %19 {offsets = [0, 3], sizes = [32, 1], strides = [1, 1]} : vector<32x16xf32> to vector<32x1xf32>
    %81 = vector.broadcast %80 : vector<32x1xf32> to vector<32x8xf32>
    %82 = vector.broadcast %16 : vector<1x8xf32> to vector<32x8xf32>
    %83 = arith.mulf %81, %82 : vector<32x8xf32>
    %84 = vector.extract_strided_slice %21 {offsets = [0, 3], sizes = [32, 1], strides = [1, 1]} : vector<32x16xf32> to vector<32x1xf32>
    %85 = vector.broadcast %84 : vector<32x1xf32> to vector<32x8xf32>
    %86 = vector.broadcast %17 : vector<1x8xf32> to vector<32x8xf32>
    %87 = arith.mulf %85, %86 : vector<32x8xf32>
    %88 = arith.addf %83, %87 : vector<32x8xf32>
    %89 = vector.broadcast %22 : vector<32x1xf32> to vector<32x8xf32>
    %90 = arith.addf %88, %89 : vector<32x8xf32>
    %cst_23 = arith.constant 0.000000e+00 : f32
    %91 = vector.broadcast %cst_23 : f32 to vector<32x8xf32>
    %92 = arith.cmpf ogt, %90, %91 : vector<32x8xf32>
    %93 = math.exp %90 : vector<32x8xf32>
    %cst_24 = arith.constant 1.000000e+00 : f32
    %94 = vector.broadcast %cst_24 : f32 to vector<32x8xf32>
    %95 = arith.subf %93, %94 : vector<32x8xf32>
    %96 = arith.select %92, %90, %95 : vector<32x8xi1>, vector<32x8xf32>
    %97 = arith.truncf %96 : vector<32x8xf32> to vector<32x8xbf16>
    %c0_25 = arith.constant 0 : index
    %c24 = arith.constant 24 : index
    %98 = vector.load %arg15[%c0_25, %c24] : memref<32x128xbf16, #tpu.memory_space<vmem>>, vector<32x8xbf16>
    tpu.vector_store %arg15[%c0_25, %c24], %97 {strides = array<i32>} : memref<32x128xbf16, #tpu.memory_space<vmem>>, vector<32x8xbf16>,
    %99 = vector.extract_strided_slice %19 {offsets = [0, 4], sizes = [32, 1], strides = [1, 1]} : vector<32x16xf32> to vector<32x1xf32>
    %100 = vector.broadcast %99 : vector<32x1xf32> to vector<32x8xf32>
    %101 = vector.broadcast %16 : vector<1x8xf32> to vector<32x8xf32>
    %102 = arith.mulf %100, %101 : vector<32x8xf32>
    %103 = vector.extract_strided_slice %21 {offsets = [0, 4], sizes = [32, 1], strides = [1, 1]} : vector<32x16xf32> to vector<32x1xf32>
    %104 = vector.broadcast %103 : vector<32x1xf32> to vector<32x8xf32>
    %105 = vector.broadcast %17 : vector<1x8xf32> to vector<32x8xf32>
    %106 = arith.mulf %104, %105 : vector<32x8xf32>
    %107 = arith.addf %102, %106 : vector<32x8xf32>
    %108 = vector.broadcast %22 : vector<32x1xf32> to vector<32x8xf32>
    %109 = arith.addf %107, %108 : vector<32x8xf32>
    %cst_26 = arith.constant 0.000000e+00 : f32
    %110 = vector.broadcast %cst_26 : f32 to vector<32x8xf32>
    %111 = arith.cmpf ogt, %109, %110 : vector<32x8xf32>
    %112 = math.exp %109 : vector<32x8xf32>
    %cst_27 = arith.constant 1.000000e+00 : f32
    %113 = vector.broadcast %cst_27 : f32 to vector<32x8xf32>
    %114 = arith.subf %112, %113 : vector<32x8xf32>
    %115 = arith.select %111, %109, %114 : vector<32x8xi1>, vector<32x8xf32>
    %116 = arith.truncf %115 : vector<32x8xf32> to vector<32x8xbf16>
    %c0_28 = arith.constant 0 : index
    %c32 = arith.constant 32 : index
    %117 = vector.load %arg15[%c0_28, %c32] : memref<32x128xbf16, #tpu.memory_space<vmem>>, vector<32x8xbf16>
    tpu.vector_store %arg15[%c0_28, %c32], %116 {strides = array<i32>} : memref<32x128xbf16, #tpu.memory_space<vmem>>, vector<32x8xbf16>,
    %118 = vector.extract_strided_slice %19 {offsets = [0, 5], sizes = [32, 1], strides = [1, 1]} : vector<32x16xf32> to vector<32x1xf32>
    %119 = vector.broadcast %118 : vector<32x1xf32> to vector<32x8xf32>
    %120 = vector.broadcast %16 : vector<1x8xf32> to vector<32x8xf32>
    %121 = arith.mulf %119, %120 : vector<32x8xf32>
    %122 = vector.extract_strided_slice %21 {offsets = [0, 5], sizes = [32, 1], strides = [1, 1]} : vector<32x16xf32> to vector<32x1xf32>
    %123 = vector.broadcast %122 : vector<32x1xf32> to vector<32x8xf32>
    %124 = vector.broadcast %17 : vector<1x8xf32> to vector<32x8xf32>
    %125 = arith.mulf %123, %124 : vector<32x8xf32>
    %126 = arith.addf %121, %125 : vector<32x8xf32>
    %127 = vector.broadcast %22 : vector<32x1xf32> to vector<32x8xf32>
    %128 = arith.addf %126, %127 : vector<32x8xf32>
    %cst_29 = arith.constant 0.000000e+00 : f32
    %129 = vector.broadcast %cst_29 : f32 to vector<32x8xf32>
    %130 = arith.cmpf ogt, %128, %129 : vector<32x8xf32>
    %131 = math.exp %128 : vector<32x8xf32>
    %cst_30 = arith.constant 1.000000e+00 : f32
    %132 = vector.broadcast %cst_30 : f32 to vector<32x8xf32>
    %133 = arith.subf %131, %132 : vector<32x8xf32>
    %134 = arith.select %130, %128, %133 : vector<32x8xi1>, vector<32x8xf32>
    %135 = arith.truncf %134 : vector<32x8xf32> to vector<32x8xbf16>
    %c0_31 = arith.constant 0 : index
    %c40 = arith.constant 40 : index
    %136 = vector.load %arg15[%c0_31, %c40] : memref<32x128xbf16, #tpu.memory_space<vmem>>, vector<32x8xbf16>
    tpu.vector_store %arg15[%c0_31, %c40], %135 {strides = array<i32>} : memref<32x128xbf16, #tpu.memory_space<vmem>>, vector<32x8xbf16>,
    %137 = vector.extract_strided_slice %19 {offsets = [0, 6], sizes = [32, 1], strides = [1, 1]} : vector<32x16xf32> to vector<32x1xf32>
    %138 = vector.broadcast %137 : vector<32x1xf32> to vector<32x8xf32>
    %139 = vector.broadcast %16 : vector<1x8xf32> to vector<32x8xf32>
    %140 = arith.mulf %138, %139 : vector<32x8xf32>
    %141 = vector.extract_strided_slice %21 {offsets = [0, 6], sizes = [32, 1], strides = [1, 1]} : vector<32x16xf32> to vector<32x1xf32>
    %142 = vector.broadcast %141 : vector<32x1xf32> to vector<32x8xf32>
    %143 = vector.broadcast %17 : vector<1x8xf32> to vector<32x8xf32>
    %144 = arith.mulf %142, %143 : vector<32x8xf32>
    %145 = arith.addf %140, %144 : vector<32x8xf32>
    %146 = vector.broadcast %22 : vector<32x1xf32> to vector<32x8xf32>
    %147 = arith.addf %145, %146 : vector<32x8xf32>
    %cst_32 = arith.constant 0.000000e+00 : f32
    %148 = vector.broadcast %cst_32 : f32 to vector<32x8xf32>
    %149 = arith.cmpf ogt, %147, %148 : vector<32x8xf32>
    %150 = math.exp %147 : vector<32x8xf32>
    %cst_33 = arith.constant 1.000000e+00 : f32
    %151 = vector.broadcast %cst_33 : f32 to vector<32x8xf32>
    %152 = arith.subf %150, %151 : vector<32x8xf32>
    %153 = arith.select %149, %147, %152 : vector<32x8xi1>, vector<32x8xf32>
    %154 = arith.truncf %153 : vector<32x8xf32> to vector<32x8xbf16>
    %c0_34 = arith.constant 0 : index
    %c48 = arith.constant 48 : index
    %155 = vector.load %arg15[%c0_34, %c48] : memref<32x128xbf16, #tpu.memory_space<vmem>>, vector<32x8xbf16>
    tpu.vector_store %arg15[%c0_34, %c48], %154 {strides = array<i32>} : memref<32x128xbf16, #tpu.memory_space<vmem>>, vector<32x8xbf16>,
    %156 = vector.extract_strided_slice %19 {offsets = [0, 7], sizes = [32, 1], strides = [1, 1]} : vector<32x16xf32> to vector<32x1xf32>
    %157 = vector.broadcast %156 : vector<32x1xf32> to vector<32x8xf32>
    %158 = vector.broadcast %16 : vector<1x8xf32> to vector<32x8xf32>
    %159 = arith.mulf %157, %158 : vector<32x8xf32>
    %160 = vector.extract_strided_slice %21 {offsets = [0, 7], sizes = [32, 1], strides = [1, 1]} : vector<32x16xf32> to vector<32x1xf32>
    %161 = vector.broadcast %160 : vector<32x1xf32> to vector<32x8xf32>
    %162 = vector.broadcast %17 : vector<1x8xf32> to vector<32x8xf32>
    %163 = arith.mulf %161, %162 : vector<32x8xf32>
    %164 = arith.addf %159, %163 : vector<32x8xf32>
    %165 = vector.broadcast %22 : vector<32x1xf32> to vector<32x8xf32>
    %166 = arith.addf %164, %165 : vector<32x8xf32>
    %cst_35 = arith.constant 0.000000e+00 : f32
    %167 = vector.broadcast %cst_35 : f32 to vector<32x8xf32>
    %168 = arith.cmpf ogt, %166, %167 : vector<32x8xf32>
    %169 = math.exp %166 : vector<32x8xf32>
    %cst_36 = arith.constant 1.000000e+00 : f32
    %170 = vector.broadcast %cst_36 : f32 to vector<32x8xf32>
    %171 = arith.subf %169, %170 : vector<32x8xf32>
    %172 = arith.select %168, %166, %171 : vector<32x8xi1>, vector<32x8xf32>
    %173 = arith.truncf %172 : vector<32x8xf32> to vector<32x8xbf16>
    %c0_37 = arith.constant 0 : index
    %c56 = arith.constant 56 : index
    %174 = vector.load %arg15[%c0_37, %c56] : memref<32x128xbf16, #tpu.memory_space<vmem>>, vector<32x8xbf16>
    tpu.vector_store %arg15[%c0_37, %c56], %173 {strides = array<i32>} : memref<32x128xbf16, #tpu.memory_space<vmem>>, vector<32x8xbf16>,
    %175 = vector.extract_strided_slice %19 {offsets = [0, 8], sizes = [32, 1], strides = [1, 1]} : vector<32x16xf32> to vector<32x1xf32>
    %176 = vector.broadcast %175 : vector<32x1xf32> to vector<32x8xf32>
    %177 = vector.broadcast %16 : vector<1x8xf32> to vector<32x8xf32>
    %178 = arith.mulf %176, %177 : vector<32x8xf32>
    %179 = vector.extract_strided_slice %21 {offsets = [0, 8], sizes = [32, 1], strides = [1, 1]} : vector<32x16xf32> to vector<32x1xf32>
    %180 = vector.broadcast %179 : vector<32x1xf32> to vector<32x8xf32>
    %181 = vector.broadcast %17 : vector<1x8xf32> to vector<32x8xf32>
    %182 = arith.mulf %180, %181 : vector<32x8xf32>
    %183 = arith.addf %178, %182 : vector<32x8xf32>
    %184 = vector.broadcast %22 : vector<32x1xf32> to vector<32x8xf32>
    %185 = arith.addf %183, %184 : vector<32x8xf32>
    %cst_38 = arith.constant 0.000000e+00 : f32
    %186 = vector.broadcast %cst_38 : f32 to vector<32x8xf32>
    %187 = arith.cmpf ogt, %185, %186 : vector<32x8xf32>
    %188 = math.exp %185 : vector<32x8xf32>
    %cst_39 = arith.constant 1.000000e+00 : f32
    %189 = vector.broadcast %cst_39 : f32 to vector<32x8xf32>
    %190 = arith.subf %188, %189 : vector<32x8xf32>
    %191 = arith.select %187, %185, %190 : vector<32x8xi1>, vector<32x8xf32>
    %192 = arith.truncf %191 : vector<32x8xf32> to vector<32x8xbf16>
    %c0_40 = arith.constant 0 : index
    %c64 = arith.constant 64 : index
    %193 = vector.load %arg15[%c0_40, %c64] : memref<32x128xbf16, #tpu.memory_space<vmem>>, vector<32x8xbf16>
    tpu.vector_store %arg15[%c0_40, %c64], %192 {strides = array<i32>} : memref<32x128xbf16, #tpu.memory_space<vmem>>, vector<32x8xbf16>,
    %194 = vector.extract_strided_slice %19 {offsets = [0, 9], sizes = [32, 1], strides = [1, 1]} : vector<32x16xf32> to vector<32x1xf32>
    %195 = vector.broadcast %194 : vector<32x1xf32> to vector<32x8xf32>
    %196 = vector.broadcast %16 : vector<1x8xf32> to vector<32x8xf32>
    %197 = arith.mulf %195, %196 : vector<32x8xf32>
    %198 = vector.extract_strided_slice %21 {offsets = [0, 9], sizes = [32, 1], strides = [1, 1]} : vector<32x16xf32> to vector<32x1xf32>
    %199 = vector.broadcast %198 : vector<32x1xf32> to vector<32x8xf32>
    %200 = vector.broadcast %17 : vector<1x8xf32> to vector<32x8xf32>
    %201 = arith.mulf %199, %200 : vector<32x8xf32>
    %202 = arith.addf %197, %201 : vector<32x8xf32>
    %203 = vector.broadcast %22 : vector<32x1xf32> to vector<32x8xf32>
    %204 = arith.addf %202, %203 : vector<32x8xf32>
    %cst_41 = arith.constant 0.000000e+00 : f32
    %205 = vector.broadcast %cst_41 : f32 to vector<32x8xf32>
    %206 = arith.cmpf ogt, %204, %205 : vector<32x8xf32>
    %207 = math.exp %204 : vector<32x8xf32>
    %cst_42 = arith.constant 1.000000e+00 : f32
    %208 = vector.broadcast %cst_42 : f32 to vector<32x8xf32>
    %209 = arith.subf %207, %208 : vector<32x8xf32>
    %210 = arith.select %206, %204, %209 : vector<32x8xi1>, vector<32x8xf32>
    %211 = arith.truncf %210 : vector<32x8xf32> to vector<32x8xbf16>
    %c0_43 = arith.constant 0 : index
    %c72 = arith.constant 72 : index
    %212 = vector.load %arg15[%c0_43, %c72] : memref<32x128xbf16, #tpu.memory_space<vmem>>, vector<32x8xbf16>
    tpu.vector_store %arg15[%c0_43, %c72], %211 {strides = array<i32>} : memref<32x128xbf16, #tpu.memory_space<vmem>>, vector<32x8xbf16>,
    %213 = vector.extract_strided_slice %19 {offsets = [0, 10], sizes = [32, 1], strides = [1, 1]} : vector<32x16xf32> to vector<32x1xf32>
    %214 = vector.broadcast %213 : vector<32x1xf32> to vector<32x8xf32>
    %215 = vector.broadcast %16 : vector<1x8xf32> to vector<32x8xf32>
    %216 = arith.mulf %214, %215 : vector<32x8xf32>
    %217 = vector.extract_strided_slice %21 {offsets = [0, 10], sizes = [32, 1], strides = [1, 1]} : vector<32x16xf32> to vector<32x1xf32>
    %218 = vector.broadcast %217 : vector<32x1xf32> to vector<32x8xf32>
    %219 = vector.broadcast %17 : vector<1x8xf32> to vector<32x8xf32>
    %220 = arith.mulf %218, %219 : vector<32x8xf32>
    %221 = arith.addf %216, %220 : vector<32x8xf32>
    %222 = vector.broadcast %22 : vector<32x1xf32> to vector<32x8xf32>
    %223 = arith.addf %221, %222 : vector<32x8xf32>
    %cst_44 = arith.constant 0.000000e+00 : f32
    %224 = vector.broadcast %cst_44 : f32 to vector<32x8xf32>
    %225 = arith.cmpf ogt, %223, %224 : vector<32x8xf32>
    %226 = math.exp %223 : vector<32x8xf32>
    %cst_45 = arith.constant 1.000000e+00 : f32
    %227 = vector.broadcast %cst_45 : f32 to vector<32x8xf32>
    %228 = arith.subf %226, %227 : vector<32x8xf32>
    %229 = arith.select %225, %223, %228 : vector<32x8xi1>, vector<32x8xf32>
    %230 = arith.truncf %229 : vector<32x8xf32> to vector<32x8xbf16>
    %c0_46 = arith.constant 0 : index
    %c80 = arith.constant 80 : index
    %231 = vector.load %arg15[%c0_46, %c80] : memref<32x128xbf16, #tpu.memory_space<vmem>>, vector<32x8xbf16>
    tpu.vector_store %arg15[%c0_46, %c80], %230 {strides = array<i32>} : memref<32x128xbf16, #tpu.memory_space<vmem>>, vector<32x8xbf16>,
    %232 = vector.extract_strided_slice %19 {offsets = [0, 11], sizes = [32, 1], strides = [1, 1]} : vector<32x16xf32> to vector<32x1xf32>
    %233 = vector.broadcast %232 : vector<32x1xf32> to vector<32x8xf32>
    %234 = vector.broadcast %16 : vector<1x8xf32> to vector<32x8xf32>
    %235 = arith.mulf %233, %234 : vector<32x8xf32>
    %236 = vector.extract_strided_slice %21 {offsets = [0, 11], sizes = [32, 1], strides = [1, 1]} : vector<32x16xf32> to vector<32x1xf32>
    %237 = vector.broadcast %236 : vector<32x1xf32> to vector<32x8xf32>
    %238 = vector.broadcast %17 : vector<1x8xf32> to vector<32x8xf32>
    %239 = arith.mulf %237, %238 : vector<32x8xf32>
    %240 = arith.addf %235, %239 : vector<32x8xf32>
    %241 = vector.broadcast %22 : vector<32x1xf32> to vector<32x8xf32>
    %242 = arith.addf %240, %241 : vector<32x8xf32>
    %cst_47 = arith.constant 0.000000e+00 : f32
    %243 = vector.broadcast %cst_47 : f32 to vector<32x8xf32>
    %244 = arith.cmpf ogt, %242, %243 : vector<32x8xf32>
    %245 = math.exp %242 : vector<32x8xf32>
    %cst_48 = arith.constant 1.000000e+00 : f32
    %246 = vector.broadcast %cst_48 : f32 to vector<32x8xf32>
    %247 = arith.subf %245, %246 : vector<32x8xf32>
    %248 = arith.select %244, %242, %247 : vector<32x8xi1>, vector<32x8xf32>
    %249 = arith.truncf %248 : vector<32x8xf32> to vector<32x8xbf16>
    %c0_49 = arith.constant 0 : index
    %c88 = arith.constant 88 : index
    %250 = vector.load %arg15[%c0_49, %c88] : memref<32x128xbf16, #tpu.memory_space<vmem>>, vector<32x8xbf16>
    tpu.vector_store %arg15[%c0_49, %c88], %249 {strides = array<i32>} : memref<32x128xbf16, #tpu.memory_space<vmem>>, vector<32x8xbf16>,
    %251 = vector.extract_strided_slice %19 {offsets = [0, 12], sizes = [32, 1], strides = [1, 1]} : vector<32x16xf32> to vector<32x1xf32>
    %252 = vector.broadcast %251 : vector<32x1xf32> to vector<32x8xf32>
    %253 = vector.broadcast %16 : vector<1x8xf32> to vector<32x8xf32>
    %254 = arith.mulf %252, %253 : vector<32x8xf32>
    %255 = vector.extract_strided_slice %21 {offsets = [0, 12], sizes = [32, 1], strides = [1, 1]} : vector<32x16xf32> to vector<32x1xf32>
    %256 = vector.broadcast %255 : vector<32x1xf32> to vector<32x8xf32>
    %257 = vector.broadcast %17 : vector<1x8xf32> to vector<32x8xf32>
    %258 = arith.mulf %256, %257 : vector<32x8xf32>
    %259 = arith.addf %254, %258 : vector<32x8xf32>
    %260 = vector.broadcast %22 : vector<32x1xf32> to vector<32x8xf32>
    %261 = arith.addf %259, %260 : vector<32x8xf32>
    %cst_50 = arith.constant 0.000000e+00 : f32
    %262 = vector.broadcast %cst_50 : f32 to vector<32x8xf32>
    %263 = arith.cmpf ogt, %261, %262 : vector<32x8xf32>
    %264 = math.exp %261 : vector<32x8xf32>
    %cst_51 = arith.constant 1.000000e+00 : f32
    %265 = vector.broadcast %cst_51 : f32 to vector<32x8xf32>
    %266 = arith.subf %264, %265 : vector<32x8xf32>
    %267 = arith.select %263, %261, %266 : vector<32x8xi1>, vector<32x8xf32>
    %268 = arith.truncf %267 : vector<32x8xf32> to vector<32x8xbf16>
    %c0_52 = arith.constant 0 : index
    %c96 = arith.constant 96 : index
    %269 = vector.load %arg15[%c0_52, %c96] : memref<32x128xbf16, #tpu.memory_space<vmem>>, vector<32x8xbf16>
    tpu.vector_store %arg15[%c0_52, %c96], %268 {strides = array<i32>} : memref<32x128xbf16, #tpu.memory_space<vmem>>, vector<32x8xbf16>,
    %270 = vector.extract_strided_slice %19 {offsets = [0, 13], sizes = [32, 1], strides = [1, 1]} : vector<32x16xf32> to vector<32x1xf32>
    %271 = vector.broadcast %270 : vector<32x1xf32> to vector<32x8xf32>
    %272 = vector.broadcast %16 : vector<1x8xf32> to vector<32x8xf32>
    %273 = arith.mulf %271, %272 : vector<32x8xf32>
    %274 = vector.extract_strided_slice %21 {offsets = [0, 13], sizes = [32, 1], strides = [1, 1]} : vector<32x16xf32> to vector<32x1xf32>
    %275 = vector.broadcast %274 : vector<32x1xf32> to vector<32x8xf32>
    %276 = vector.broadcast %17 : vector<1x8xf32> to vector<32x8xf32>
    %277 = arith.mulf %275, %276 : vector<32x8xf32>
    %278 = arith.addf %273, %277 : vector<32x8xf32>
    %279 = vector.broadcast %22 : vector<32x1xf32> to vector<32x8xf32>
    %280 = arith.addf %278, %279 : vector<32x8xf32>
    %cst_53 = arith.constant 0.000000e+00 : f32
    %281 = vector.broadcast %cst_53 : f32 to vector<32x8xf32>
    %282 = arith.cmpf ogt, %280, %281 : vector<32x8xf32>
    %283 = math.exp %280 : vector<32x8xf32>
    %cst_54 = arith.constant 1.000000e+00 : f32
    %284 = vector.broadcast %cst_54 : f32 to vector<32x8xf32>
    %285 = arith.subf %283, %284 : vector<32x8xf32>
    %286 = arith.select %282, %280, %285 : vector<32x8xi1>, vector<32x8xf32>
    %287 = arith.truncf %286 : vector<32x8xf32> to vector<32x8xbf16>
    %c0_55 = arith.constant 0 : index
    %c104 = arith.constant 104 : index
    %288 = vector.load %arg15[%c0_55, %c104] : memref<32x128xbf16, #tpu.memory_space<vmem>>, vector<32x8xbf16>
    tpu.vector_store %arg15[%c0_55, %c104], %287 {strides = array<i32>} : memref<32x128xbf16, #tpu.memory_space<vmem>>, vector<32x8xbf16>,
    %289 = vector.extract_strided_slice %19 {offsets = [0, 14], sizes = [32, 1], strides = [1, 1]} : vector<32x16xf32> to vector<32x1xf32>
    %290 = vector.broadcast %289 : vector<32x1xf32> to vector<32x8xf32>
    %291 = vector.broadcast %16 : vector<1x8xf32> to vector<32x8xf32>
    %292 = arith.mulf %290, %291 : vector<32x8xf32>
    %293 = vector.extract_strided_slice %21 {offsets = [0, 14], sizes = [32, 1], strides = [1, 1]} : vector<32x16xf32> to vector<32x1xf32>
    %294 = vector.broadcast %293 : vector<32x1xf32> to vector<32x8xf32>
    %295 = vector.broadcast %17 : vector<1x8xf32> to vector<32x8xf32>
    %296 = arith.mulf %294, %295 : vector<32x8xf32>
    %297 = arith.addf %292, %296 : vector<32x8xf32>
    %298 = vector.broadcast %22 : vector<32x1xf32> to vector<32x8xf32>
    %299 = arith.addf %297, %298 : vector<32x8xf32>
    %cst_56 = arith.constant 0.000000e+00 : f32
    %300 = vector.broadcast %cst_56 : f32 to vector<32x8xf32>
    %301 = arith.cmpf ogt, %299, %300 : vector<32x8xf32>
    %302 = math.exp %299 : vector<32x8xf32>
    %cst_57 = arith.constant 1.000000e+00 : f32
    %303 = vector.broadcast %cst_57 : f32 to vector<32x8xf32>
    %304 = arith.subf %302, %303 : vector<32x8xf32>
    %305 = arith.select %301, %299, %304 : vector<32x8xi1>, vector<32x8xf32>
    %306 = arith.truncf %305 : vector<32x8xf32> to vector<32x8xbf16>
    %c0_58 = arith.constant 0 : index
    %c112 = arith.constant 112 : index
    %307 = vector.load %arg15[%c0_58, %c112] : memref<32x128xbf16, #tpu.memory_space<vmem>>, vector<32x8xbf16>
    tpu.vector_store %arg15[%c0_58, %c112], %306 {strides = array<i32>} : memref<32x128xbf16, #tpu.memory_space<vmem>>, vector<32x8xbf16>,
    %308 = vector.extract_strided_slice %19 {offsets = [0, 15], sizes = [32, 1], strides = [1, 1]} : vector<32x16xf32> to vector<32x1xf32>
    %309 = vector.broadcast %308 : vector<32x1xf32> to vector<32x8xf32>
    %310 = vector.broadcast %16 : vector<1x8xf32> to vector<32x8xf32>
    %311 = arith.mulf %309, %310 : vector<32x8xf32>
    %312 = vector.extract_strided_slice %21 {offsets = [0, 15], sizes = [32, 1], strides = [1, 1]} : vector<32x16xf32> to vector<32x1xf32>
    %313 = vector.broadcast %312 : vector<32x1xf32> to vector<32x8xf32>
    %314 = vector.broadcast %17 : vector<1x8xf32> to vector<32x8xf32>
    %315 = arith.mulf %313, %314 : vector<32x8xf32>
    %316 = arith.addf %311, %315 : vector<32x8xf32>
    %317 = vector.broadcast %22 : vector<32x1xf32> to vector<32x8xf32>
    %318 = arith.addf %316, %317 : vector<32x8xf32>
    %cst_59 = arith.constant 0.000000e+00 : f32
    %319 = vector.broadcast %cst_59 : f32 to vector<32x8xf32>
    %320 = arith.cmpf ogt, %318, %319 : vector<32x8xf32>
    %321 = math.exp %318 : vector<32x8xf32>
    %cst_60 = arith.constant 1.000000e+00 : f32
    %322 = vector.broadcast %cst_60 : f32 to vector<32x8xf32>
    %323 = arith.subf %321, %322 : vector<32x8xf32>
    %324 = arith.select %320, %318, %323 : vector<32x8xi1>, vector<32x8xf32>
    %325 = arith.truncf %324 : vector<32x8xf32> to vector<32x8xbf16>
    %c0_61 = arith.constant 0 : index
    %c120 = arith.constant 120 : index
    %326 = vector.load %arg15[%c0_61, %c120] : memref<32x128xbf16, #tpu.memory_space<vmem>>, vector<32x8xbf16>
    tpu.vector_store %arg15[%c0_61, %c120], %325 {strides = array<i32>} : memref<32x128xbf16, #tpu.memory_space<vmem>>, vector<32x8xbf16>,
    %c0_62 = arith.constant 0 : index
    %c0_63 = arith.constant 0 : index
    %327 = vector.load %arg15[%c0_62, %c0_63] : memref<32x128xbf16, #tpu.memory_space<vmem>>, vector<32x128xbf16>
    %c0_64 = arith.constant 0 : index
    %c0_65 = arith.constant 0 : index
    %328 = vector.load %arg7[%c0_64, %c0_65] : memref<16x1xf32, #tpu.memory_space<vmem>>, vector<16x1xf32>
    %c0_66 = arith.constant 0 : index
    %c0_67 = arith.constant 0 : index
    %c0_68 = arith.constant 0 : index
    %329 = vector.load %arg6[%c0_66, %c0_67, %c0_68] : memref<4x16x32xbf16, #tpu.memory_space<vmem>>, vector<1x16x32xbf16>
    %330 = vector.shape_cast %329 : vector<1x16x32xbf16> to vector<16x32xbf16>
    %cst_69 = arith.constant dense<0.000000e+00> : vector<16x128xf32>
    %331 = tpu.matmul %330, %327, %cst_69 {dimension_numbers = #tpu.dot_dimension_numbers<[1], [0], [0], [1], [0, 0, 1, 1], [], []>} : vector<16x32xbf16>, vector<32x128xbf16>, vector<16x128xf32> -> vector<16x128xf32>
    %332 = vector.broadcast %328 : vector<16x1xf32> to vector<16x128xf32>
    %333 = arith.addf %331, %332 : vector<16x128xf32>
    %cst_70 = arith.constant 0.000000e+00 : f32
    %334 = vector.broadcast %cst_70 : f32 to vector<16x128xf32>
    %335 = arith.cmpf ogt, %333, %334 : vector<16x128xf32>
    %336 = math.exp %333 : vector<16x128xf32>
    %cst_71 = arith.constant 1.000000e+00 : f32
    %337 = vector.broadcast %cst_71 : f32 to vector<16x128xf32>
    %338 = arith.subf %336, %337 : vector<16x128xf32>
    %339 = arith.select %335, %333, %338 : vector<16x128xi1>, vector<16x128xf32>
    %340 = arith.truncf %339 : vector<16x128xf32> to vector<16x128xbf16>
    %c0_72 = arith.constant 0 : index
    %c0_73 = arith.constant 0 : index
    %341 = vector.load %arg16[%c0_72, %c0_73] : memref<16x512xbf16, #tpu.memory_space<vmem>>, vector<16x128xbf16>
    tpu.vector_store %arg16[%c0_72, %c0_73], %340 {strides = array<i32>} : memref<16x512xbf16, #tpu.memory_space<vmem>>, vector<16x128xbf16>,
    %c1_74 = arith.constant 1 : index
    %c0_75 = arith.constant 0 : index
    %c0_76 = arith.constant 0 : index
    %342 = vector.load %arg6[%c1_74, %c0_75, %c0_76] : memref<4x16x32xbf16, #tpu.memory_space<vmem>>, vector<1x16x32xbf16>
    %343 = vector.shape_cast %342 : vector<1x16x32xbf16> to vector<16x32xbf16>
    %cst_77 = arith.constant dense<0.000000e+00> : vector<16x128xf32>
    %344 = tpu.matmul %343, %327, %cst_77 {dimension_numbers = #tpu.dot_dimension_numbers<[1], [0], [0], [1], [0, 0, 1, 1], [], []>} : vector<16x32xbf16>, vector<32x128xbf16>, vector<16x128xf32> -> vector<16x128xf32>
    %345 = vector.broadcast %328 : vector<16x1xf32> to vector<16x128xf32>
    %346 = arith.addf %344, %345 : vector<16x128xf32>
    %cst_78 = arith.constant 0.000000e+00 : f32
    %347 = vector.broadcast %cst_78 : f32 to vector<16x128xf32>
    %348 = arith.cmpf ogt, %346, %347 : vector<16x128xf32>
    %349 = math.exp %346 : vector<16x128xf32>
    %cst_79 = arith.constant 1.000000e+00 : f32
    %350 = vector.broadcast %cst_79 : f32 to vector<16x128xf32>
    %351 = arith.subf %349, %350 : vector<16x128xf32>
    %352 = arith.select %348, %346, %351 : vector<16x128xi1>, vector<16x128xf32>
    %353 = arith.truncf %352 : vector<16x128xf32> to vector<16x128xbf16>
    %c0_80 = arith.constant 0 : index
    %c128 = arith.constant 128 : index
    %354 = vector.load %arg16[%c0_80, %c128] : memref<16x512xbf16, #tpu.memory_space<vmem>>, vector<16x128xbf16>
    tpu.vector_store %arg16[%c0_80, %c128], %353 {strides = array<i32>} : memref<16x512xbf16, #tpu.memory_space<vmem>>, vector<16x128xbf16>,
    %c2 = arith.constant 2 : index
    %c0_81 = arith.constant 0 : index
    %c0_82 = arith.constant 0 : index
    %355 = vector.load %arg6[%c2, %c0_81, %c0_82] : memref<4x16x32xbf16, #tpu.memory_space<vmem>>, vector<1x16x32xbf16>
    %356 = vector.shape_cast %355 : vector<1x16x32xbf16> to vector<16x32xbf16>
    %cst_83 = arith.constant dense<0.000000e+00> : vector<16x128xf32>
    %357 = tpu.matmul %356, %327, %cst_83 {dimension_numbers = #tpu.dot_dimension_numbers<[1], [0], [0], [1], [0, 0, 1, 1], [], []>} : vector<16x32xbf16>, vector<32x128xbf16>, vector<16x128xf32> -> vector<16x128xf32>
    %358 = vector.broadcast %328 : vector<16x1xf32> to vector<16x128xf32>
    %359 = arith.addf %357, %358 : vector<16x128xf32>
    %cst_84 = arith.constant 0.000000e+00 : f32
    %360 = vector.broadcast %cst_84 : f32 to vector<16x128xf32>
    %361 = arith.cmpf ogt, %359, %360 : vector<16x128xf32>
    %362 = math.exp %359 : vector<16x128xf32>
    %cst_85 = arith.constant 1.000000e+00 : f32
    %363 = vector.broadcast %cst_85 : f32 to vector<16x128xf32>
    %364 = arith.subf %362, %363 : vector<16x128xf32>
    %365 = arith.select %361, %359, %364 : vector<16x128xi1>, vector<16x128xf32>
    %366 = arith.truncf %365 : vector<16x128xf32> to vector<16x128xbf16>
    %c0_86 = arith.constant 0 : index
    %c256 = arith.constant 256 : index
    %367 = vector.load %arg16[%c0_86, %c256] : memref<16x512xbf16, #tpu.memory_space<vmem>>, vector<16x128xbf16>
    tpu.vector_store %arg16[%c0_86, %c256], %366 {strides = array<i32>} : memref<16x512xbf16, #tpu.memory_space<vmem>>, vector<16x128xbf16>,
    %c3 = arith.constant 3 : index
    %c0_87 = arith.constant 0 : index
    %c0_88 = arith.constant 0 : index
    %368 = vector.load %arg6[%c3, %c0_87, %c0_88] : memref<4x16x32xbf16, #tpu.memory_space<vmem>>, vector<1x16x32xbf16>
    %369 = vector.shape_cast %368 : vector<1x16x32xbf16> to vector<16x32xbf16>
    %cst_89 = arith.constant dense<0.000000e+00> : vector<16x128xf32>
    %370 = tpu.matmul %369, %327, %cst_89 {dimension_numbers = #tpu.dot_dimension_numbers<[1], [0], [0], [1], [0, 0, 1, 1], [], []>} : vector<16x32xbf16>, vector<32x128xbf16>, vector<16x128xf32> -> vector<16x128xf32>
    %371 = vector.broadcast %328 : vector<16x1xf32> to vector<16x128xf32>
    %372 = arith.addf %370, %371 : vector<16x128xf32>
    %cst_90 = arith.constant 0.000000e+00 : f32
    %373 = vector.broadcast %cst_90 : f32 to vector<16x128xf32>
    %374 = arith.cmpf ogt, %372, %373 : vector<16x128xf32>
    %375 = math.exp %372 : vector<16x128xf32>
    %cst_91 = arith.constant 1.000000e+00 : f32
    %376 = vector.broadcast %cst_91 : f32 to vector<16x128xf32>
    %377 = arith.subf %375, %376 : vector<16x128xf32>
    %378 = arith.select %374, %372, %377 : vector<16x128xi1>, vector<16x128xf32>
    %379 = arith.truncf %378 : vector<16x128xf32> to vector<16x128xbf16>
    %c0_92 = arith.constant 0 : index
    %c384 = arith.constant 384 : index
    %380 = vector.load %arg16[%c0_92, %c384] : memref<16x512xbf16, #tpu.memory_space<vmem>>, vector<16x128xbf16>
    tpu.vector_store %arg16[%c0_92, %c384], %379 {strides = array<i32>} : memref<16x512xbf16, #tpu.memory_space<vmem>>, vector<16x128xbf16>,
    %c0_93 = arith.constant 0 : index
    %c0_94 = arith.constant 0 : index
    %381 = vector.load %arg16[%c0_93, %c0_94] : memref<16x512xbf16, #tpu.memory_space<vmem>>, vector<16x512xbf16>
    %c0_95 = arith.constant 0 : index
    %c0_96 = arith.constant 0 : index
    %382 = vector.load %arg9[%c0_95, %c0_96] : memref<8x1xf32, #tpu.memory_space<vmem>>, vector<8x1xf32>
    %c0_97 = arith.constant 0 : index
    %c0_98 = arith.constant 0 : index
    %c0_99 = arith.constant 0 : index
    %383 = vector.load %arg8[%c0_97, %c0_98, %c0_99] : memref<4x8x16xbf16, #tpu.memory_space<vmem>>, vector<1x8x16xbf16>
    %384 = vector.shape_cast %383 : vector<1x8x16xbf16> to vector<8x16xbf16>
    %cst_100 = arith.constant dense<0.000000e+00> : vector<8x512xf32>
    %385 = tpu.matmul %384, %381, %cst_100 {dimension_numbers = #tpu.dot_dimension_numbers<[1], [0], [0], [1], [0, 0, 1, 1], [], []>} : vector<8x16xbf16>, vector<16x512xbf16>, vector<8x512xf32> -> vector<8x512xf32>
    %386 = vector.broadcast %382 : vector<8x1xf32> to vector<8x512xf32>
    %387 = arith.addf %385, %386 : vector<8x512xf32>
    %cst_101 = arith.constant 0.000000e+00 : f32
    %388 = vector.broadcast %cst_101 : f32 to vector<8x512xf32>
    %389 = arith.cmpf ogt, %387, %388 : vector<8x512xf32>
    %390 = math.exp %387 : vector<8x512xf32>
    %cst_102 = arith.constant 1.000000e+00 : f32
    %391 = vector.broadcast %cst_102 : f32 to vector<8x512xf32>
    %392 = arith.subf %390, %391 : vector<8x512xf32>
    %393 = arith.select %389, %387, %392 : vector<8x512xi1>, vector<8x512xf32>
    %c0_103 = arith.constant 0 : index
    %c0_104 = arith.constant 0 : index
    %394 = vector.load %arg17[%c0_103, %c0_104] : memref<8x2048xf32, #tpu.memory_space<vmem>>, vector<8x512xf32>
    tpu.vector_store %arg17[%c0_103, %c0_104], %393 {strides = array<i32>} : memref<8x2048xf32, #tpu.memory_space<vmem>>, vector<8x512xf32>,
    %c1_105 = arith.constant 1 : index
    %c0_106 = arith.constant 0 : index
    %c0_107 = arith.constant 0 : index
    %395 = vector.load %arg8[%c1_105, %c0_106, %c0_107] : memref<4x8x16xbf16, #tpu.memory_space<vmem>>, vector<1x8x16xbf16>
    %396 = vector.shape_cast %395 : vector<1x8x16xbf16> to vector<8x16xbf16>
    %cst_108 = arith.constant dense<0.000000e+00> : vector<8x512xf32>
    %397 = tpu.matmul %396, %381, %cst_108 {dimension_numbers = #tpu.dot_dimension_numbers<[1], [0], [0], [1], [0, 0, 1, 1], [], []>} : vector<8x16xbf16>, vector<16x512xbf16>, vector<8x512xf32> -> vector<8x512xf32>
    %398 = vector.broadcast %382 : vector<8x1xf32> to vector<8x512xf32>
    %399 = arith.addf %397, %398 : vector<8x512xf32>
    %cst_109 = arith.constant 0.000000e+00 : f32
    %400 = vector.broadcast %cst_109 : f32 to vector<8x512xf32>
    %401 = arith.cmpf ogt, %399, %400 : vector<8x512xf32>
    %402 = math.exp %399 : vector<8x512xf32>
    %cst_110 = arith.constant 1.000000e+00 : f32
    %403 = vector.broadcast %cst_110 : f32 to vector<8x512xf32>
    %404 = arith.subf %402, %403 : vector<8x512xf32>
    %405 = arith.select %401, %399, %404 : vector<8x512xi1>, vector<8x512xf32>
    %c0_111 = arith.constant 0 : index
    %c512 = arith.constant 512 : index
    %406 = vector.load %arg17[%c0_111, %c512] : memref<8x2048xf32, #tpu.memory_space<vmem>>, vector<8x512xf32>
    tpu.vector_store %arg17[%c0_111, %c512], %405 {strides = array<i32>} : memref<8x2048xf32, #tpu.memory_space<vmem>>, vector<8x512xf32>,
    %c2_112 = arith.constant 2 : index
    %c0_113 = arith.constant 0 : index
    %c0_114 = arith.constant 0 : index
    %407 = vector.load %arg8[%c2_112, %c0_113, %c0_114] : memref<4x8x16xbf16, #tpu.memory_space<vmem>>, vector<1x8x16xbf16>
    %408 = vector.shape_cast %407 : vector<1x8x16xbf16> to vector<8x16xbf16>
    %cst_115 = arith.constant dense<0.000000e+00> : vector<8x512xf32>
    %409 = tpu.matmul %408, %381, %cst_115 {dimension_numbers = #tpu.dot_dimension_numbers<[1], [0], [0], [1], [0, 0, 1, 1], [], []>} : vector<8x16xbf16>, vector<16x512xbf16>, vector<8x512xf32> -> vector<8x512xf32>
    %410 = vector.broadcast %382 : vector<8x1xf32> to vector<8x512xf32>
    %411 = arith.addf %409, %410 : vector<8x512xf32>
    %cst_116 = arith.constant 0.000000e+00 : f32
    %412 = vector.broadcast %cst_116 : f32 to vector<8x512xf32>
    %413 = arith.cmpf ogt, %411, %412 : vector<8x512xf32>
    %414 = math.exp %411 : vector<8x512xf32>
    %cst_117 = arith.constant 1.000000e+00 : f32
    %415 = vector.broadcast %cst_117 : f32 to vector<8x512xf32>
    %416 = arith.subf %414, %415 : vector<8x512xf32>
    %417 = arith.select %413, %411, %416 : vector<8x512xi1>, vector<8x512xf32>
    %c0_118 = arith.constant 0 : index
    %c1024 = arith.constant 1024 : index
    %418 = vector.load %arg17[%c0_118, %c1024] : memref<8x2048xf32, #tpu.memory_space<vmem>>, vector<8x512xf32>
    tpu.vector_store %arg17[%c0_118, %c1024], %417 {strides = array<i32>} : memref<8x2048xf32, #tpu.memory_space<vmem>>, vector<8x512xf32>,
    %c3_119 = arith.constant 3 : index
    %c0_120 = arith.constant 0 : index
    %c0_121 = arith.constant 0 : index
    %419 = vector.load %arg8[%c3_119, %c0_120, %c0_121] : memref<4x8x16xbf16, #tpu.memory_space<vmem>>, vector<1x8x16xbf16>
    %420 = vector.shape_cast %419 : vector<1x8x16xbf16> to vector<8x16xbf16>
    %cst_122 = arith.constant dense<0.000000e+00> : vector<8x512xf32>
    %421 = tpu.matmul %420, %381, %cst_122 {dimension_numbers = #tpu.dot_dimension_numbers<[1], [0], [0], [1], [0, 0, 1, 1], [], []>} : vector<8x16xbf16>, vector<16x512xbf16>, vector<8x512xf32> -> vector<8x512xf32>
    %422 = vector.broadcast %382 : vector<8x1xf32> to vector<8x512xf32>
    %423 = arith.addf %421, %422 : vector<8x512xf32>
    %cst_123 = arith.constant 0.000000e+00 : f32
    %424 = vector.broadcast %cst_123 : f32 to vector<8x512xf32>
    %425 = arith.cmpf ogt, %423, %424 : vector<8x512xf32>
    %426 = math.exp %423 : vector<8x512xf32>
    %cst_124 = arith.constant 1.000000e+00 : f32
    %427 = vector.broadcast %cst_124 : f32 to vector<8x512xf32>
    %428 = arith.subf %426, %427 : vector<8x512xf32>
    %429 = arith.select %425, %423, %428 : vector<8x512xi1>, vector<8x512xf32>
    %c0_125 = arith.constant 0 : index
    %c1536 = arith.constant 1536 : index
    %430 = vector.load %arg17[%c0_125, %c1536] : memref<8x2048xf32, #tpu.memory_space<vmem>>, vector<8x512xf32>
    tpu.vector_store %arg17[%c0_125, %c1536], %429 {strides = array<i32>} : memref<8x2048xf32, #tpu.memory_space<vmem>>, vector<8x512xf32>,
    %c0_126 = arith.constant 0 : index
    %c0_127 = arith.constant 0 : index
    %431 = vector.load %arg10[%c0_126, %c0_127] : memref<16x8xf32, #tpu.memory_space<vmem>>, vector<16x8xf32>
    %c0_128 = arith.constant 0 : index
    %c0_129 = arith.constant 0 : index
    %432 = vector.load %arg17[%c0_128, %c0_129] : memref<8x2048xf32, #tpu.memory_space<vmem>>, vector<8x2048xf32>
    %cst_130 = arith.constant dense<0.000000e+00> : vector<16x2048xf32>
    %433 = tpu.matmul %431, %432, %cst_130 {dimension_numbers = #tpu.dot_dimension_numbers<[1], [0], [0], [1], [0, 0, 1, 1], [], []>} : vector<16x8xf32>, vector<8x2048xf32>, vector<16x2048xf32> -> vector<16x2048xf32>
    %c0_131 = arith.constant 0 : index
    %c0_132 = arith.constant 0 : index
    %434 = vector.load %arg11[%c0_131, %c0_132] : memref<16x1xf32, #tpu.memory_space<vmem>>, vector<16x1xf32>
    %435 = vector.broadcast %434 : vector<16x1xf32> to vector<16x2048xf32>
    %436 = arith.addf %433, %435 : vector<16x2048xf32>
    %cst_133 = arith.constant 0.000000e+00 : f32
    %437 = vector.broadcast %cst_133 : f32 to vector<16x2048xf32>
    %438 = arith.cmpf ogt, %436, %437 : vector<16x2048xf32>
    %439 = math.exp %436 : vector<16x2048xf32>
    %cst_134 = arith.constant 1.000000e+00 : f32
    %440 = vector.broadcast %cst_134 : f32 to vector<16x2048xf32>
    %441 = arith.subf %439, %440 : vector<16x2048xf32>
    %442 = arith.select %438, %436, %441 : vector<16x2048xi1>, vector<16x2048xf32>
    %c0_135 = arith.constant 0 : index
    %c0_136 = arith.constant 0 : index
    %443 = vector.load %arg18[%c0_135, %c0_136] : memref<16x2048xf32, #tpu.memory_space<vmem>>, vector<16x2048xf32>
    tpu.vector_store %arg18[%c0_135, %c0_136], %442 {strides = array<i32>} : memref<16x2048xf32, #tpu.memory_space<vmem>>, vector<16x2048xf32>,
    %c0_137 = arith.constant 0 : index
    %c0_138 = arith.constant 0 : index
    %444 = vector.load %arg12[%c0_137, %c0_138] : memref<16x16xf32, #tpu.memory_space<vmem>>, vector<16x16xf32>
    %c0_139 = arith.constant 0 : index
    %c0_140 = arith.constant 0 : index
    %445 = vector.load %arg18[%c0_139, %c0_140] : memref<16x2048xf32, #tpu.memory_space<vmem>>, vector<16x2048xf32>
    %cst_141 = arith.constant dense<0.000000e+00> : vector<16x2048xf32>
    %446 = tpu.matmul %444, %445, %cst_141 {dimension_numbers = #tpu.dot_dimension_numbers<[1], [0], [0], [1], [0, 0, 1, 1], [], []>} : vector<16x16xf32>, vector<16x2048xf32>, vector<16x2048xf32> -> vector<16x2048xf32>
    %c0_142 = arith.constant 0 : index
    %c0_143 = arith.constant 0 : index
    %447 = vector.load %arg13[%c0_142, %c0_143] : memref<1x1xf32, #tpu.memory_space<vmem>>, vector<1x1xf32>
    %448 = vector.broadcast %447 : vector<1x1xf32> to vector<16x2048xf32>
    %449 = arith.addf %446, %448 : vector<16x2048xf32>
    %cst_144 = arith.constant 0.000000e+00 : f32
    %450 = vector.broadcast %cst_144 : f32 to vector<16x2048xf32>
    %451 = arith.cmpf ogt, %449, %450 : vector<16x2048xf32>
    %452 = math.exp %449 : vector<16x2048xf32>
    %cst_145 = arith.constant 1.000000e+00 : f32
    %453 = vector.broadcast %cst_145 : f32 to vector<16x2048xf32>
    %454 = arith.subf %452, %453 : vector<16x2048xf32>
    %455 = arith.select %451, %449, %454 : vector<16x2048xi1>, vector<16x2048xf32>
    %c0_146 = arith.constant 0 : index
    %c0_147 = arith.constant 0 : index
    %c0_148 = arith.constant 0 : index
    %456 = vector.load %arg14[%c0_146, %c0_147, %c0_148] : memref<1x16x2048xf32, #tpu.memory_space<vmem>>, vector<1x16x2048xf32>
    %457 = vector.shape_cast %456 : vector<1x16x2048xf32> to vector<16x2048xf32>
    %458 = vector.shape_cast %455 : vector<16x2048xf32> to vector<1x16x2048xf32>
    tpu.vector_store %arg14[%c0_146, %c0_147, %c0_148], %458 {strides = array<i32>} : memref<1x16x2048xf32, #tpu.memory_space<vmem>>, vector<1x16x2048xf32>,
    return
  }
  func.func @transform_0(%arg0: i32) -> (i32, i32) {
    %c0_i32 = arith.constant 0 : i32
    %c0_i32_0 = arith.constant 0 : i32
    return %c0_i32, %arg0 : i32, i32
  }
  func.func @transform_1(%arg0: i32) -> (i32, i32) {
    %c0_i32 = arith.constant 0 : i32
    %c0_i32_0 = arith.constant 0 : i32
    %c0_i32_1 = arith.constant 0 : i32
    return %c0_i32, %c0_i32_0 : i32, i32
  }
  func.func @transform_2(%arg0: i32) -> (i32, i32) {
    %c0_i32 = arith.constant 0 : i32
    %c0_i32_0 = arith.constant 0 : i32
    %c0_i32_1 = arith.constant 0 : i32
    return %c0_i32, %c0_i32_0 : i32, i32
  }
  func.func @transform_3(%arg0: i32) -> (i32, i32, i32) {
    %c0_i32 = arith.constant 0 : i32
    %c0_i32_0 = arith.constant 0 : i32
    %c0_i32_1 = arith.constant 0 : i32
    %c0_i32_2 = arith.constant 0 : i32
    return %c0_i32, %c0_i32_0, %c0_i32_1 : i32, i32, i32
  }
  func.func @transform_4(%arg0: i32) -> (i32, i32) {
    %c0_i32 = arith.constant 0 : i32
    %c0_i32_0 = arith.constant 0 : i32
    %c0_i32_1 = arith.constant 0 : i32
    return %c0_i32, %c0_i32_0 : i32, i32
  }
  func.func @transform_5(%arg0: i32) -> (i32, i32, i32) {
    %c0_i32 = arith.constant 0 : i32
    %c0_i32_0 = arith.constant 0 : i32
    %c0_i32_1 = arith.constant 0 : i32
    %c0_i32_2 = arith.constant 0 : i32
    return %c0_i32, %c0_i32_0, %c0_i32_1 : i32, i32, i32
  }
  func.func @transform_6(%arg0: i32) -> (i32, i32) {
    %c0_i32 = arith.constant 0 : i32
    %c0_i32_0 = arith.constant 0 : i32
    %c0_i32_1 = arith.constant 0 : i32
    return %c0_i32, %c0_i32_0 : i32, i32
  }
  func.func @transform_7(%arg0: i32) -> (i32, i32, i32) {
    %c0_i32 = arith.constant 0 : i32
    %c0_i32_0 = arith.constant 0 : i32
    %c0_i32_1 = arith.constant 0 : i32
    %c0_i32_2 = arith.constant 0 : i32
    return %c0_i32, %c0_i32_0, %c0_i32_1 : i32, i32, i32
  }
  func.func @transform_8(%arg0: i32) -> (i32, i32) {
    %c0_i32 = arith.constant 0 : i32
    %c0_i32_0 = arith.constant 0 : i32
    %c0_i32_1 = arith.constant 0 : i32
    return %c0_i32, %c0_i32_0 : i32, i32
  }
  func.func @transform_9(%arg0: i32) -> (i32, i32) {
    %c0_i32 = arith.constant 0 : i32
    %c0_i32_0 = arith.constant 0 : i32
    %c0_i32_1 = arith.constant 0 : i32
    return %c0_i32, %c0_i32_0 : i32, i32
  }
  func.func @transform_10(%arg0: i32) -> (i32, i32) {
    %c0_i32 = arith.constant 0 : i32
    %c0_i32_0 = arith.constant 0 : i32
    %c0_i32_1 = arith.constant 0 : i32
    return %c0_i32, %c0_i32_0 : i32, i32
  }
  func.func @transform_11(%arg0: i32) -> (i32, i32) {
    %c0_i32 = arith.constant 0 : i32
    %c0_i32_0 = arith.constant 0 : i32
    %c0_i32_1 = arith.constant 0 : i32
    return %c0_i32, %c0_i32_0 : i32, i32
  }
  func.func @transform_12(%arg0: i32) -> (i32, i32) {
    %c0_i32 = arith.constant 0 : i32
    %c0_i32_0 = arith.constant 0 : i32
    %c0_i32_1 = arith.constant 0 : i32
    return %c0_i32, %c0_i32_0 : i32, i32
  }
  func.func @transform_13(%arg0: i32) -> (i32, i32, i32) {
    %c0_i32 = arith.constant 0 : i32
    %c0_i32_0 = arith.constant 0 : i32
    %c0_i32_1 = arith.constant 0 : i32
    return %arg0, %c0_i32, %c0_i32_0 : i32, i32, i32
  }
}

</mosaic_0001>

<bundles_post_ra>
// kernel: imagenet2d_forward.1
= control target key start
LH: loop header
LB: loop body
LE: loop exit
PB: predicated region body
PF: predicated region fallthrough
CT: control target
= control target key end

     0   :  { %s6622_s0 = inlined_call_operand.vmem [shape: f32[2,8], index: 0, kind: input, shape index: {}]   ;;  %s6623_s1 = inlined_call_operand.hbm [shape: f32[2,2], index: 1, kind: input, shape index: {}]   ;;  %s6624_s2 = inlined_call_operand.vmem [shape: f32[2,1], index: 2, kind: input, shape index: {}]   ;;  %s6625_s3 = inlined_call_operand.vmem [shape: f32[2,32,16], index: 3, kind: input, shape index: {}]   ;;  %s6626_s4 = inlined_call_operand.vmem [shape: f32[32,1], index: 4, kind: input, shape index: {}]   ;;  %s6627_s5 = inlined_call_operand.hbm [shape: bf16[4,16,32], index: 5, kind: input, shape index: {}]   ;;  %s6628_s6 = inlined_call_operand.vmem [shape: f32[16,1], index: 6, kind: input, shape index: {}]   ;;  %s6629_s7 = inlined_call_operand.hbm [shape: bf16[4,8,16], index: 7, kind: input, shape index: {}]   ;;  %s6630_s8 = inlined_call_operand.vmem [shape: f32[8,1], index: 8, kind: input, shape index: {}]   ;;  %s6631_s9 = inlined_call_operand.vmem [shape: f32[16,8], index: 9, kind: input, shape index: {}]   ;;  %s6632_s10 = inlined_call_operand.vmem [shape: f32[16,1], index: 10, kind: input, shape index: {}]   ;;  %s6633_s11 = inlined_call_operand.hbm [shape: f32[16,16], index: 11, kind: input, shape index: {}]   ;;  %s6634_s12 = inlined_call_operand.<no memory space> [shape: f32[1,1], index: 12, kind: input, shape index: {}]   ;;  %s6635_s13 = inlined_call_operand.vmem [shape: f32[1,16,2048], index: 13, kind: output, shape index: {}]  }
   0x1   :  { %v18_v0 = vstv %s6634_s12 }
   0x2   :  { %19 = vst [vmem:[#allocation6] sm:$0x1] %v18_v0 }
   0x3   :  { %20 = vsyncpa [#allocation8], 0 }
   0x4   :  { %21 = vsyncpa [#allocation10], 0 }
   0x5   :  { %22 = vsyncpa [#allocation13], 0  ;;  %s4681_s27 = smov [#allocation9]   ;;  %s4587_s14 = scalar_lea.hbm %s6627_s5, 512 }
   0x6   :  { %s46_s28 = sshll.u32 %s4681_s27, 4  ;;  %p4588_p0 = scmp.ne.s32.totalorder %s6627_s5, %s4587_s14  ;;  %s47_s28 = int_to_ptr.vmem [resolvable:$true] %s46_s28 }
   0x7   :  { %p4591_p1 = scmp.lt.u32.totalorder %s4587_s14, %s6627_s5 }
   0x9   :  { %p4593_p2 = pnand %p4591_p1, %p4588_p0 }
   0xb   :  { %4596 = shalt.err (!%p4593_p2)
}
   0xc   :  { %s4597_s12 = scalar_lea.vmem %s47_s28, 512  ;;  %p4602_p4 = scmp.lt.s32.totalorder %s47_s28, %s47_s28 }
   0xd   :  { %p4598_p3 = scmp.ne.s32.totalorder %s47_s28, %s4597_s12  ;;  %p4603_p5 = scmp.lt.s32.totalorder %s4597_s12, %s4597_s12 }
   0xf   :  { %p4604_p6 = por %p4603_p5, %p4602_p4 }
  0x11   :  { %p4605_p7 = pnand %p4604_p6, %p4598_p3 }
  0x13   :  { %4608 = shalt.err (!%p4605_p7)
}
  0x14   :  { %s4682_s19 = smov 64   ;;  %s4683_s20 = smov 4  }
  0x15   :  { %52 = dma.hbm_to_vmem [thread:$0]  %s6627_s5, 512, %s47_s28, [#allocation10], %s4682_s19, %s4682_s19, %s4683_s20  }
  0x16   :  { %s4684_s23 = smov [#allocation7]   ;;  %s4685_s25 = smov [#allocation11]  }
  0x17   :  { %s31_s24 = sshll.u32 %s4684_s23, 4  ;;  %s60_s26 = sshll.u32 %s4685_s25, 4  ;;  %s32_s24 = int_to_ptr.vmem [resolvable:$true] %s31_s24  ;;  %s61_s26 = int_to_ptr.vmem [resolvable:$true] %s60_s26 }
  0x18   :  { %s4609_s30 = scalar_lea.hbm %s6623_s1, 32 }
  0x19   :  { %p4610_p8 = scmp.ne.s32.totalorder %s6623_s1, %s4609_s30  ;;  %p4613_p9 = scmp.lt.u32.totalorder %s4609_s30, %s6623_s1 }
  0x1b   :  { %p4615_p10 = pnand %p4613_p9, %p4610_p8 }
  0x1d   :  { %4618 = shalt.err (!%p4615_p10)
}
  0x1e   :  { %s4619_s5 = scalar_lea.vmem %s32_s24, 32  ;;  %p4624_p12 = scmp.lt.s32.totalorder %s32_s24, %s32_s24 }
  0x1f   :  { %p4620_p11 = scmp.ne.s32.totalorder %s32_s24, %s4619_s5  ;;  %p4625_p13 = scmp.lt.s32.totalorder %s4619_s5, %s4619_s5 }
  0x21   :  { %p4626_p0 = por %p4625_p13, %p4624_p12 }
  0x23   :  { %p4627_p1 = pnand %p4626_p0, %p4620_p11 }
  0x25   :  { %4630 = shalt.err (!%p4627_p1)
}
  0x26   :  { %34 = dma.hbm_to_vmem [thread:$0]  %s6623_s1, 32, %s32_s24, [#allocation8]  }
  0x27   :  { %s4631_s22 = scalar_lea.hbm %s6629_s7, 256 }
  0x28   :  { %p4632_p2 = scmp.ne.s32.totalorder %s6629_s7, %s4631_s22  ;;  %p4635_p3 = scmp.lt.u32.totalorder %s4631_s22, %s6629_s7 }
  0x2a   :  { %p4637_p4 = pnand %p4635_p3, %p4632_p2 }
  0x2c   :  { %4640 = shalt.err (!%p4637_p4)
}
  0x2d   :  { %s4641_s30 = scalar_lea.vmem %s61_s26, 256  ;;  %p4646_p6 = scmp.lt.s32.totalorder %s61_s26, %s61_s26 }
  0x2e   :  { %p4642_p5 = scmp.ne.s32.totalorder %s61_s26, %s4641_s30  ;;  %p4647_p7 = scmp.lt.s32.totalorder %s4641_s30, %s4641_s30 }
  0x30   :  { %p4648_p8 = por %p4647_p7, %p4646_p6 }
  0x32   :  { %p4649_p9 = pnand %p4648_p8, %p4642_p5 }
  0x34   :  { %4652 = shalt.err (!%p4649_p9)
}
  0x35   :  { %66 = dma.hbm_to_vmem [thread:$0]  %s6629_s7, 256, %s61_s26, [#allocation10], %s4682_s19, %s4682_s19, %s4683_s20  }
  0x36   :  { %s4686_s14 = smov [#allocation12]   ;;  %s4653_s5 = scalar_lea.hbm %s6633_s11, 256 }
  0x37   :  { %s78_s15 = sshll.u32 %s4686_s14, 4  ;;  %p4654_p10 = scmp.ne.s32.totalorder %s6633_s11, %s4653_s5  ;;  %s79_s15 = int_to_ptr.vmem [resolvable:$true] %s78_s15 }
  0x38   :  { %p4657_p11 = scmp.lt.u32.totalorder %s4653_s5, %s6633_s11 }
  0x3a   :  { %p4659_p12 = pnand %p4657_p11, %p4654_p10 }
  0x3c   :  { %4662 = shalt.err (!%p4659_p12)
}
  0x3d   :  { %s4663_s22 = scalar_lea.vmem %s79_s15, 256  ;;  %p4668_p0 = scmp.lt.s32.totalorder %s79_s15, %s79_s15 }
  0x3e   :  { %p4664_p13 = scmp.ne.s32.totalorder %s79_s15, %s4663_s22  ;;  %p4669_p1 = scmp.lt.s32.totalorder %s4663_s22, %s4663_s22 }
  0x40   :  { %p4670_p2 = por %p4669_p1, %p4668_p0 }
  0x42   :  { %p4671_p3 = pnand %p4670_p2, %p4664_p13 }
  0x44   :  { %4674 = shalt.err (!%p4671_p3)
}
  0x45   :  { %s4687_s7 = smov 128   ;;  %s4688_s20 = smov 8  }
  0x46   :  { %84 = dma.hbm_to_vmem [thread:$0]  %s6633_s11, 256, %s79_s15, [#allocation13], %s4687_s7, %s4687_s7, %s4688_s20  }
  0x47   :  { %4675 = dma.done.wait [#allocation8], 32  }
  0x48   :  { %4676 = vsyncadd [#allocation8], 4294967264 }
  0x49   :  { %4677 = dma.done.wait [#allocation10], 768  }
  0x4a   :  { %4678 = vsyncadd [#allocation10], 4294966528 }
  0x4b   :  { %4679 = dma.done.wait [#allocation13], 256  }
  0x4c   :  { %4680 = vsyncadd [#allocation13], 4294967040  ;;  %v4689_v1 = vmov 1   ;;  %v6636_v2 = vmov 0   ;;  %v122_v3 = vld [vmem:[%s6624_s2] sm:$0x3]  ;;  %v107_v49 = vlaneseq }
  0x4d   :  { %4220 = vset.pattern.permute.xlu0 %v4689_v1  ;;  %4221 = vset.pattern.permute.xlu1 %v6636_v2  ;;  %v101_v4 = vld [vmem:[#allocation7] sm:$0x3]  ;;  %v4855_v5 = vld [vmem:[%s6625_s3 + $0x20] sm:$0xff]  ;;  %v4872_v8 = vld [vmem:[%s6625_s3 + $0x8] sm:$0xff]  ;;  %v4691_v10 = vmov 2   ;;  %v4692_v13 = vmov 3  }
  0x4e   :  { %125 = vperm.xlu1 %4221, %v122_v3   ;;  %113 = vperm.xlu0 %4220, %v101_v4   ;;  %v4860_v6 = vld [vmem:[%s6625_s3] sm:$0xff]  ;;  %v4867_v7 = vld [vmem:[%s6625_s3 + $0x30] sm:$0xff]  ;;  %v4879_v9 = vld [vmem:[%s6625_s3 + $0x28] sm:$0xff]  ;;  %v4693_v14 = vmov 4   ;;  %v4694_v19 = vmov 5   ;;  %v4695_v20 = vmov 6  }
  0x4f   :  { %v4888_v11 = vld [vmem:[%s6625_s3 + $0x10] sm:$0xff]  ;;  %v4895_v12 = vld [vmem:[%s6625_s3 + $0x38] sm:$0xff]  ;;  %v139_v15 = vld [vmem:[%s6626_s4] sm:$0xff]  ;;  %v4696_v21 = vmov 7   ;;  %v4697_v22 = vmov 8   ;;  %v4698_v23 = vmov 9  }
  0x50   :  { %v4920_v16 = vld [vmem:[%s6625_s3 + $0x18] sm:$0xff]  ;;  %v140_v17 = vld [vmem:[%s6626_s4 + $0x8] sm:$0xff]  ;;  %v141_v18 = vld [vmem:[%s6626_s4 + $0x10] sm:$0xff]  ;;  %v4699_v24 = vmov 10   ;;  %v4700_v29 = vmov 11   ;;  %v6640_v37 = vmov 12  }
  0x51   :  { %v142_v34 = vld [vmem:[%s6626_s4 + $0x18] sm:$0xff]  ;;  %v6639_v44 = vmov 13   ;;  %v108_v52 = vshrl.u32 %v107_v49, 7  ;;  %v6638_v55 = vmov 14   ;;  %v100_v58 = vld [vmem:[%s6622_s0] sm:$0x3] }
  0x52   :  { %4222 = vset.pattern.permute.xlu1 %v4689_v1  ;;  %273 = vperm.xlu0 %4220, %v4855_v5   ;;  %s4705_s0 = smov 24   ;;  %s4707_s24 = smov 32  }
  0x53   :  { %253 = vperm.xlu1 %4222, %v4860_v6   ;;  %v118_v56 = vsub.s32 1, %v108_v52  ;;  %v109_v59 = vsub.s32 0, %v108_v52  ;;  %s4708_s2 = smov 40   ;;  %s4709_s14 = smov 48  }
  0x54   :  { %s4710_s12 = smov 56   ;;  %s4713_s27 = smov 88  }
  0x55   :  { %v119_v61 = vrot.slane %v100_v58, %v118_v56  ;;  %v110_v63 = vrot.slane %v100_v58, %v109_v59  ;;  %s4714_s29 = smov 96   ;;  %s4715_s11 = smov 104  }
  0x56   :  { %281 = vperm.xlu0 %4220, %v4867_v7   ;;  %s4716_s30 = smov 112   ;;  %s4718_s4 = smov 120  }
  0x57   :  { %257 = vperm.xlu1 %4222, %v4872_v8  }
  0x5a   :  { %4228 = vset.pattern.permute.xlu0 %v4691_v10 }
  0x5b   :  { %277 = vperm.xlu1 %4222, %v4879_v9   ;;  %334 = vperm.xlu0 %4228, %v4860_v6  }
  0x5f   :  { %4223 = vset.pattern.permute.xlu1 %v4691_v10  ;;  %358 = vperm.xlu0 %4228, %v4879_v9  }
  0x60   :  { %338 = vperm.xlu1 %4223, %v4872_v8  }
  0x63   :  { %342 = vperm.xlu0 %4228, %v4888_v11  }
  0x64   :  { %354 = vperm.xlu1 %4223, %v4855_v5  }
  0x67   :  { %366 = vperm.xlu0 %4228, %v4895_v12  }
  0x68   :  { %4224 = vset.pattern.permute.xlu1 %v4692_v13 }
  0x69   :  { %415 = vperm.xlu1 %4224, %v4860_v6  }
  0x6b   :  { %4231 = vset.pattern.permute.xlu0 %v4692_v13 }
  0x6c   :  { %419 = vperm.xlu0 %4231, %v4872_v8  }
  0x6d   :  { %435 = vperm.xlu1 %4224, %v4855_v5  }
  0x70   :  { %423 = vperm.xlu0 %4231, %v4888_v11  }
  0x71   :  { %439 = vperm.xlu1 %4224, %v4879_v9  }
  0x74   :  { %447 = vperm.xlu0 %4231, %v4895_v12  }
  0x75   :  { %4225 = vset.pattern.permute.xlu1 %v4693_v14 }
  0x76   :  { %500 = vperm.xlu1 %4225, %v4872_v8  }
  0x78   :  { %4234 = vset.pattern.permute.xlu0 %v4693_v14 }
  0x79   :  { %496 = vperm.xlu0 %4234, %v4860_v6  }
  0x7a   :  { %516 = vperm.xlu1 %4225, %v4855_v5  }
  0x7d   :  { %520 = vperm.xlu0 %4234, %v4879_v9  }
  0x7e   :  { %4226 = vset.pattern.permute.xlu1 %v6636_v2 }
  0x7f   :  { %205 = vperm.xlu1 %4226, %v139_v15  }
  0x81   :  { %504 = vperm.xlu0 %4234, %v4888_v11  }
  0x83   :  { %4227 = vset.pattern.permute.xlu1 %v4689_v1 }
  0x84   :  { %261 = vperm.xlu1 %4227, %v4888_v11  }
  0x85   :  { %528 = vperm.xlu0 %4234, %v4895_v12  }
  0x88   :  { %265 = vperm.xlu1 %4227, %v4920_v16  }
  0x89   :  { %4237 = vset.pattern.permute.xlu0 %v6636_v2 }
  0x8a   :  { %104 = vperm.xlu0 %4237, %v101_v4  }
  0x8c   :  { %285 = vperm.xlu1 %4227, %v4895_v12  }
  0x8e   :  { %210 = vperm.xlu0 %4237, %v140_v17  }
  0x90   :  { %4229 = vset.pattern.permute.xlu1 %v4694_v19 }
  0x91   :  { %577 = vperm.xlu1 %4229, %v4860_v6  }
  0x92   :  { %215 = vperm.xlu0 %4237, %v141_v18  }
  0x95   :  { %597 = vperm.xlu1 %4229, %v4855_v5  }
  0x96   :  { %4239 = vset.pattern.permute.xlu0 %v4694_v19 }
  0x97   :  { %581 = vperm.xlu0 %4239, %v4872_v8  }
  0x99   :  { %601 = vperm.xlu1 %4229, %v4879_v9  }
  0x9b   :  { %589 = vperm.xlu0 %4239, %v4920_v16  }
  0x9d   :  { %4230 = vset.pattern.permute.xlu1 %v4691_v10 }
  0x9e   :  { %346 = vperm.xlu1 %4230, %v4920_v16  }
  0x9f   :  { %4242 = vset.pattern.permute.xlu0 %v4695_v20 }
  0xa0   :  { %662 = vperm.xlu0 %4242, %v4872_v8  }
  0xa2   :  { %362 = vperm.xlu1 %4230, %v4867_v7  }
  0xa4   :  { %670 = vperm.xlu0 %4242, %v4920_v16  }
  0xa6   :  { %4232 = vset.pattern.permute.xlu1 %v4695_v20 }
  0xa7   :  { %658 = vperm.xlu1 %4232, %v4860_v6  }
  0xa8   :  { %4245 = vset.pattern.permute.xlu0 %v4696_v21 }
  0xa9   :  { %743 = vperm.xlu0 %4245, %v4872_v8  }
  0xab   :  { %678 = vperm.xlu1 %4232, %v4855_v5  }
  0xad   :  { %751 = vperm.xlu0 %4245, %v4920_v16  }
  0xaf   :  { %682 = vperm.xlu1 %4232, %v4879_v9  }
  0xb1   :  { %4248 = vset.pattern.permute.xlu0 %v4697_v22 }
  0xb2   :  { %824 = vperm.xlu0 %4248, %v4872_v8  }
  0xb3   :  { %4233 = vset.pattern.permute.xlu1 %v4692_v13 }
  0xb4   :  { %427 = vperm.xlu1 %4233, %v4920_v16  }
  0xb6   :  { %832 = vperm.xlu0 %4248, %v4920_v16  }
  0xb8   :  { %443 = vperm.xlu1 %4233, %v4867_v7  }
  0xba   :  { %4251 = vset.pattern.permute.xlu0 %v4698_v23 }
  0xbb   :  { %901 = vperm.xlu0 %4251, %v4860_v6  }
  0xbc   :  { %4235 = vset.pattern.permute.xlu1 %v4696_v21 }
  0xbd   :  { %739 = vperm.xlu1 %4235, %v4860_v6  }
  0xbf   :  { %925 = vperm.xlu0 %4251, %v4879_v9  }
  0xc1   :  { %759 = vperm.xlu1 %4235, %v4855_v5  }
  0xc3   :  { %913 = vperm.xlu0 %4251, %v4920_v16  }
  0xc5   :  { %763 = vperm.xlu1 %4235, %v4879_v9  }
  0xc7   :  { %4254 = vset.pattern.permute.xlu0 %v4699_v24 }
  0xc8   :  { %982 = vperm.xlu0 %4254, %v4860_v6  }
  0xc9   :  { %4236 = vset.pattern.permute.xlu1 %v4693_v14  ;;  %v6641_v14 = vmov 15  }
  0xca   :  { %508 = vperm.xlu1 %4236, %v4920_v16  }
  0xcc   :  { %1006 = vperm.xlu0 %4254, %v4879_v9  }
  0xcd   :  { %v4968_v25 = vpop.permute.xlu1 %125  ;;  %v4970_v26 = vpop.permute.xlu0 %113 }
  0xce   :  { %524 = vperm.xlu1 %4236, %v4867_v7   ;;  %v120_v1 = vmul.f32 %v119_v61, %v4970_v26 }
  0xd0   :  { %994 = vperm.xlu0 %4254, %v4920_v16  }
  0xd1   :  { %v4974_v27 = vpop.permute.xlu0 %273 }
  0xd2   :  { %4238 = vset.pattern.permute.xlu1 %v4697_v22  ;;  %v4977_v28 = vpop.permute.xlu1 %253 }
  0xd3   :  { %820 = vperm.xlu1 %4238, %v4860_v6  }
  0xd4   :  { %4257 = vset.pattern.permute.xlu0 %v4700_v29 }
  0xd5   :  { %1063 = vperm.xlu0 %4257, %v4860_v6   ;;  %v4982_v30 = vpop.permute.xlu0 %281 }
  0xd6   :  { %v4984_v31 = vpop.permute.xlu1 %257 }
  0xd7   :  { %840 = vperm.xlu1 %4238, %v4855_v5  }
  0xd9   :  { %1087 = vperm.xlu0 %4257, %v4879_v9  }
  0xda   :  { %v4988_v32 = vpop.permute.xlu1 %277  ;;  %v4990_v33 = vpop.permute.xlu0 %334 }
  0xdb   :  { %844 = vperm.xlu1 %4238, %v4879_v9  }
  0xdd   :  { %1075 = vperm.xlu0 %4257, %v4920_v16  }
  0xde   :  { %v4997_v35 = vpop.permute.xlu0 %358 }
  0xdf   :  { %4240 = vset.pattern.permute.xlu1 %v6636_v2  ;;  %v5000_v36 = vpop.permute.xlu1 %338 }
  0xe0   :  { %220 = vperm.xlu1 %4240, %v142_v34  }
  0xe1   :  { %4260 = vset.pattern.permute.xlu0 %v6640_v37 }
  0xe2   :  { %1144 = vperm.xlu0 %4260, %v4860_v6   ;;  %v5004_v38 = vpop.permute.xlu0 %342 }
  0xe3   :  { %v5006_v39 = vpop.permute.xlu1 %354 }
  0xe4   :  { %4241 = vset.pattern.permute.xlu1 %v4694_v19 }
  0xe5   :  { %585 = vperm.xlu1 %4241, %v4888_v11  }
  0xe6   :  { %1168 = vperm.xlu0 %4260, %v4879_v9   ;;  %v5011_v40 = vpop.permute.xlu0 %366 }
  0xe8   :  { %v5013_v41 = vpop.permute.xlu1 %415 }
  0xe9   :  { %605 = vperm.xlu1 %4241, %v4867_v7  }
  0xea   :  { %1156 = vperm.xlu0 %4260, %v4920_v16  }
  0xeb   :  { %v5017_v42 = vpop.permute.xlu0 %419 }
  0xec   :  { %v5019_v43 = vpop.permute.xlu1 %435 }
  0xed   :  { %609 = vperm.xlu1 %4241, %v4895_v12  }
  0xee   :  { %4263 = vset.pattern.permute.xlu0 %v6639_v44 }
  0xef   :  { %1225 = vperm.xlu0 %4263, %v4860_v6   ;;  %v5024_v45 = vpop.permute.xlu0 %423 }
  0xf0   :  { %v5026_v46 = vpop.permute.xlu1 %439 }
  0xf1   :  { %4243 = vset.pattern.permute.xlu1 %v4698_v23 }
  0xf2   :  { %905 = vperm.xlu1 %4243, %v4872_v8  }
  0xf3   :  { %1249 = vperm.xlu0 %4263, %v4879_v9   ;;  %v5031_v47 = vpop.permute.xlu0 %447 }
  0xf5   :  { %v5033_v48 = vpop.permute.xlu1 %500 }
  0xf6   :  { %921 = vperm.xlu1 %4243, %v4855_v5  }
  0xf7   :  { %1233 = vperm.xlu0 %4263, %v4888_v11  }
  0xf8   :  { %v5037_v50 = vpop.permute.xlu0 %496 }
  0xf9   :  { %v5039_v51 = vpop.permute.xlu1 %516 }
  0xfa   :  { %4244 = vset.pattern.permute.xlu1 %v4695_v20 }
  0xfb   :  { %666 = vperm.xlu1 %4244, %v4888_v11   ;;  %1257 = vperm.xlu0 %4263, %v4895_v12  }
  0xfc   :  { %v5044_v53 = vpop.permute.xlu0 %520 }
  0xfe   :  { %v5046_v54 = vpop.permute.xlu1 %205 }
  0xff   :  { %686 = vperm.xlu1 %4244, %v4867_v7   ;;  %4265 = vset.pattern.permute.xlu0 %v6638_v55 }
 0x100   :  { %1306 = vperm.xlu0 %4265, %v4860_v6   ;;  %v5051_v57 = vpop.permute.xlu0 %504 }
 0x103   :  { %690 = vperm.xlu1 %4244, %v4895_v12   ;;  %v5057_v60 = vpop.permute.xlu1 %261 }
 0x104   :  { %1330 = vperm.xlu0 %4265, %v4879_v9   ;;  %v5060_v62 = vpop.permute.xlu0 %528 }
 0x107   :  { %4246 = vset.pattern.permute.xlu1 %v4699_v24  ;;  %v5063_v0 = vpop.permute.xlu1 %265 }
 0x108   :  { %986 = vperm.xlu1 %4246, %v4872_v8   ;;  %1318 = vperm.xlu0 %4265, %v4920_v16  }
 0x109   :  { %v105_v3 = vpop.permute.xlu0 %104 }
 0x10a   :  { %v111_v4 = vmul.f32 %v110_v63, %v105_v3 }
 0x10b   :  { %v5068_v10 = vpop.permute.xlu1 %285 }
 0x10c   :  { %v121_v13 = vadd.f32 %v120_v1, %v111_v4  ;;  %1002 = vperm.xlu1 %4246, %v4855_v5   ;;  %4267 = vset.pattern.permute.xlu0 %v6641_v14 }
 0x10d   :  { %1387 = vperm.xlu0 %4267, %v4860_v6  }
 0x10e   :  { %v128_v15 = vadd.f32 %v4968_v25, %v121_v13 }
 0x110   :  { %4275 = vtanh.f32 %v128_v15  ;;  %4247 = vset.pattern.permute.xlu1 %v4696_v21  ;;  %v5075_v17 = vpop.permute.xlu1 %577 }
 0x111   :  { %747 = vperm.xlu1 %4247, %v4888_v11   ;;  %1411 = vperm.xlu0 %4267, %v4879_v9  }
 0x114   :  { %v5079_v18 = vpop.permute.xlu1 %597 }
 0x115   :  { %767 = vperm.xlu1 %4247, %v4867_v7   ;;  %1395 = vperm.xlu0 %4267, %v4888_v11  }
 0x118   :  { %v5083_v19 = vpop.permute.xlu1 %601 }
 0x119   :  { %771 = vperm.xlu1 %4247, %v4895_v12   ;;  %1419 = vperm.xlu0 %4267, %v4895_v12  }
 0x11a   :  { %v4276_v6 = vpop.eup %4275 }
 0x11b   :  { %v5087_v20 = vrot.slane %v4276_v6, %v109_v59  ;;  %v5089_v21 = vrot.slane %v4276_v6, %v118_v56 }
 0x11d   :  { %4249 = vset.pattern.permute.xlu1 %v4700_v29  ;;  %v5092_v9 = vpop.permute.xlu1 %346  ;;  %4270 = vset.pattern.permute.xlu0 %v6636_v2  ;;  %v268_v25 = vmul.f32 %v4977_v28, %v5087_v20  ;;  %v288_v26 = vmul.f32 %v4974_v27, %v5089_v21  ;;  %v269_v49 = vmul.f32 %v4984_v31, %v5087_v20 }
 0x11e   :  { %1067 = vperm.xlu1 %4249, %v4872_v8   ;;  %150 = vperm.xlu0 %4270, %v4872_v8   ;;  %v289_v52 = vmul.f32 %v4988_v32, %v5089_v21  ;;  %v430_v56 = vmul.f32 %v5013_v41, %v5087_v20  ;;  %v450_v58 = vmul.f32 %v5019_v43, %v5089_v21  ;;  %v5121_v41 = vpop.permute.xlu0 %210 }
 0x11f   :  { %v292_v28 = vadd.f32 %v288_v26, %v268_v25  ;;  %v431_v27 = vmul.f32 %v5017_v42, %v5087_v20  ;;  %v451_v31 = vmul.f32 %v5026_v46, %v5089_v21  ;;  %v534_v2 = vmul.f32 %v5060_v62, %v5089_v21 }
 0x120   :  { %v293_v59 = vadd.f32 %v289_v52, %v269_v49  ;;  %v454_v32 = vadd.f32 %v450_v58, %v430_v56 }
 0x121   :  { %v5101_v34 = vpop.permute.xlu1 %362  ;;  %v296_v43 = vadd.f32 %v292_v28, %v5046_v54  ;;  %v455_v63 = vadd.f32 %v451_v31, %v431_v27 }
 0x122   :  { %1083 = vperm.xlu1 %4249, %v4855_v5   ;;  %155 = vperm.xlu0 %4270, %v4888_v11   ;;  %v297_v42 = vadd.f32 %v293_v59, %v5121_v41  ;;  %v458_v46 = vadd.f32 %v454_v32, %v5046_v54 }
 0x123   :  { %v304_v3 = vmul.f32 1.442695, %v296_v43  ;;  %v459_v13 = vadd.f32 %v455_v63, %v5121_v41  ;;  %vm300_vm0 = vcmp.gt.f32.partialorder %v296_v43, 0.0 }
 0x124   :  { %v306_v4 = vmul.f32 1.442695, %v297_v42  ;;  %v466_v15 = vmul.f32 1.442695, %v458_v46  ;;  %vm301_vm1 = vcmp.gt.f32.partialorder %v297_v42, 0.0  ;;  %vm462_vm2 = vcmp.gt.f32.partialorder %v458_v46, 0.0 }
 0x125   :  { %4277 = vpow2.f32 %v304_v3  ;;  %v468_v6 = vmul.f32 1.442695, %v459_v13  ;;  %vm463_vm3 = vcmp.gt.f32.partialorder %v459_v13, 0.0 }
 0x126   :  { %v5117_v61 = vpop.permute.xlu1 %658  ;;  %4250 = vset.pattern.permute.xlu1 %v4697_v22  ;;  %183 = vperm.xlu0 %4270, %v4867_v7   ;;  %4279 = vpow2.f32 %v306_v4 }
 0x127   :  { %828 = vperm.xlu1 %4250, %v4888_v11   ;;  %4281 = vpow2.f32 %v466_v15 }
 0x128   :  { %4283 = vpow2.f32 %v468_v6 }
 0x12a   :  { %v5125_v1 = vpop.permute.xlu1 %678 }
 0x12b   :  { %848 = vperm.xlu1 %4250, %v4867_v7  }
 0x12e   :  { %v5130_v22 = vpop.permute.xlu1 %682 }
 0x12f   :  { %852 = vperm.xlu1 %4250, %v4895_v12   ;;  %v4278_v49 = vpop.eup %4277 }
 0x130   :  { %v4280_v52 = vpop.eup %4279  ;;  %v3908_v56 = vadd.f32 -1.0, %v4278_v49 }
 0x131   :  { %v3909_v28 = vadd.f32 -1.0, %v4280_v52  ;;  %v4282_v27 = vpop.eup %4281  ;;  %v5144_v52 = vpop.permute.xlu0 %215 }
 0x132   :  { %v316_v31 = vsel %vm300_vm0, %v296_v43, %v3908_v56  ;;  %v4284_v59 = vpop.eup %4283  ;;  %v3916_v63 = vadd.f32 -1.0, %v4282_v27  ;;  %v290_v27 = vmul.f32 %v4982_v30, %v5089_v21  ;;  %v271_v30 = vmul.f32 %v5063_v0, %v5087_v20 }
 0x133   :  { %v428_v25 = vpop.permute.xlu1 %427  ;;  %4252 = vset.pattern.permute.xlu1 %v6640_v37  ;;  %v317_v32 = vsel %vm301_vm1, %v297_v42, %v3909_v28  ;;  %v3917_v4 = vadd.f32 -1.0, %v4284_v59  ;;  %v270_v28 = vmul.f32 %v5057_v60, %v5087_v20  ;;  %v371_v59 = vmul.f32 %v5101_v34, %v5089_v21 }
 0x134   :  { %1148 = vperm.xlu1 %4252, %v4872_v8   ;;  %v320_v3 = vpack.c.bf16 %v317_v32, %v316_v31  ;;  %v478_v6 = vsel %vm462_vm2, %v458_v46, %v3916_v63  ;;  %v351_v32 = vmul.f32 %v5004_v38, %v5087_v20  ;;  %v372_v38 = vmul.f32 %v5011_v40, %v5089_v21 }
 0x135   :  { %v479_v49 = vsel %vm463_vm3, %v459_v13, %v3917_v4  ;;  %v5151_v42 = vpop.permute.xlu0 %581  ;;  %v294_v63 = vadd.f32 %v290_v27, %v270_v28  ;;  %v291_v34 = vmul.f32 %v5068_v10, %v5089_v21  ;;  %v432_v0 = vmul.f32 %v5024_v45, %v5087_v20 }
 0x136   :  { %324 = vrot.lane.b32.xlu0 %v320_v3, %s4688_s20  ;;  %v375_v60 = vadd.f32 %v371_v59, %v351_v32  ;;  %v453_v40 = vmul.f32 %v5031_v47, %v5089_v21 }
 0x137   :  { %v444_v26 = vpop.permute.xlu1 %443  ;;  %v295_v32 = vadd.f32 %v291_v34, %v271_v30 }
 0x138   :  { %1164 = vperm.xlu1 %4252, %v4855_v5  }
 0x139   :  { %v5155_v13 = vpop.permute.xlu0 %589 }
 0x13c   :  { %v5137_v58 = vpop.permute.xlu1 %739  ;;  %4253 = vset.pattern.permute.xlu1 %v4698_v23  ;;  %v482_v23 = vpack.c.bf16 %v479_v49, %v478_v6  ;;  %v452_v6 = vmul.f32 %v444_v26, %v5089_v21  ;;  %v352_v49 = vmul.f32 %v5092_v9, %v5087_v20  ;;  %v5193_v26 = vadd.f32 %v375_v60, %v5144_v52 }
 0x13d   :  { %909 = vperm.xlu1 %4253, %v4888_v11   ;;  %v5169_v3 = vpop.permute.xlu0 %662  ;;  %v513_v60 = vmul.f32 %v5051_v57, %v5087_v20 }
 0x13e   :  { %486 = vrot.lane.b32.xlu0 %v482_v23, %s4705_s0  ;;  %v433_v23 = vmul.f32 %v428_v25, %v5087_v20  ;;  %v456_v59 = vadd.f32 %v452_v6, %v432_v0  ;;  %v389_v47 = vmul.f32 1.442695, %v5193_v26  ;;  %vm383_vm7 = vcmp.gt.f32.partialorder %v5193_v26, 0.0 }
 0x140   :  { %v5141_v15 = vpop.permute.xlu1 %759  ;;  %v457_v45 = vadd.f32 %v453_v40, %v433_v23 }
 0x141   :  { %929 = vperm.xlu1 %4253, %v4867_v7   ;;  %v5195_v27 = vpop.permute.xlu0 %670 }
 0x144   :  { %v5147_v43 = vpop.permute.xlu1 %763 }
 0x145   :  { %933 = vperm.xlu1 %4253, %v4895_v12   ;;  %v5217_v30 = vpop.permute.xlu0 %743 }
 0x149   :  { %v509_v56 = vpop.permute.xlu1 %508  ;;  %4255 = vset.pattern.permute.xlu1 %v6639_v44 }
 0x14a   :  { %1229 = vperm.xlu1 %4255, %v4872_v8   ;;  %v514_v10 = vmul.f32 %v509_v56, %v5087_v20 }
 0x14c   :  { %v538_v57 = vadd.f32 %v534_v2, %v514_v10  ;;  %v5234_v10 = vpop.permute.xlu0 %751 }
 0x14d   :  { %v525_v46 = vpop.permute.xlu1 %524 }
 0x14e   :  { %1245 = vperm.xlu1 %4255, %v4855_v5   ;;  %v533_v9 = vmul.f32 %v525_v46, %v5089_v21 }
 0x150   :  { %v537_v34 = vadd.f32 %v533_v9, %v513_v60 }
 0x152   :  { %v5162_v31 = vpop.permute.xlu1 %820  ;;  %4256 = vset.pattern.permute.xlu1 %v4699_v24  ;;  %v5179_v24 = vadd.f32 %v294_v63, %v5144_v52  ;;  %v376_v63 = vadd.f32 %v372_v38, %v352_v49  ;;  %v5220_v38 = vadd.f32 %v456_v59, %v5144_v52  ;;  %v5231_v2 = vadd.f32 %v537_v34, %v5144_v52 }
 0x153   :  { %6643 = vst [vmem:[#allocation17_spill] sm:$0xff] %v5162_v31  ;;  %990 = vperm.xlu1 %4256, %v4888_v11  }
 0x154   :  { %v308_v25 = vmul.f32 1.442695, %v5179_v24  ;;  %v470_v59 = vmul.f32 1.442695, %v5220_v38  ;;  %vm302_vm4 = vcmp.gt.f32.partialorder %v5179_v24, 0.0  ;;  %vm464_vm9 = vcmp.gt.f32.partialorder %v5220_v38, 0.0 }
 0x155   :  { %vm545_vm11 = vcmp.gt.f32.partialorder %v5231_v2, 0.0 }
 0x156   :  { %v5172_v4 = vpop.permute.xlu1 %840  ;;  %4285 = vpow2.f32 %v308_v25 }
 0x157   :  { %1010 = vperm.xlu1 %4256, %v4867_v7   ;;  %4287 = vpow2.f32 %v389_v47 }
 0x15a   :  { %v5188_v28 = vpop.permute.xlu1 %844 }
 0x15b   :  { %1014 = vperm.xlu1 %4256, %v4895_v12  }
 0x15f   :  { %v5208_v6 = vpop.permute.xlu1 %220  ;;  %4258 = vset.pattern.permute.xlu1 %v6638_v55 }
 0x160   :  { %v299_v56 = vadd.f32 %v295_v32, %v5208_v6  ;;  %v5212_v46 = vadd.f32 %v376_v63, %v5208_v6  ;;  %v5215_v0 = vadd.f32 %v457_v45, %v5208_v6  ;;  %1310 = vperm.xlu1 %4258, %v4872_v8   ;;  %v5227_v40 = vadd.f32 %v538_v57, %v5208_v6  ;;  %v4286_v47 = vpop.eup %4285 }
 0x161   :  { %v551_v63 = vmul.f32 1.442695, %v5231_v2 }
 0x162   :  { %v310_v62 = vmul.f32 1.442695, %v299_v56  ;;  %v391_v49 = vmul.f32 1.442695, %v5212_v46  ;;  %v472_v23 = vmul.f32 1.442695, %v5215_v0 }
 0x163   :  { %v553_v9 = vmul.f32 1.442695, %v5227_v40  ;;  %vm303_vm5 = vcmp.gt.f32.partialorder %v299_v56, 0.0  ;;  %vm384_vm6 = vcmp.gt.f32.partialorder %v5212_v46, 0.0  ;;  %vm465_vm8 = vcmp.gt.f32.partialorder %v5215_v0, 0.0 }
 0x164   :  { %v586_v32 = vpop.permute.xlu1 %585  ;;  %4289 = vpow2.f32 %v310_v62  ;;  %1326 = vperm.xlu1 %4258, %v4855_v5   ;;  %v4288_v62 = vpop.eup %4287  ;;  %vm546_vm10 = vcmp.gt.f32.partialorder %v5227_v40, 0.0 }
 0x165   :  { %4291 = vpow2.f32 %v391_v49  ;;  %v594_v45 = vmul.f32 %v586_v32, %v5087_v20  ;;  %v595_v49 = vmul.f32 %v5155_v13, %v5087_v20 }
 0x166   :  { %4293 = vpow2.f32 %v472_v23  ;;  %v5244_v23 = vpop.permute.xlu0 %824 }
 0x167   :  { %4295 = vpow2.f32 %v470_v59 }
 0x168   :  { %v606_v25 = vpop.permute.xlu1 %605  ;;  %4259 = vset.pattern.permute.xlu1 %v4700_v29  ;;  %4297 = vpow2.f32 %v553_v9  ;;  %v3910_v29 = vadd.f32 -1.0, %v4286_v47 }
 0x169   :  { %v614_v60 = vmul.f32 %v606_v25, %v5089_v21  ;;  %1071 = vperm.xlu1 %4259, %v4888_v11   ;;  %4299 = vpow2.f32 %v551_v63 }
 0x16a   :  { %v5257_v31 = vpop.permute.xlu0 %832 }
 0x16b   :  { %v618_v57 = vadd.f32 %v614_v60, %v594_v45 }
 0x16c   :  { %v610_v34 = vpop.permute.xlu1 %609 }
 0x16d   :  { %v5247_v59 = vadd.f32 %v618_v57, %v5144_v52  ;;  %v615_v32 = vmul.f32 %v610_v34, %v5089_v21  ;;  %1091 = vperm.xlu1 %4259, %v4867_v7   ;;  %v318_v57 = vsel %vm302_vm4, %v5179_v24, %v3910_v29  ;;  %v3914_v34 = vadd.f32 -1.0, %v4288_v62 }
 0x16e   :  { %v4290_v25 = vpop.eup %4289 }
 0x16f   :  { %v4292_v55 = vpop.eup %4291  ;;  %v632_v45 = vmul.f32 1.442695, %v5247_v59  ;;  %v619_v60 = vadd.f32 %v615_v32, %v595_v49  ;;  %v3911_v9 = vadd.f32 -1.0, %v4290_v25  ;;  %vm626_vm12 = vcmp.gt.f32.partialorder %v5247_v59, 0.0 }
 0x170   :  { %v3915_v44 = vadd.f32 -1.0, %v4292_v55  ;;  %v4294_v37 = vpop.eup %4293 }
 0x171   :  { %4301 = vpow2.f32 %v632_v45  ;;  %v623_v13 = vadd.f32 %v619_v60, %v5208_v6  ;;  %v5253_v63 = vpop.permute.xlu1 %905  ;;  %v319_v47 = vsel %vm303_vm5, %v299_v56, %v3911_v9  ;;  %v4296_v14 = vpop.eup %4295  ;;  %1095 = vperm.xlu1 %4259, %v4895_v12   ;;  %v3919_v25 = vadd.f32 -1.0, %v4294_v37 }
 0x172   :  { %v321_v55 = vpack.c.bf16 %v319_v47, %v318_v57  ;;  %v400_v32 = vsel %vm384_vm6, %v5212_v46, %v3915_v44  ;;  %v4298_v45 = vpop.eup %4297  ;;  %v399_v56 = vsel %vm383_vm7, %v5193_v26, %v3914_v34  ;;  %v3918_v62 = vadd.f32 -1.0, %v4296_v14  ;;  %v5272_v46 = vpop.permute.xlu0 %901 }
 0x173   :  { %v634_v49 = vmul.f32 1.442695, %v623_v13  ;;  %v4300_v29 = vpop.eup %4299  ;;  %v6644_v60 = vmov 15   ;;  %v402_v9 = vpack.c.bf16 %v400_v32, %v399_v56  ;;  %v481_v37 = vsel %vm465_vm8, %v5215_v0, %v3919_v25 }
 0x174   :  { %326 = vrot.lane.b32.xlu0 %v321_v55, %s4688_s20  ;;  %v3923_v44 = vadd.f32 -1.0, %v4298_v45  ;;  %s4706_s20 = smov 16   ;;  %v480_v14 = vsel %vm464_vm9, %v5220_v38, %v3918_v62  ;;  %v3922_v57 = vadd.f32 -1.0, %v4300_v29  ;;  %v6645_v62 = vmov 12  }
 0x175   :  { %4303 = vpow2.f32 %v634_v49  ;;  %v5264_v24 = vpop.permute.xlu1 %921  ;;  %4261 = vset.pattern.permute.xlu1 %v6644_v60  ;;  %v483_v34 = vpack.c.bf16 %v481_v37, %v480_v14  ;;  %vm627_vm13 = vcmp.gt.f32.partialorder %v623_v13, 0.0  ;;  %v676_v37 = vmul.f32 %v5195_v27, %v5087_v20 }
 0x176   :  { %1391 = vperm.xlu1 %4261, %v4872_v8   ;;  %v562_v8 = vsel %vm546_vm10, %v5227_v40, %v3923_v44  ;;  %v561_v49 = vsel %vm545_vm11, %v5231_v2, %v3922_v57  ;;  %v5282_v25 = vpop.permute.xlu0 %925 }
 0x177   :  { %v564_v56 = vpack.c.bf16 %v562_v8, %v561_v49  ;;  %v6646_v49 = vmov 13  }
 0x178   :  { %407 = vrot.lane.b32.xlu0 %v402_v9, %s4706_s20 }
 0x17a   :  { %v667_v26 = vpop.permute.xlu1 %666  ;;  %1407 = vperm.xlu1 %4261, %v4855_v5   ;;  %v5295_v57 = vpop.permute.xlu0 %913 }
 0x17b   :  { %v4302_v47 = vpop.eup %4301  ;;  %v675_v38 = vmul.f32 %v667_v26, %v5087_v20 }
 0x17c   :  { %488 = vrot.lane.b32.xlu0 %v483_v34, %s4705_s0  ;;  %v3926_v55 = vadd.f32 -1.0, %v4302_v47 }
 0x17e   :  { %v687_v0 = vpop.permute.xlu1 %686  ;;  %4262 = vset.pattern.permute.xlu1 %v6645_v62  ;;  %v642_v29 = vsel %vm626_vm12, %v5247_v59, %v3926_v55  ;;  %v5303_v8 = vpop.permute.xlu0 %982  ;;  %v593_v62 = vmul.f32 %v5151_v42, %v5087_v20 }
 0x17f   :  { %v4304_v32 = vpop.eup %4303  ;;  %v695_v45 = vmul.f32 %v687_v0, %v5089_v21  ;;  %1152 = vperm.xlu1 %4262, %v4888_v11  }
 0x180   :  { %v3927_v5 = vadd.f32 -1.0, %v4304_v32  ;;  %569 = vrot.lane.b32.xlu0 %v564_v56, %s4707_s24  ;;  %v612_v56 = vmul.f32 %v5079_v18, %v5089_v21  ;;  %v350_v18 = vmul.f32 %v5000_v36, %v5087_v20 }
 0x181   :  { %v699_v40 = vadd.f32 %v695_v45, %v675_v38  ;;  %v592_v45 = vmul.f32 %v5075_v17, %v5087_v20  ;;  %v349_v17 = vmul.f32 %v4990_v33, %v5087_v20  ;;  %v370_v33 = vmul.f32 %v4997_v35, %v5089_v21 }
 0x182   :  { %v691_v2 = vpop.permute.xlu1 %690  ;;  %v643_v9 = vsel %vm627_vm13, %v623_v13, %v3927_v5  ;;  %v5309_v38 = vpop.permute.xlu0 %1006  ;;  %v613_v5 = vmul.f32 %v5083_v19, %v5089_v21  ;;  %v531_v35 = vmul.f32 %v5039_v51, %v5089_v21 }
 0x183   :  { %v703_v44 = vadd.f32 %v699_v40, %v5144_v52  ;;  %v696_v26 = vmul.f32 %v691_v2, %v5089_v21  ;;  %v645_v14 = vpack.c.bf16 %v643_v9, %v642_v29  ;;  %1172 = vperm.xlu1 %4262, %v4867_v7  }
 0x185   :  { %v713_v47 = vmul.f32 1.442695, %v703_v44  ;;  %v700_v34 = vadd.f32 %v696_v26, %v676_v37  ;;  %650 = vrot.lane.b32.xlu0 %v645_v14, %s4708_s2  ;;  %v616_v26 = vadd.f32 %v612_v56, %v592_v45  ;;  %v6647_v14 = vmov 14  }
 0x186   :  { %vm707_vm14 = vcmp.gt.f32.partialorder %v703_v44, 0.0 }
 0x187   :  { %4305 = vpow2.f32 %v713_v47  ;;  %v704_v59 = vadd.f32 %v700_v34, %v5208_v6  ;;  %v5300_v13 = vpop.permute.xlu1 %986  ;;  %1176 = vperm.xlu1 %4262, %v4895_v12   ;;  %v617_v47 = vadd.f32 %v613_v5, %v593_v62  ;;  %v5327_v34 = vpop.permute.xlu0 %994  ;;  %v532_v5 = vmul.f32 %v5044_v53, %v5089_v21 }
 0x189   :  { %v715_v27 = vmul.f32 1.442695, %v704_v59  ;;  %vm708_vm15 = vcmp.gt.f32.partialorder %v704_v59, 0.0 }
 0x18b   :  { %4307 = vpow2.f32 %v715_v27  ;;  %v5305_v0 = vpop.permute.xlu1 %1002  ;;  %4264 = vset.pattern.permute.xlu1 %v6646_v49  ;;  %v369_v27 = vmul.f32 %v5006_v39, %v5089_v21  ;;  %v5343_v39 = vadd.f32 %v616_v26, %v5046_v54  ;;  %v5357_v51 = vpop.permute.xlu0 %1063 }
 0x18c   :  { %1237 = vperm.xlu1 %4264, %v4920_v16  }
 0x18d   :  { %vm624_vm0 = vcmp.gt.f32.partialorder %v5343_v39, 0.0 }
 0x190   :  { %v748_v55 = vpop.permute.xlu1 %747  ;;  %1253 = vperm.xlu1 %4264, %v4867_v7  }
 0x191   :  { %v4306_v32 = vpop.eup %4305  ;;  %v756_v9 = vmul.f32 %v748_v55, %v5087_v20 }
 0x192   :  { %v3930_v2 = vadd.f32 -1.0, %v4306_v32  ;;  %v757_v32 = vmul.f32 %v5234_v10, %v5087_v20 }
 0x194   :  { %v768_v40 = vpop.permute.xlu1 %767  ;;  %4266 = vset.pattern.permute.xlu1 %v6647_v14  ;;  %v723_v36 = vsel %vm707_vm14, %v703_v44, %v3930_v2  ;;  %v5348_v44 = vadd.f32 %v617_v47, %v5121_v41  ;;  %v374_v2 = vadd.f32 %v370_v33, %v350_v18  ;;  %v694_v18 = vmul.f32 %v5130_v22, %v5089_v21 }
 0x195   :  { %v4308_v29 = vpop.eup %4307  ;;  %v776_v37 = vmul.f32 %v768_v40, %v5089_v21  ;;  %1314 = vperm.xlu1 %4266, %v4888_v11   ;;  %v511_v11 = vmul.f32 %v5037_v50, %v5087_v20  ;;  %v512_v50 = vmul.f32 %v5033_v48, %v5087_v20  ;;  %v373_v40 = vadd.f32 %v369_v27, %v349_v17  ;;  %v5384_v27 = vpop.permute.xlu0 %1087 }
 0x196   :  { %v3931_v42 = vadd.f32 -1.0, %v4308_v29  ;;  %v630_v26 = vmul.f32 1.442695, %v5348_v44  ;;  %v693_v48 = vmul.f32 %v5125_v1, %v5089_v21  ;;  %v5378_v47 = vadd.f32 %v374_v2, %v5121_v41 }
 0x197   :  { %v780_v19 = vadd.f32 %v776_v37, %v756_v9  ;;  %v628_v9 = vmul.f32 1.442695, %v5343_v39  ;;  %v535_v37 = vadd.f32 %v531_v35, %v511_v11  ;;  %v536_v17 = vadd.f32 %v532_v5, %v512_v50 }
 0x198   :  { %v772_v49 = vpop.permute.xlu1 %771  ;;  %v724_v55 = vsel %vm708_vm15, %v704_v59, %v3931_v42  ;;  %v5373_v14 = vadd.f32 %v373_v40, %v5046_v54  ;;  %v673_v42 = vmul.f32 %v5117_v61, %v5087_v20  ;;  %v674_v1 = vmul.f32 %v5169_v3, %v5087_v20 }
 0x199   :  { %v5337_v45 = vadd.f32 %v780_v19, %v5144_v52  ;;  %v777_v56 = vmul.f32 %v772_v49, %v5089_v21  ;;  %v726_v62 = vpack.c.bf16 %v724_v55, %v723_v36  ;;  %1334 = vperm.xlu1 %4266, %v4867_v7   ;;  %v5388_v22 = vadd.f32 %v535_v37, %v5046_v54  ;;  %v5407_v11 = vpop.permute.xlu0 %1075 }
 0x19a   :  { %v698_v61 = vadd.f32 %v694_v18, %v674_v1  ;;  %v385_v33 = vmul.f32 1.442695, %v5373_v14  ;;  %v5393_v49 = vadd.f32 %v536_v17, %v5121_v41  ;;  %v387_v3 = vmul.f32 1.442695, %v5378_v47  ;;  %v4582_v17 = vld [vmem:[%s6625_s3] sm:$0xff] }
 0x19b   :  { %v794_v10 = vmul.f32 1.442695, %v5337_v45  ;;  %v781_v59 = vadd.f32 %v777_v56, %v757_v32  ;;  %731 = vrot.lane.b32.xlu0 %v726_v62, %s4709_s14  ;;  %v547_v32 = vmul.f32 1.442695, %v5388_v22  ;;  %v755_v35 = vmul.f32 %v5217_v30, %v5087_v20 }
 0x19c   :  { %v549_v62 = vmul.f32 1.442695, %v5393_v49  ;;  %vm625_vm1 = vcmp.gt.f32.partialorder %v5348_v44, 0.0  ;;  %v836_v40 = vmul.f32 %v5244_v23, %v5087_v20  ;;  %v774_v30 = vmul.f32 %v5141_v15, %v5089_v21 }
 0x19d   :  { %4309 = vpow2.f32 %v794_v10  ;;  %v5360_v29 = vadd.f32 %v781_v59, %v5208_v6  ;;  %v5363_v7 = vpop.permute.xlu1 %1067  ;;  %1338 = vperm.xlu1 %4266, %v4895_v12   ;;  %v697_v12 = vadd.f32 %v693_v48, %v673_v42  ;;  %v775_v10 = vmul.f32 %v5147_v43, %v5089_v21 }
 0x19e   :  { %v6648_v37 = vmov 0   ;;  %vm788_vm2 = vcmp.gt.f32.partialorder %v5337_v45, 0.0  ;;  %v754_v15 = vmul.f32 %v5137_v58, %v5087_v20  ;;  %vm381_vm4 = vcmp.gt.f32.partialorder %v5373_v14, 0.0 }
 0x19f   :  { %v796_v53 = vmul.f32 1.442695, %v5360_v29  ;;  %v5397_v55 = vadd.f32 %v697_v12, %v5046_v54  ;;  %vm789_vm3 = vcmp.gt.f32.partialorder %v5360_v29, 0.0  ;;  %v779_v18 = vadd.f32 %v775_v10, %v755_v35  ;;  %v6649_v10 = vld [vmem:[#allocation17_spill] sm:$0xff] }
 0x1a0   :  { %v856_v12 = vmul.f32 %v5188_v28, %v5089_v21  ;;  %v916_v35 = vmul.f32 %v5272_v46, %v5087_v20  ;;  %vm382_vm5 = vcmp.gt.f32.partialorder %v5378_v47, 0.0  ;;  %v937_v46 = vmul.f32 %v5282_v25, %v5089_v21 }
 0x1a1   :  { %4311 = vpow2.f32 %v796_v53  ;;  %v5382_v19 = vpop.permute.xlu1 %1083  ;;  %4268 = vset.pattern.permute.xlu1 %v6644_v60  ;;  %v5401_v60 = vadd.f32 %v698_v61, %v5121_v41  ;;  %v709_v5 = vmul.f32 1.442695, %v5397_v55  ;;  %v5435_v61 = vpop.permute.xlu0 %1144  ;;  %vm543_vm6 = vcmp.gt.f32.partialorder %v5388_v22, 0.0 }
 0x1a2   :  { %4313 = vpow2.f32 %v628_v9  ;;  %1399 = vperm.xlu1 %4268, %v4920_v16   ;;  %v4581_v16 = vld [vmem:[%s6625_s3 + $0x30] sm:$0xff]  ;;  %vm544_vm7 = vcmp.gt.f32.partialorder %v5393_v49, 0.0  ;;  %vm705_vm11 = vcmp.gt.f32.partialorder %v5397_v55, 0.0 }
 0x1a3   :  { %4315 = vpow2.f32 %v630_v26  ;;  %v711_v9 = vmul.f32 1.442695, %v5401_v60  ;;  %vm706_vm8 = vcmp.gt.f32.partialorder %v5401_v60, 0.0 }
 0x1a4   :  { %4317 = vpow2.f32 %v385_v33 }
 0x1a5   :  { %4319 = vpow2.f32 %v387_v3 }
 0x1a6   :  { %1415 = vperm.xlu1 %4268, %v4581_v16   ;;  %v829_v56 = vpop.permute.xlu1 %828  ;;  %4321 = vpow2.f32 %v547_v32  ;;  %v778_v32 = vadd.f32 %v774_v30, %v754_v15 }
 0x1a7   :  { %v4310_v36 = vpop.eup %4309  ;;  %4323 = vpow2.f32 %v549_v62  ;;  %v837_v53 = vmul.f32 %v829_v56, %v5087_v20  ;;  %v4583_v62 = vld [vmem:[%s6625_s3 + $0x20] sm:$0xff] }
 0x1a8   :  { %v3934_v59 = vadd.f32 -1.0, %v4310_v36  ;;  %4325 = vpow2.f32 %v709_v5  ;;  %v838_v36 = vmul.f32 %v5257_v31, %v5087_v20  ;;  %v5480_v25 = vadd.f32 %v778_v32, %v5046_v54 }
 0x1a9   :  { %4327 = vpow2.f32 %v711_v9  ;;  %v936_v9 = vmul.f32 %v5264_v24, %v5089_v21 }
 0x1aa   :  { %4269 = vset.pattern.permute.xlu1 %v6648_v37  ;;  %v849_v43 = vpop.permute.xlu1 %848  ;;  %v804_v42 = vsel %vm788_vm2, %v5337_v45, %v3934_v59  ;;  %v855_v45 = vmul.f32 %v5172_v4, %v5089_v21  ;;  %v5453_v4 = vadd.f32 %v779_v18, %v5121_v41  ;;  %v835_v59 = vmul.f32 %v6649_v10, %v5087_v20 }
 0x1ab   :  { %v4312_v50 = vpop.eup %4311  ;;  %v857_v23 = vmul.f32 %v849_v43, %v5089_v21  ;;  %145 = vperm.xlu1 %4269, %v4582_v17   ;;  %v1098_v10 = vmul.f32 %v5382_v19, %v5089_v21  ;;  %v1078_v19 = vmul.f32 %v5357_v51, %v5087_v20  ;;  %vm786_vm13 = vcmp.gt.f32.partialorder %v5480_v25, 0.0 }
 0x1ac   :  { %v4314_v2 = vpop.eup %4313  ;;  %v3935_v26 = vadd.f32 -1.0, %v4312_v50  ;;  %v917_v50 = vmul.f32 %v5253_v63, %v5087_v20  ;;  %vm787_vm12 = vcmp.gt.f32.partialorder %v5453_v4, 0.0 }
 0x1ad   :  { %v4316_v48 = vpop.eup %4315  ;;  %v861_v33 = vadd.f32 %v857_v23, %v837_v53  ;;  %v3924_v56 = vadd.f32 -1.0, %v4314_v2  ;;  %v860_v2 = vadd.f32 %v856_v12, %v836_v40 }
 0x1ae   :  { %v805_v1 = vsel %vm789_vm3, %v5360_v29, %v3935_v26  ;;  %v853_v16 = vpop.permute.xlu1 %852  ;;  %v3925_v58 = vadd.f32 -1.0, %v4316_v48  ;;  %v4318_v31 = vpop.eup %4317  ;;  %v1017_v26 = vmul.f32 %v5305_v0, %v5089_v21  ;;  %v859_v48 = vadd.f32 %v855_v45, %v835_v59 }
 0x1af   :  { %v807_v3 = vpack.c.bf16 %v805_v1, %v804_v42  ;;  %v5442_v29 = vadd.f32 %v861_v33, %v5144_v52  ;;  %v858_v28 = vmul.f32 %v853_v16, %v5089_v21  ;;  %173 = vperm.xlu1 %4269, %v4583_v62   ;;  %v4320_v5 = vpop.eup %4319  ;;  %v5472_v63 = vsel %vm624_vm0, %v5343_v39, %v3924_v56  ;;  %v5482_v0 = vpop.permute.xlu0 %1168  ;;  %v4584_v39 = vld [vmem:[%s6625_s3 + $0x28] sm:$0xff] }
 0x1b0   :  { %v5477_v24 = vsel %vm625_vm1, %v5348_v44, %v3925_v58  ;;  %v4322_v40 = vpop.eup %4321  ;;  %v997_v44 = vmul.f32 %v5303_v8, %v5087_v20  ;;  %v941_v15 = vadd.f32 %v937_v46, %v917_v50  ;;  %v3912_v18 = vadd.f32 -1.0, %v4318_v31 }
 0x1b1   :  { %812 = vrot.lane.b32.xlu0 %v807_v3, %s4710_s12  ;;  %v875_v30 = vmul.f32 1.442695, %v5442_v29  ;;  %v862_v43 = vadd.f32 %v858_v28, %v838_v36  ;;  %v4324_v17 = vpop.eup %4323  ;;  %v3913_v42 = vadd.f32 -1.0, %v4320_v5  ;;  %v792_v1 = vmul.f32 1.442695, %v5453_v4  ;;  %v4585_v28 = vld [vmem:[%s6625_s3 + $0x18] sm:$0xff] }
 0x1b2   :  { %v5494_v12 = vadd.f32 %v860_v2, %v5121_v41  ;;  %v940_v33 = vadd.f32 %v936_v9, %v916_v35  ;;  %v998_v36 = vmul.f32 %v5300_v13, %v5087_v20  ;;  %v1021_v32 = vadd.f32 %v1017_v26, %v997_v44  ;;  %v4326_v8 = vpop.eup %4325  ;;  %v4586_v26 = vld [vmem:[%s6625_s3 + $0x38] sm:$0xff]  ;;  %s4711_s3 = smov 72  }
 0x1b3   :  { %4329 = vpow2.f32 %v875_v30  ;;  %v5485_v53 = vadd.f32 %v862_v43, %v5208_v6  ;;  %178 = vperm.xlu1 %4269, %v4584_v39   ;;  %v1149_v23 = vpop.permute.xlu1 %1148  ;;  %v3920_v16 = vadd.f32 -1.0, %v4322_v40  ;;  %v644_v56 = vpack.c.bf16 %v5477_v24, %v5472_v63  ;;  %v4328_v50 = vpop.eup %4327 }
 0x1b4   :  { %v790_v58 = vmul.f32 1.442695, %v5480_v25  ;;  %v5503_v45 = vadd.f32 %v859_v48, %v5046_v54  ;;  %v3921_v31 = vadd.f32 -1.0, %v4324_v17  ;;  %v1018_v13 = vmul.f32 %v5309_v38, %v5089_v21  ;;  %v5519_v2 = vpop.permute.xlu0 %1156 }
 0x1b5   :  { %v877_v3 = vmul.f32 1.442695, %v5485_v53  ;;  %v5511_v35 = vadd.f32 %v941_v15, %v5121_v41  ;;  %v397_v59 = vsel %vm381_vm4, %v5373_v14, %v3912_v18  ;;  %v873_v5 = vmul.f32 1.442695, %v5494_v12 }
 0x1b6   :  { %v5522_v9 = vadd.f32 %v940_v33, %v5046_v54  ;;  %v398_v38 = vsel %vm382_vm5, %v5378_v47, %v3913_v42  ;;  %v1022_v30 = vadd.f32 %v1018_v13, %v998_v36  ;;  %v5530_v43 = vadd.f32 %v1021_v32, %v5046_v54 }
 0x1b7   :  { %4331 = vpow2.f32 %v877_v3  ;;  %160 = vperm.xlu1 %4269, %v4585_v28   ;;  %v1165_v62 = vpop.permute.xlu1 %1164  ;;  %v1079_v14 = vmul.f32 %v5363_v7, %v5087_v20  ;;  %v871_v46 = vmul.f32 1.442695, %v5503_v45  ;;  %v559_v47 = vsel %vm543_vm6, %v5388_v22, %v3920_v16 }
 0x1b8   :  { %4333 = vpow2.f32 %v792_v1  ;;  %v560_v51 = vsel %vm544_vm7, %v5393_v49, %v3921_v31  ;;  %v1099_v40 = vmul.f32 %v5384_v27, %v5089_v21  ;;  %v954_v7 = vmul.f32 1.442695, %v5511_v35  ;;  %v5556_v33 = vpop.permute.xlu0 %1225 }
 0x1b9   :  { %4335 = vpow2.f32 %v790_v58  ;;  %v1102_v48 = vadd.f32 %v1098_v10, %v1078_v19  ;;  %v1179_v39 = vmul.f32 %v1165_v62, %v5089_v21  ;;  %v952_v15 = vmul.f32 1.442695, %v5522_v9 }
 0x1ba   :  { %4337 = vpow2.f32 %v873_v5  ;;  %v401_v22 = vpack.c.bf16 %v398_v38, %v397_v59  ;;  %v3928_v18 = vadd.f32 -1.0, %v4326_v8  ;;  %v1159_v49 = vmul.f32 %v5435_v61, %v5087_v20 }
 0x1bb   :  { %188 = vperm.xlu1 %4269, %v4586_v26   ;;  %v5553_v42 = vadd.f32 %v1022_v30, %v5121_v41  ;;  %v1033_v27 = vmul.f32 1.442695, %v5530_v43  ;;  %v1103_v1 = vadd.f32 %v1099_v40, %v1079_v14  ;;  %4339 = vpow2.f32 %v871_v46 }
 0x1bc   :  { %v910_v17 = vpop.permute.xlu1 %909  ;;  %v1160_v3 = vmul.f32 %v1149_v23, %v5087_v20  ;;  %v563_v36 = vpack.c.bf16 %v560_v51, %v559_v47  ;;  %v3929_v32 = vadd.f32 -1.0, %v4328_v50  ;;  %4341 = vpow2.f32 %v954_v7  ;;  %v1250_v51 = vpop.permute.xlu0 %1249 }
 0x1bd   :  { %v4330_v44 = vpop.eup %4329  ;;  %v5561_v16 = vadd.f32 %v1102_v48, %v5046_v54  ;;  %v1183_v61 = vadd.f32 %v1179_v39, %v1159_v49  ;;  %v1180_v62 = vmul.f32 %v5482_v0, %v5089_v21  ;;  %4343 = vpow2.f32 %v952_v15 }
 0x1be   :  { %v3938_v58 = vadd.f32 -1.0, %v4330_v44  ;;  %v918_v31 = vmul.f32 %v910_v17, %v5087_v20  ;;  %v1035_v13 = vmul.f32 1.442695, %v5553_v42  ;;  %4345 = vpow2.f32 %v1033_v27 }
 0x1bf   :  { %405 = vrot.lane.b32.xlu1 %v401_v22, %s4706_s20  ;;  %v5569_v10 = vadd.f32 %v1103_v1, %v5121_v41  ;;  %v1184_v5 = vadd.f32 %v1180_v62, %v1160_v3  ;;  %vm869_vm9 = vcmp.gt.f32.partialorder %v5442_v29, 0.0  ;;  %vm870_vm10 = vcmp.gt.f32.partialorder %v5485_v53, 0.0 }
 0x1c0   :  { %v930_v8 = vpop.permute.xlu1 %929  ;;  %v1114_v0 = vmul.f32 1.442695, %v5561_v16  ;;  %v5576_v19 = vadd.f32 %v1183_v61, %v5046_v54  ;;  %v885_v14 = vsel %vm869_vm9, %v5442_v29, %v3938_v58  ;;  %v919_v47 = vmul.f32 %v5295_v57, %v5087_v20 }
 0x1c1   :  { %v4332_v28 = vpop.eup %4331  ;;  %v938_v23 = vmul.f32 %v930_v8, %v5089_v21  ;;  %4347 = vpow2.f32 %v1035_v13  ;;  %v722_v29 = vsel %vm706_vm8, %v5401_v60, %v3929_v32  ;;  %v1116_v17 = vmul.f32 1.442695, %v5569_v10 }
 0x1c2   :  { %v3939_v59 = vadd.f32 -1.0, %v4332_v28  ;;  %v4334_v50 = vpop.eup %4333  ;;  %v5592_v57 = vadd.f32 %v1184_v5, %v5121_v41  ;;  %4349 = vpow2.f32 %v1114_v0  ;;  %v1195_v60 = vmul.f32 1.442695, %v5576_v19 }
 0x1c3   :  { %v942_v38 = vadd.f32 %v938_v23, %v918_v31  ;;  %567 = vrot.lane.b32.xlu1 %v563_v36, %s4707_s24  ;;  %v4336_v26 = vpop.eup %4335  ;;  %v3933_v39 = vadd.f32 -1.0, %v4334_v50  ;;  %v721_v22 = vsel %vm705_vm11, %v5397_v55, %v3928_v18  ;;  %v1261_v63 = vmul.f32 %v1250_v51, %v5089_v21  ;;  %v5610_v55 = vpop.permute.xlu0 %1233 }
 0x1c4   :  { %v934_v30 = vpop.permute.xlu1 %933  ;;  %v886_v46 = vsel %vm870_vm10, %v5485_v53, %v3939_v59  ;;  %v4338_v53 = vpop.eup %4337  ;;  %v3932_v49 = vadd.f32 -1.0, %v4336_v26  ;;  %v725_v36 = vpack.c.bf16 %v722_v29, %v721_v22  ;;  %v1197_v18 = vmul.f32 1.442695, %v5592_v57 }
 0x1c5   :  { %v5583_v40 = vadd.f32 %v942_v38, %v5144_v52  ;;  %v939_v7 = vmul.f32 %v934_v30, %v5089_v21  ;;  %v888_v48 = vpack.c.bf16 %v886_v46, %v885_v14  ;;  %v4340_v27 = vpop.eup %4339  ;;  %v3937_v61 = vadd.f32 -1.0, %v4338_v53 }
 0x1c6   :  { %v4342_v32 = vpop.eup %4341  ;;  %v802_v31 = vsel %vm786_vm13, %v5480_v25, %v3932_v49  ;;  %v3936_v23 = vadd.f32 -1.0, %v4340_v27  ;;  %vm868_vm14 = vcmp.gt.f32.partialorder %v5494_v12, 0.0  ;;  %vm867_vm15 = vcmp.gt.f32.partialorder %v5503_v45, 0.0 }
 0x1c7   :  { %v956_v44 = vmul.f32 1.442695, %v5583_v40  ;;  %v943_v15 = vadd.f32 %v939_v7, %v919_v47  ;;  %648 = vrot.lane.b32.xlu1 %v644_v56, %s4708_s2  ;;  %893 = vrot.lane.b32.xlu0 %v888_v48, %s4682_s19  ;;  %v803_v56 = vsel %vm787_vm12, %v5453_v4, %v3933_v39  ;;  %v4344_v8 = vpop.eup %4343  ;;  %v1240_v4 = vmul.f32 %v5556_v33, %v5087_v20  ;;  %v5629_v26 = vpop.permute.xlu0 %1257 }
 0x1c8   :  { %v4346_v28 = vpop.eup %4345  ;;  %v806_v59 = vpack.c.bf16 %v803_v56, %v802_v31  ;;  %v884_v38 = vsel %vm868_vm14, %v5494_v12, %v3937_v61  ;;  %v3940_v0 = vadd.f32 -1.0, %v4344_v8  ;;  %v883_v14 = vsel %vm867_vm15, %v5503_v45, %v3936_v23 }
 0x1c9   :  { %4351 = vpow2.f32 %v956_v44  ;;  %v5604_v1 = vadd.f32 %v943_v15, %v5208_v6  ;;  %v1230_v3 = vpop.permute.xlu1 %1229  ;;  %v3941_v46 = vadd.f32 -1.0, %v4342_v32  ;;  %vm948_vm0 = vcmp.gt.f32.partialorder %v5522_v9, 0.0 }
 0x1ca   :  { %v1241_v24 = vmul.f32 %v1230_v3, %v5087_v20  ;;  %4353 = vpow2.f32 %v1116_v17  ;;  %v887_v47 = vpack.c.bf16 %v884_v38, %v883_v14  ;;  %v3944_v51 = vadd.f32 -1.0, %v4346_v28 }
 0x1cb   :  { %v958_v58 = vmul.f32 1.442695, %v5604_v1  ;;  %729 = vrot.lane.b32.xlu1 %v725_v36, %s4709_s14  ;;  %4355 = vpow2.f32 %v1195_v60  ;;  %v4348_v25 = vpop.eup %4347  ;;  %v964_v29 = vsel %vm948_vm0, %v5522_v9, %v3940_v0  ;;  %vm949_vm1 = vcmp.gt.f32.partialorder %v5511_v35, 0.0  ;;  %v1307_v36 = vpop.permute.xlu0 %1306 }
 0x1cc   :  { %v1265_v62 = vadd.f32 %v1261_v63, %v1241_v24  ;;  %v4350_v12 = vpop.eup %4349  ;;  %v3945_v45 = vadd.f32 -1.0, %v4348_v25  ;;  %vm1029_vm2 = vcmp.gt.f32.partialorder %v5530_v43, 0.0  ;;  %v965_v17 = vsel %vm949_vm1, %v5511_v35, %v3941_v46 }
 0x1cd   :  { %4357 = vpow2.f32 %v958_v58  ;;  %v1246_v13 = vpop.permute.xlu1 %1245  ;;  %v968_v15 = vpack.c.bf16 %v965_v17, %v964_v29  ;;  %v1045_v60 = vsel %vm1029_vm2, %v5530_v43, %v3944_v51  ;;  %vm1030_vm3 = vcmp.gt.f32.partialorder %v5553_v42, 0.0 }
 0x1ce   :  { %v5620_v50 = vadd.f32 %v1265_v62, %v5121_v41  ;;  %v1260_v5 = vmul.f32 %v1246_v13, %v5089_v21  ;;  %4359 = vpow2.f32 %v1197_v18  ;;  %v3948_v27 = vadd.f32 -1.0, %v4350_v12 }
 0x1cf   :  { %810 = vrot.lane.b32.xlu1 %v806_v59, %s4710_s12  ;;  %v1046_v35 = vsel %vm1030_vm3, %v5553_v42, %v3945_v45  ;;  %v1000_v43 = vmul.f32 %v5327_v34, %v5087_v20  ;;  %vm1110_vm4 = vcmp.gt.f32.partialorder %v5561_v16, 0.0  ;;  %vm950_vm5 = vcmp.gt.f32.partialorder %v5583_v40, 0.0 }
 0x1d0   :  { %v1278_v33 = vmul.f32 1.442695, %v5620_v50  ;;  %v1264_v30 = vadd.f32 %v1260_v5, %v1240_v4  ;;  %v1049_v56 = vpack.c.bf16 %v1046_v35, %v1045_v60  ;;  %vm951_vm6 = vcmp.gt.f32.partialorder %v5604_v1, 0.0 }
 0x1d1   :  { %v1126_v31 = vsel %vm1110_vm4, %v5561_v16, %v3948_v27  ;;  %vm1111_vm7 = vcmp.gt.f32.partialorder %v5569_v10, 0.0  ;;  %vm1191_vm8 = vcmp.gt.f32.partialorder %v5576_v19, 0.0  ;;  %vm1192_vm9 = vcmp.gt.f32.partialorder %v5592_v57, 0.0 }
 0x1d2   :  { %4361 = vpow2.f32 %v1278_v33  ;;  %v5632_v7 = vadd.f32 %v1264_v30, %v5046_v54  ;;  %v991_v48 = vpop.permute.xlu1 %990  ;;  %vm1273_vm10 = vcmp.gt.f32.partialorder %v5620_v50, 0.0 }
 0x1d3   :  { %v4352_v39 = vpop.eup %4351  ;;  %891 = vrot.lane.b32.xlu1 %v887_v47, %s4682_s19  ;;  %v999_v32 = vmul.f32 %v991_v48, %v5087_v20  ;;  %s4712_s19 = smov 80  }
 0x1d4   :  { %v1276_v53 = vmul.f32 1.442695, %v5632_v7  ;;  %v4354_v44 = vpop.eup %4353  ;;  %v3942_v9 = vadd.f32 -1.0, %v4352_v39  ;;  %vm1272_vm11 = vcmp.gt.f32.partialorder %v5632_v7, 0.0 }
 0x1d5   :  { %v4356_v22 = vpop.eup %4355  ;;  %v3949_v61 = vadd.f32 -1.0, %v4354_v44 }
 0x1d6   :  { %4363 = vpow2.f32 %v1276_v53  ;;  %v1011_v49 = vpop.permute.xlu1 %1010  ;;  %v3952_v58 = vadd.f32 -1.0, %v4356_v22  ;;  %v966_v62 = vsel %vm950_vm5, %v5583_v40, %v3942_v9  ;;  %v1331_v40 = vpop.permute.xlu0 %1330  ;;  %v1321_v53 = vmul.f32 %v1307_v36, %v5087_v20 }
 0x1d7   :  { %v4358_v3 = vpop.eup %4357  ;;  %v1019_v63 = vmul.f32 %v1011_v49, %v5089_v21  ;;  %972 = vrot.lane.b32.xlu1 %v968_v15, %s4711_s3  ;;  %v1127_v59 = vsel %vm1111_vm7, %v5569_v10, %v3949_v61  ;;  %v1342_v14 = vmul.f32 %v1331_v40, %v5089_v21 }
 0x1d8   :  { %v3943_v24 = vadd.f32 -1.0, %v4358_v3  ;;  %v4360_v8 = vpop.eup %4359  ;;  %v1130_v38 = vpack.c.bf16 %v1127_v59, %v1126_v31  ;;  %v1207_v0 = vsel %vm1191_vm8, %v5576_v19, %v3952_v58 }
 0x1d9   :  { %v1023_v18 = vadd.f32 %v1019_v63, %v999_v32  ;;  %v3953_v5 = vadd.f32 -1.0, %v4360_v8 }
 0x1da   :  { %v1015_v28 = vpop.permute.xlu1 %1014  ;;  %v967_v42 = vsel %vm951_vm6, %v5604_v1, %v3943_v24  ;;  %v5677_v22 = vpop.permute.xlu0 %1318 }
 0x1db   :  { %v5655_v34 = vadd.f32 %v1023_v18, %v5144_v52  ;;  %v1020_v23 = vmul.f32 %v1015_v28, %v5089_v21  ;;  %1053 = vrot.lane.b32.xlu1 %v1049_v56, %s4712_s19  ;;  %v969_v4 = vpack.c.bf16 %v967_v42, %v966_v62  ;;  %v1208_v47 = vsel %vm1192_vm9, %v5592_v57, %v3953_v5 }
 0x1dc   :  { %v4362_v13 = vpop.eup %4361  ;;  %v1211_v19 = vpack.c.bf16 %v1208_v47, %v1207_v0  ;;  %v1081_v18 = vmul.f32 %v5407_v11, %v5087_v20 }
 0x1dd   :  { %v1037_v16 = vmul.f32 1.442695, %v5655_v34  ;;  %v1024_v1 = vadd.f32 %v1020_v23, %v1000_v43  ;;  %974 = vrot.lane.b32.xlu0 %v969_v4, %s4711_s3  ;;  %v3957_v25 = vadd.f32 -1.0, %v4362_v13  ;;  %vm1031_vm12 = vcmp.gt.f32.partialorder %v5655_v34, 0.0 }
 0x1de   :  { %v1388_v32 = vpop.permute.xlu0 %1387 }
 0x1df   :  { %4365 = vpow2.f32 %v1037_v16  ;;  %v1028_v33 = vadd.f32 %v1024_v1, %v5208_v6  ;;  %v1311_v30 = vpop.permute.xlu1 %1310  ;;  %1134 = vrot.lane.b32.xlu1 %v1130_v38, %s4713_s27  ;;  %v1289_v45 = vsel %vm1273_vm10, %v5620_v50, %v3957_v25 }
 0x1e0   :  { %v4364_v10 = vpop.eup %4363  ;;  %v1322_v46 = vmul.f32 %v1311_v30, %v5087_v20  ;;  %v1402_v30 = vmul.f32 %v1388_v32, %v5087_v20 }
 0x1e1   :  { %v3956_v51 = vadd.f32 -1.0, %v4364_v10  ;;  %v1039_v12 = vmul.f32 1.442695, %v1028_v33  ;;  %vm1032_vm13 = vcmp.gt.f32.partialorder %v1028_v33, 0.0 }
 0x1e2   :  { %v1346_v48 = vadd.f32 %v1342_v14, %v1322_v46  ;;  %v1412_v31 = vpop.permute.xlu0 %1411 }
 0x1e3   :  { %4367 = vpow2.f32 %v1039_v12  ;;  %v1327_v29 = vpop.permute.xlu1 %1326  ;;  %1215 = vrot.lane.b32.xlu1 %v1211_v19, %s4714_s29  ;;  %v1288_v39 = vsel %vm1272_vm11, %v5632_v7, %v3956_v51  ;;  %v1423_v40 = vmul.f32 %v1412_v31, %v5089_v21 }
 0x1e4   :  { %v1350_v57 = vadd.f32 %v1346_v48, %v5121_v41  ;;  %v1341_v17 = vmul.f32 %v1327_v29, %v5089_v21  ;;  %v1292_v44 = vpack.c.bf16 %v1289_v45, %v1288_v39 }
 0x1e6   :  { %v1359_v15 = vmul.f32 1.442695, %v1350_v57  ;;  %v1345_v60 = vadd.f32 %v1341_v17, %v1321_v53  ;;  %vm1354_vm14 = vcmp.gt.f32.partialorder %v1350_v57, 0.0 }
 0x1e7   :  { %1296 = vrot.lane.b32.xlu1 %v1292_v44, %s4715_s11 }
 0x1e8   :  { %4369 = vpow2.f32 %v1359_v15  ;;  %v1349_v9 = vadd.f32 %v1345_v60, %v5046_v54  ;;  %v1072_v7 = vpop.permute.xlu1 %1071 }
 0x1e9   :  { %v4366_v49 = vpop.eup %4365  ;;  %v1080_v63 = vmul.f32 %v1072_v7, %v5087_v20 }
 0x1ea   :  { %v1357_v50 = vmul.f32 1.442695, %v1349_v9  ;;  %v3946_v27 = vadd.f32 -1.0, %v4366_v49  ;;  %vm1353_vm15 = vcmp.gt.f32.partialorder %v1349_v9, 0.0  ;;  %v4717_v49 = vmov 0.0  }
 0x1eb   :  { %4117 = vmatprep.subr.bf16.mxu0 %v4717_v49  ;;  %4125 = vmatprep.subr.bf16.mxu1 %v4717_v49 }
 0x1ec   :  { %4371 = vpow2.f32 %v1357_v50  ;;  %v1092_v3 = vpop.permute.xlu1 %1091  ;;  %v1047_v61 = vsel %vm1031_vm12, %v5655_v34, %v3946_v27  ;;  %v1162_v50 = vmul.f32 %v5519_v2, %v5087_v20  ;;  %v1263_v2 = vmul.f32 %v5629_v26, %v5089_v21 }
 0x1ed   :  { %v4368_v36 = vpop.eup %4367  ;;  %v1100_v35 = vmul.f32 %v1092_v3, %v5089_v21  ;;  %vm4719_vm12 = vmmov 0  }
 0x1ee   :  { %v3947_v43 = vadd.f32 -1.0, %v4368_v36  ;;  %4121 = vmatprep.mubr.msk.bf16.mxu0 %vm4719_vm12, %v4717_v49  ;;  %4129 = vmatprep.mubr.msk.bf16.mxu1 %vm4719_vm12, %v4717_v49 }
 0x1ef   :  { %v1104_v24 = vadd.f32 %v1100_v35, %v1080_v63 }
 0x1f0   :  { %v1096_v56 = vpop.permute.xlu1 %1095  ;;  %v1048_v8 = vsel %vm1032_vm13, %v1028_v33, %v3947_v43  ;;  %v5707_v43 = vpop.permute.xlu0 %1395 }
 0x1f1   :  { %v1108_v58 = vadd.f32 %v1104_v24, %v5144_v52  ;;  %v1101_v28 = vmul.f32 %v1096_v56, %v5089_v21  ;;  %v1050_v62 = vpack.c.bf16 %v1048_v8, %v1047_v61 }
 0x1f2   :  { %v4370_v42 = vpop.eup %4369 }
 0x1f3   :  { %v1118_v23 = vmul.f32 1.442695, %v1108_v58  ;;  %v1105_v4 = vadd.f32 %v1101_v28, %v1081_v18  ;;  %1055 = vrot.lane.b32.xlu0 %v1050_v62, %s4712_s19  ;;  %v3961_v13 = vadd.f32 -1.0, %v4370_v42  ;;  %vm1112_vm0 = vcmp.gt.f32.partialorder %v1108_v58, 0.0 }
 0x1f4   :  { %v1420_v26 = vpop.permute.xlu0 %1419 }
 0x1f5   :  { %4373 = vpow2.f32 %v1118_v23  ;;  %v1109_v59 = vadd.f32 %v1105_v4, %v5208_v6  ;;  %v1392_v34 = vpop.permute.xlu1 %1391  ;;  %v1370_v33 = vsel %vm1354_vm14, %v1350_v57, %v3961_v13  ;;  %v1242_v4 = vmul.f32 %v5610_v55, %v5087_v20 }
 0x1f6   :  { %v4372_v5 = vpop.eup %4371  ;;  %v1403_v11 = vmul.f32 %v1392_v34, %v5087_v20 }
 0x1f7   :  { %v3960_v16 = vadd.f32 -1.0, %v4372_v5  ;;  %v1120_v1 = vmul.f32 1.442695, %v1109_v59  ;;  %vm1113_vm1 = vcmp.gt.f32.partialorder %v1109_v59, 0.0 }
 0x1f8   :  { %v1427_v38 = vadd.f32 %v1423_v40, %v1403_v11 }
 0x1f9   :  { %4375 = vpow2.f32 %v1120_v1  ;;  %v1408_v0 = vpop.permute.xlu1 %1407  ;;  %v1369_v25 = vsel %vm1353_vm15, %v1349_v9, %v3960_v16  ;;  %vm249_vm15 = vcmask 64512  }
 0x1fa   :  { %v1431_v10 = vadd.f32 %v1427_v38, %v5121_v41  ;;  %v1422_v14 = vmul.f32 %v1408_v0, %v5089_v21  ;;  %v1373_v46 = vpack.c.bf16 %v1370_v33, %v1369_v25  ;;  %v5719_v0 = vpop.permute.xlu0 %150 }
 0x1fc   :  { %v1440_v47 = vmul.f32 1.442695, %v1431_v10  ;;  %v1426_v51 = vadd.f32 %v1422_v14, %v1402_v30  ;;  %1377 = vrot.lane.b32.xlu1 %v1373_v46, %s4716_s30  ;;  %vm1435_vm2 = vcmp.gt.f32.partialorder %v1431_v10, 0.0 }
 0x1fe   :  { %4377 = vpow2.f32 %v1440_v47  ;;  %v1430_v12 = vadd.f32 %v1426_v51, %v5046_v54  ;;  %v1153_v19 = vpop.permute.xlu1 %1152 }
 0x1ff   :  { %v4374_v48 = vpop.eup %4373  ;;  %v1161_v57 = vmul.f32 %v1153_v19, %v5087_v20  ;;  %v1324_v19 = vmul.f32 %v5677_v22, %v5087_v20 }
 0x200   :  { %v1438_v29 = vmul.f32 1.442695, %v1430_v12  ;;  %v3950_v39 = vadd.f32 -1.0, %v4374_v48  ;;  %vm1434_vm3 = vcmp.gt.f32.partialorder %v1430_v12, 0.0  ;;  %v156_v48 = vpop.permute.xlu0 %155 }
 0x202   :  { %4379 = vpow2.f32 %v1438_v29  ;;  %v1173_v45 = vpop.permute.xlu1 %1172  ;;  %v1128_v9 = vsel %vm1112_vm0, %v1108_v58, %v3950_v39  ;;  %vm330_vm0 = vcmask 130112  }
 0x203   :  { %v4376_v53 = vpop.eup %4375  ;;  %v1181_v17 = vmul.f32 %v1173_v45, %v5089_v21 }
 0x204   :  { %v3951_v44 = vadd.f32 -1.0, %v4376_v53 }
 0x205   :  { %v1185_v15 = vadd.f32 %v1181_v17, %v1161_v57 }
 0x206   :  { %v1177_v60 = vpop.permute.xlu1 %1176  ;;  %v1129_v7 = vsel %vm1113_vm1, %v1109_v59, %v3951_v44  ;;  %vm411_vm1 = vcmask 195712  }
 0x207   :  { %v1189_v27 = vadd.f32 %v1185_v15, %v5144_v52  ;;  %v1182_v3 = vmul.f32 %v1177_v60, %v5089_v21  ;;  %v1131_v36 = vpack.c.bf16 %v1129_v7, %v1128_v9  ;;  %v1425_v7 = vmul.f32 %v1420_v26, %v5089_v21 }
 0x208   :  { %v4378_v32 = vpop.eup %4377 }
 0x209   :  { %v1199_v63 = vmul.f32 1.442695, %v1189_v27  ;;  %v1186_v35 = vadd.f32 %v1182_v3, %v1162_v50  ;;  %1136 = vrot.lane.b32.xlu0 %v1131_v36, %s4713_s27  ;;  %v3965_v24 = vadd.f32 -1.0, %v4378_v32  ;;  %vm1193_vm4 = vcmp.gt.f32.partialorder %v1189_v27, 0.0  ;;  %v184_v50 = vpop.permute.xlu0 %183 }
 0x20b   :  { %4381 = vpow2.f32 %v1199_v63  ;;  %v1190_v56 = vadd.f32 %v1186_v35, %v5208_v6  ;;  %v1238_v61 = vpop.permute.xlu1 %1237  ;;  %v1451_v23 = vsel %vm1435_vm2, %v1431_v10, %v3965_v24  ;;  %v1404_v24 = vmul.f32 %v5707_v43, %v5087_v20 }
 0x20c   :  { %v4380_v8 = vpop.eup %4379  ;;  %v1243_v18 = vmul.f32 %v1238_v61, %v5087_v20  ;;  %vm492_vm2 = vcmask 261312  }
 0x20d   :  { %v3964_v58 = vadd.f32 -1.0, %v4380_v8  ;;  %v1201_v28 = vmul.f32 1.442695, %v1190_v56  ;;  %vm1194_vm5 = vcmp.gt.f32.partialorder %v1190_v56, 0.0 }
 0x20e   :  { %v1267_v62 = vadd.f32 %v1263_v2, %v1243_v18 }
 0x20f   :  { %4383 = vpow2.f32 %v1201_v28  ;;  %v1254_v42 = vpop.permute.xlu1 %1253  ;;  %v1450_v31 = vsel %vm1434_vm3, %v1430_v12, %v3964_v58  ;;  %v5736_v58 = vpop.permute.xlu0 %324  ;;  %vm573_vm3 = vcmask 326912  }
 0x210   :  { %v1271_v13 = vadd.f32 %v1267_v62, %v5208_v6  ;;  %v1262_v59 = vmul.f32 %v1254_v42, %v5089_v21  ;;  %v1454_v34 = vpack.c.bf16 %v1451_v23, %v1450_v31  ;;  %v197_v23 = vmul.f32 %v5089_v21, %v184_v50 }
 0x212   :  { %v1282_v5 = vmul.f32 1.442695, %v1271_v13  ;;  %v1266_v40 = vadd.f32 %v1262_v59, %v1242_v4  ;;  %1458 = vrot.lane.b32.xlu1 %v1454_v34, %s4718_s4  ;;  %vm1275_vm6 = vcmp.gt.f32.partialorder %v1271_v13, 0.0 }
 0x213   :  { %v5740_v59 = vpop.permute.xlu0 %486 }
 0x214   :  { %4385 = vpow2.f32 %v1282_v5  ;;  %v1270_v11 = vadd.f32 %v1266_v40, %v5144_v52  ;;  %v1315_v16 = vpop.permute.xlu1 %1314  ;;  %v169_v5 = vmul.f32 %v5087_v20, %v156_v48 }
 0x215   :  { %v4382_v1 = vpop.eup %4381  ;;  %v1323_v30 = vmul.f32 %v1315_v16, %v5087_v20 }
 0x216   :  { %v1280_v38 = vmul.f32 1.442695, %v1270_v11  ;;  %v3954_v55 = vadd.f32 -1.0, %v4382_v1  ;;  %vm1274_vm7 = vcmp.gt.f32.partialorder %v1270_v11, 0.0  ;;  %v201_v16 = vadd.f32 %v197_v23, %v169_v5 }
 0x218   :  { %4387 = vpow2.f32 %v1280_v38  ;;  %v1335_v25 = vpop.permute.xlu1 %1334  ;;  %v1209_v51 = vsel %vm1193_vm4, %v1189_v27, %v3954_v55  ;;  %vm654_vm4 = vcmask 392512  }
 0x219   :  { %v4384_v33 = vpop.eup %4383  ;;  %v1343_v10 = vmul.f32 %v1335_v25, %v5089_v21  ;;  %v168_v25 = vmul.f32 %v5087_v20, %v5719_v0  ;;  %v1469_v0 = vld [vmem:[%s6628_s6] sm:$0xff] }
 0x21a   :  { %v3955_v14 = vadd.f32 -1.0, %v4384_v33  ;;  %v5747_v33 = vpop.permute.xlu0 %326 }
 0x21b   :  { %v1347_v46 = vadd.f32 %v1343_v10, %v1323_v30 }
 0x21c   :  { %v1339_v47 = vpop.permute.xlu1 %1338  ;;  %v1210_v12 = vsel %vm1194_vm5, %v1190_v56, %v3955_v14  ;;  %vm735_vm5 = vcmask 458112  }
 0x21d   :  { %v1351_v29 = vadd.f32 %v1347_v46, %v5144_v52  ;;  %v1344_v39 = vmul.f32 %v1339_v47, %v5089_v21  ;;  %v1212_v45 = vpack.c.bf16 %v1210_v12, %v1209_v51  ;;  %v5753_v12 = vadd.f32 %v5144_v52, %v201_v16 }
 0x21e   :  { %v4386_v53 = vpop.eup %4385 }
 0x21f   :  { %v1361_v57 = vmul.f32 1.442695, %v1351_v29  ;;  %v1348_v17 = vadd.f32 %v1344_v39, %v1324_v19  ;;  %1217 = vrot.lane.b32.xlu0 %v1212_v45, %s4714_s29  ;;  %v3959_v44 = vadd.f32 -1.0, %v4386_v53  ;;  %vm1355_vm8 = vcmp.gt.f32.partialorder %v1351_v29, 0.0  ;;  %v5759_v39 = vpop.permute.xlu0 %407 }
 0x221   :  { %4389 = vpow2.f32 %v1361_v57  ;;  %v1352_v15 = vadd.f32 %v1348_v17, %v5208_v6  ;;  %v1400_v60 = vpop.permute.xlu1 %1399  ;;  %v1291_v35 = vsel %vm1275_vm6, %v1271_v13, %v3959_v44  ;;  %v235_v57 = vmul.f32 1.442695, %v5753_v12  ;;  %v1741_v44 = vld [vmem:[%s6630_s8] sm:$0xff] }
 0x222   :  { %v4388_v9 = vpop.eup %4387  ;;  %v1405_v22 = vmul.f32 %v1400_v60, %v5087_v20  ;;  %vm229_vm6 = vcmp.gt.f32.partialorder %v5753_v12, 0.0 }
 0x223   :  { %v3958_v27 = vadd.f32 -1.0, %v4388_v9  ;;  %v1363_v3 = vmul.f32 1.442695, %v1352_v15  ;;  %vm1356_vm9 = vcmp.gt.f32.partialorder %v1352_v15, 0.0  ;;  %v489_v50 = vpop.permute.xlu0 %488 }
 0x224   :  { %v1429_v36 = vadd.f32 %v1425_v7, %v1405_v22  ;;  %v2210_v22 = vld [vmem:[%s6632_s10 + $0x8] sm:$0xff] }
 0x225   :  { %4391 = vpow2.f32 %v1363_v3  ;;  %v1416_v32 = vpop.permute.xlu1 %1415  ;;  %v1290_v63 = vsel %vm1274_vm7, %v1270_v11, %v3958_v27 }
 0x226   :  { %v1433_v56 = vadd.f32 %v1429_v36, %v5208_v6  ;;  %v1424_v61 = vmul.f32 %v1416_v32, %v5089_v21  ;;  %v1293_v8 = vpack.c.bf16 %v1291_v35, %v1290_v63  ;;  %v2209_v63 = vld [vmem:[%s6632_s10] sm:$0xff] }
 0x228   :  { %v1444_v2 = vmul.f32 1.442695, %v1433_v56  ;;  %v1428_v18 = vadd.f32 %v1424_v61, %v1404_v24  ;;  %1298 = vrot.lane.b32.xlu1 %v1293_v8, %s4715_s11  ;;  %vm1437_vm10 = vcmp.gt.f32.partialorder %v1433_v56, 0.0  ;;  %v4056_v8 = vld [vmem:[#allocation6] ss:$0 sm:$0xff] }
 0x22a   :  { %4393 = vpow2.f32 %v1444_v2  ;;  %v1432_v28 = vadd.f32 %v1428_v18, %v5144_v52  ;;  %v146_v62 = vpop.permute.xlu1 %145 }
 0x22b   :  { %v4390_v42 = vpop.eup %4389  ;;  %v167_v34 = vmul.f32 %v5087_v20, %v146_v62 }
 0x22c   :  { %v1442_v31 = vmul.f32 1.442695, %v1432_v28  ;;  %v3962_v43 = vadd.f32 -1.0, %v4390_v42  ;;  %vm1436_vm11 = vcmp.gt.f32.partialorder %v1432_v28, 0.0 }
 0x22e   :  { %4395 = vpow2.f32 %v1442_v31  ;;  %v174_v4 = vpop.permute.xlu1 %173  ;;  %v1371_v38 = vsel %vm1355_vm8, %v1351_v29, %v3962_v43  ;;  %vm816_vm8 = vcmask 523712  }
 0x22f   :  { %v4392_v13 = vpop.eup %4391  ;;  %v195_v26 = vmul.f32 %v5089_v21, %v174_v4 }
 0x230   :  { %v3963_v40 = vadd.f32 -1.0, %v4392_v13 }
 0x231   :  { %v199_v11 = vadd.f32 %v195_v26, %v167_v34 }
 0x232   :  { %v179_v1 = vpop.permute.xlu1 %178  ;;  %v1372_v55 = vsel %vm1356_vm9, %v1352_v15, %v3963_v40  ;;  %vm897_vm9 = vcmask 589312  }
 0x233   :  { %v223_v30 = vadd.f32 %v5046_v54, %v199_v11  ;;  %v196_v10 = vmul.f32 %v5089_v21, %v179_v1  ;;  %v1374_v14 = vpack.c.bf16 %v1372_v55, %v1371_v38 }
 0x234   :  { %v4394_v46 = vpop.eup %4393 }
 0x235   :  { %v231_v47 = vmul.f32 1.442695, %v223_v30  ;;  %v200_v51 = vadd.f32 %v196_v10, %v168_v25  ;;  %1379 = vrot.lane.b32.xlu0 %v1374_v14, %s4716_s30  ;;  %v3967_v48 = vadd.f32 -1.0, %v4394_v46  ;;  %vm227_vm13 = vcmp.gt.f32.partialorder %v223_v30, 0.0 }
 0x236   :  { %v161_v19 = vpop.permute.xlu1 %160 }
 0x237   :  { %4397 = vpow2.f32 %v231_v47  ;;  %v224_v54 = vadd.f32 %v5121_v41, %v200_v51  ;;  %v170_v52 = vmul.f32 %v5087_v20, %v161_v19  ;;  %v1453_v60 = vsel %vm1437_vm10, %v1433_v56, %v3967_v48  ;;  %v570_v56 = vpop.permute.xlu0 %569 }
 0x238   :  { %v4396_v29 = vpop.eup %4395  ;;  %vm978_vm10 = vcmask 654912  }
 0x239   :  { %v3966_v45 = vadd.f32 -1.0, %v4396_v29  ;;  %v233_v53 = vmul.f32 1.442695, %v224_v54  ;;  %1475 = vperm.xlu0 %4270, %v1469_v0   ;;  %vm228_vm14 = vcmp.gt.f32.partialorder %v224_v54, 0.0  ;;  %v4272_v29 = vld [vmem:[#allocation9 + $0x8] sm:$0xff]  }
 0x23a   :  { %v189_v17 = vpop.permute.xlu1 %188 }
 0x23b   :  { %4399 = vpow2.f32 %v233_v53  ;;  %v198_v41 = vmul.f32 %v5089_v21, %v189_v17  ;;  %v1452_v15 = vsel %vm1436_vm11, %v1432_v28, %v3966_v45  ;;  %v1470_v21 = vld [vmem:[%s6628_s6 + $0x8] sm:$0xff]  ;;  %v651_v31 = vpop.permute.xlu0 %650  ;;  %vm1059_vm11 = vcmask 720512  }
 0x23c   :  { %v1455_v9 = vpack.c.bf16 %v1453_v60, %v1452_v15  ;;  %4401 = vpow2.f32 %v235_v57  ;;  %v4274_v45 = vld [vmem:[#allocation9 + $0x18] sm:$0xff]  }
 0x23d   :  { %v202_v7 = vadd.f32 %v198_v41, %v170_v52  ;;  %1745 = vperm.xlu0 %4270, %v1741_v44  }
 0x23e   :  { %1460 = vrot.lane.b32.xlu1 %v1455_v9, %s4718_s4  ;;  %v406_v20 = vpop.permute.xlu1 %405 }
 0x23f   :  { %v226_v27 = vadd.f32 %v5208_v6, %v202_v7  ;;  %v732_v34 = vpop.permute.xlu0 %731 }
 0x241   :  { %v4398_v3 = vpop.eup %4397  ;;  %v237_v36 = vmul.f32 1.442695, %v226_v27  ;;  %2218 = vperm.xlu0 %4270, %v2210_v22   ;;  %vm230_vm7 = vcmp.gt.f32.partialorder %v226_v27, 0.0 }
 0x242   :  { %1480 = vperm.xlu1 %4269, %v1470_v21   ;;  %v568_v32 = vpop.permute.xlu1 %567  ;;  %v3904_v35 = vadd.f32 -1.0, %v4398_v3 }
 0x243   :  { %4403 = vpow2.f32 %v237_v36  ;;  %v813_v40 = vpop.permute.xlu0 %812 }
 0x244   :  { %v243_v2 = vsel %vm227_vm13, %v223_v30, %v3904_v35  ;;  %vm1140_vm13 = vcmask 786112  }
 0x245   :  { %v4400_v24 = vpop.eup %4399 }
 0x246   :  { %v3905_v61 = vadd.f32 -1.0, %v4400_v24  ;;  %2213 = vperm.xlu1 %4269, %v2209_v63   ;;  %v649_v6 = vpop.permute.xlu1 %648  ;;  %v4402_v28 = vpop.eup %4401 }
 0x247   :  { %v3906_v23 = vadd.f32 -1.0, %v4402_v28  ;;  %v894_v16 = vpop.permute.xlu0 %893 }
 0x248   :  { %v244_v18 = vsel %vm228_vm14, %v224_v54, %v3905_v61  ;;  %vm1221_vm14 = vcmask 851712   ;;  %v4271_v54 = vld [vmem:[#allocation9] sm:$0xff]  }
 0x249   :  { %v247_v62 = vpack.c.bf16 %v244_v18, %v243_v2 }
 0x24a   :  { %3076 = vperm.xlu1 %4269, %v4056_v8   ;;  %v730_v42 = vpop.permute.xlu1 %729 }
 0x24b   :  { %250 = vst.msk [vmem:[#allocation2] sm:$0xff] %vm249_vm15, %v247_v62 }
 0x24c   :  { %331 = vst.msk [vmem:[#allocation2] sm:$0xff] %vm330_vm0, %v5736_v58  ;;  %v245_v58 = vsel %vm229_vm6, %v5753_v12, %v3906_v23 }
 0x24d   :  { %v4404_v43 = vpop.eup %4403  ;;  %412 = vst.msk [vmem:[#allocation2] sm:$0xff] %vm411_vm1, %v406_v20 }
 0x24e   :  { %v3907_v4 = vadd.f32 -1.0, %v4404_v43  ;;  %493 = vst.msk [vmem:[#allocation2] sm:$0xff] %vm492_vm2, %v5740_v59  ;;  %v811_v13 = vpop.permute.xlu1 %810 }
 0x24f   :  { %574 = vst.msk [vmem:[#allocation2] sm:$0xff] %vm573_vm3, %v568_v32  ;;  %v975_v38 = vpop.permute.xlu0 %974 }
 0x250   :  { %v246_v26 = vsel %vm230_vm7, %v226_v27, %v3907_v4  ;;  %655 = vst.msk [vmem:[#allocation2] sm:$0xff] %vm654_vm4, %v649_v6  ;;  %vm1748_vm7 = vcmask 130048  }
 0x251   :  { %v248_v5 = vpack.c.bf16 %v246_v26, %v245_v58  ;;  %736 = vst.msk [vmem:[#allocation2] sm:$0xff] %vm735_vm5, %v730_v42 }
 0x252   :  { %817 = vst.msk [vmem:[#allocation2] sm:$0xff] %vm816_vm8, %v811_v13  ;;  %v892_v59 = vpop.permute.xlu1 %891 }
 0x253   :  { %251 = vst.msk [vmem:[#allocation2 + $0x8] sm:$0xff] %vm249_vm15, %v248_v5 }
 0x254   :  { %898 = vst.msk [vmem:[#allocation2] sm:$0xff] %vm897_vm9, %v892_v59 }
 0x255   :  { %332 = vst.msk [vmem:[#allocation2 + $0x8] sm:$0xff] %vm330_vm0, %v5747_v33  ;;  %vm1302_vm0 = vcmask 917312  }
 0x256   :  { %413 = vst.msk [vmem:[#allocation2 + $0x8] sm:$0xff] %vm411_vm1, %v5759_v39  ;;  %v973_v11 = vpop.permute.xlu1 %972  ;;  %vm1383_vm1 = vcmask 982912   ;;  %v4273_v39 = vld [vmem:[#allocation9 + $0x10] sm:$0xff]  }
 0x257   :  { %494 = vst.msk [vmem:[#allocation2 + $0x8] sm:$0xff] %vm492_vm2, %v489_v50  ;;  %vm1464_vm2 = vcmask 1048512  }
 0x258   :  { %575 = vst.msk [vmem:[#allocation2 + $0x8] sm:$0xff] %vm573_vm3, %v570_v56  ;;  %vm1488_vm3 = vcmask 261120  }
 0x259   :  { %979 = vst.msk [vmem:[#allocation2] sm:$0xff] %vm978_vm10, %v973_v11 }
 0x25a   :  { %656 = vst.msk [vmem:[#allocation2 + $0x8] sm:$0xff] %vm654_vm4, %v651_v31  ;;  %v1054_v1 = vpop.permute.xlu1 %1053 }
 0x25b   :  { %737 = vst.msk [vmem:[#allocation2 + $0x8] sm:$0xff] %vm735_vm5, %v732_v34 }
 0x25c   :  { %818 = vst.msk [vmem:[#allocation2 + $0x8] sm:$0xff] %vm816_vm8, %v813_v40 }
 0x25d   :  { %899 = vst.msk [vmem:[#allocation2 + $0x8] sm:$0xff] %vm897_vm9, %v894_v16 }
 0x25e   :  { %1060 = vst.msk [vmem:[#allocation2] sm:$0xff] %vm1059_vm11, %v1054_v1  ;;  %v1135_v55 = vpop.permute.xlu1 %1134 }
 0x25f   :  { %980 = vst.msk [vmem:[#allocation2 + $0x8] sm:$0xff] %vm978_vm10, %v975_v38 }
 0x260   :  { %1141 = vst.msk [vmem:[#allocation2] sm:$0xff] %vm1140_vm13, %v1135_v55 }
 0x262   :  { %v1216_v25 = vpop.permute.xlu1 %1215 }
 0x263   :  { %1222 = vst.msk [vmem:[#allocation2] sm:$0xff] %vm1221_vm14, %v1216_v25 }
 0x265   :  { %v1056_v33 = vpop.permute.xlu0 %1055 }
 0x266   :  { %1061 = vst.msk [vmem:[#allocation2 + $0x8] sm:$0xff] %vm1059_vm11, %v1056_v33  ;;  %v1297_v30 = vpop.permute.xlu1 %1296 }
 0x267   :  { %1303 = vst.msk [vmem:[#allocation2] sm:$0xff] %vm1302_vm0, %v1297_v30 }
 0x26e   :  { %v1378_v10 = vpop.permute.xlu1 %1377 }
 0x26f   :  { %1384 = vst.msk [vmem:[#allocation2] sm:$0xff] %vm1383_vm1, %v1378_v10 }
 0x27b   :  { %v1137_v14 = vpop.permute.xlu0 %1136 }
 0x27c   :  { %1142 = vst.msk [vmem:[#allocation2 + $0x8] sm:$0xff] %vm1140_vm13, %v1137_v14 }
 0x284   :  { %v1459_v46 = vpop.permute.xlu1 %1458 }
 0x285   :  { %1465 = vst.msk [vmem:[#allocation2] sm:$0xff] %vm1464_vm2, %v1459_v46 }
 0x28c   :  { %v1467_v47 = vld [vmem:[#allocation2] sm:$0xff] }
 0x28d   :  { %4118 = vmatpush3.bf16.msra.mxu0 %v1467_v47  ;;  %4126 = vmatpush3.bf16.msra.mxu1 %v1467_v47 }
 0x28e   :  { %4119 = vmatprep.subr.bf16.mxu0 %v4717_v49  ;;  %4127 = vmatprep.subr.bf16.mxu1 %v4717_v49 }
 0x291   :  { %v1218_v51 = vpop.permute.xlu0 %1217 }
 0x292   :  { %1223 = vst.msk [vmem:[#allocation2 + $0x8] sm:$0xff] %vm1221_vm14, %v1218_v51  ;;  %v1742_v51 = vld [vmem:[#allocation11] sm:$0xf] }
 0x29a   :  { %v1299_v12 = vpop.permute.xlu1 %1298 }
 0x29b   :  { %1304 = vst.msk [vmem:[#allocation2 + $0x8] sm:$0xff] %vm1302_vm0, %v1299_v12 }
 0x2a7   :  { %v1380_v19 = vpop.permute.xlu0 %1379 }
 0x2a8   :  { %1385 = vst.msk [vmem:[#allocation2 + $0x8] sm:$0xff] %vm1383_vm1, %v1380_v19 }
 0x2b0   :  { %v1461_v0 = vpop.permute.xlu1 %1460 }
 0x2b1   :  { %1466 = vst.msk [vmem:[#allocation2 + $0x8] sm:$0xff] %vm1464_vm2, %v1461_v0 }
 0x2b8   :  { %v1468_v48 = vld [vmem:[#allocation2 + $0x8] sm:$0xff]  ;;  %v1476_v53 = vpop.permute.xlu0 %1475 }
 0x2b9   :  { %4120 = vmatpush3.bf16.msra.mxu0 %v1468_v48  ;;  %4128 = vmatpush3.bf16.msra.mxu1 %v1468_v48 }
 0x2ba   :  { %4133 = vmatprep.subr.bf16.mxu0 %v4717_v49  ;;  %4141 = vmatprep.subr.bf16.mxu1 %v4717_v49 }
 0x2bc   :  { %4122 = vmatmul.mubr.msk.bf16.vlgmr.msra.gmra.mrb[0].mxu0 %vm1488_vm3, %v4271_v54  ;;  %4130 = vmatmul.mubr.msk.bf16.vlgmr.msra.gmra.mrb[0].mxu1 %vm1488_vm3, %v4272_v29 }
 0x2bd   :  { %4134 = vmatpush3.bf16.msra.mxu0 %v1467_v47  ;;  %4142 = vmatpush3.bf16.msra.mxu1 %v1467_v47 }
 0x2be   :  { %4135 = vmatprep.subr.bf16.mxu0 %v4717_v49  ;;  %4143 = vmatprep.subr.bf16.mxu1 %v4717_v49 }
 0x2bf   :  { %4137 = vmatprep.mubr.msk.bf16.mxu0 %vm4719_vm12, %v4717_v49  ;;  %4145 = vmatprep.mubr.msk.bf16.mxu1 %vm4719_vm12, %v4717_v49 }
 0x2c1   :  { %4136 = vmatpush3.bf16.msra.mxu0 %v1468_v48  ;;  %4144 = vmatpush3.bf16.msra.mxu1 %v1468_v48  ;;  %v1481_v7 = vpop.permute.xlu1 %1480 }
 0x2c4   :  { %4138 = vmatmul.mubr.msk.bf16.vlgmr.msra.gmra.mrb[4].mxu0 %vm1488_vm3, %v4273_v39  ;;  %4146 = vmatmul.mubr.msk.bf16.vlgmr.msra.gmra.mrb[4].mxu1 %vm1488_vm3, %v4274_v45 }
 0x2c5   :  { %1784 = vmatprep.mubr.bf16.mxu0 %v6648_v37  ;;  %1825 = vmatprep.mubr.bf16.mxu1 %v6648_v37 }
 0x38f   :  { %v1526_v57 = vpop.f32.mrb[0].mxu0  ;;  %v1590_v52 = vpop.f32.mrb[0].mxu1 }
 0x390   :  { %v1527_v17 = vadd.f32 %v1526_v57, %v1476_v53  ;;  %v1591_v44 = vadd.f32 %v1590_v52, %v1476_v53  ;;  %v4123_v41 = vpop.f32.mrb[1].mxu0  ;;  %v4131_v15 = vpop.f32.mrb[1].mxu1  ;;  %v1859_v57 = vld [vmem:[#allocation11 + $0x4] sm:$0xf]  ;;  %v1970_v52 = vld [vmem:[#allocation11 + $0x8] sm:$0xf] }
 0x391   :  { %v1529_v60 = vpop.f32.mrb[2].mxu0  ;;  %v1593_v9 = vpop.f32.mrb[2].mxu1 }
 0x392   :  { %v1535_v20 = vmul.f32 1.442695, %v1527_v17  ;;  %v1599_v22 = vmul.f32 1.442695, %v1591_v44  ;;  %v1530_v50 = vadd.f32 %v1529_v60, %v1481_v7  ;;  %v1594_v27 = vadd.f32 %v1593_v9, %v1481_v7  ;;  %v4124_v21 = vpop.f32.mrb[3].mxu0  ;;  %v4132_v3 = vpop.f32.mrb[3].mxu1 }
 0x393   :  { %vm1533_vm12 = vcmp.gt.f32.partialorder %v1527_v17, 0.0  ;;  %vm1597_vm5 = vcmp.gt.f32.partialorder %v1591_v44, 0.0 }
 0x394   :  { %4405 = vpow2.f32 %v1535_v20  ;;  %v1537_v36 = vmul.f32 1.442695, %v1530_v50  ;;  %v1601_v32 = vmul.f32 1.442695, %v1594_v27  ;;  %vm1534_vm4 = vcmp.gt.f32.partialorder %v1530_v50, 0.0 }
 0x395   :  { %4407 = vpow2.f32 %v1599_v22  ;;  %vm1598_vm6 = vcmp.gt.f32.partialorder %v1594_v27, 0.0 }
 0x396   :  { %4409 = vpow2.f32 %v1537_v36 }
 0x397   :  { %v1654_v63 = vpop.f32.mrb[4].mxu0  ;;  %v1718_v35 = vpop.f32.mrb[4].mxu1  ;;  %4411 = vpow2.f32 %v1601_v32 }
 0x398   :  { %v1655_v24 = vadd.f32 %v1654_v63, %v1476_v53  ;;  %v1719_v56 = vadd.f32 %v1718_v35, %v1476_v53  ;;  %v4139_v61 = vpop.f32.mrb[5].mxu0  ;;  %v4147_v6 = vpop.f32.mrb[5].mxu1 }
 0x399   :  { %v1657_v8 = vpop.f32.mrb[6].mxu0  ;;  %v1721_v2 = vpop.f32.mrb[6].mxu1 }
 0x39a   :  { %v1663_v18 = vmul.f32 1.442695, %v1655_v24  ;;  %v1727_v28 = vmul.f32 1.442695, %v1719_v56  ;;  %v1658_v62 = vadd.f32 %v1657_v8, %v1481_v7  ;;  %v1722_v42 = vadd.f32 %v1721_v2, %v1481_v7  ;;  %v4140_v31 = vpop.f32.mrb[7].mxu0  ;;  %v4148_v23 = vpop.f32.mrb[7].mxu1 }
 0x39b   :  { %vm1661_vm8 = vcmp.gt.f32.partialorder %v1655_v24, 0.0  ;;  %vm1725_vm10 = vcmp.gt.f32.partialorder %v1719_v56, 0.0 }
 0x39c   :  { %4413 = vpow2.f32 %v1663_v18  ;;  %v1665_v43 = vmul.f32 1.442695, %v1658_v62  ;;  %v1729_v13 = vmul.f32 1.442695, %v1722_v42  ;;  %vm1662_vm9 = vcmp.gt.f32.partialorder %v1658_v62, 0.0 }
 0x39d   :  { %4415 = vpow2.f32 %v1727_v28  ;;  %vm1726_vm11 = vcmp.gt.f32.partialorder %v1722_v42, 0.0 }
 0x39e   :  { %v4406_v4 = vpop.eup %4405  ;;  %4417 = vpow2.f32 %v1665_v43 }
 0x39f   :  { %v4408_v34 = vpop.eup %4407  ;;  %v3970_v58 = vadd.f32 -1.0, %v4406_v4  ;;  %4419 = vpow2.f32 %v1729_v13 }
 0x3a0   :  { %v4410_v26 = vpop.eup %4409  ;;  %v3974_v5 = vadd.f32 -1.0, %v4408_v34 }
 0x3a1   :  { %v4412_v59 = vpop.eup %4411  ;;  %v3971_v40 = vadd.f32 -1.0, %v4410_v26  ;;  %v1541_v16 = vsel %vm1533_vm12, %v1527_v17, %v3970_v58  ;;  %v2081_v17 = vld [vmem:[#allocation11 + $0xc] sm:$0xf] }
 0x3a2   :  { %v3975_v11 = vadd.f32 -1.0, %v4412_v59  ;;  %v1605_v38 = vsel %vm1597_vm5, %v1591_v44, %v3974_v5  ;;  %v5846_v44 = vpop.permute.xlu0 %1745 }
 0x3a3   :  { %v1542_v1 = vsel %vm1534_vm4, %v1530_v50, %v3971_v40 }
 0x3a4   :  { %v1543_v55 = vpack.c.bf16 %v1542_v1, %v1541_v16  ;;  %v1606_v25 = vsel %vm1598_vm6, %v1594_v27, %v3975_v11  ;;  %v5881_v16 = vld [vmem:[%s6631_s9] sm:$0xff] }
 0x3a5   :  { %v1607_v30 = vpack.c.bf16 %v1606_v25, %v1605_v38 }
 0x3a6   :  { %v4414_v33 = vpop.eup %4413 }
 0x3a7   :  { %v4416_v10 = vpop.eup %4415  ;;  %v3978_v14 = vadd.f32 -1.0, %v4414_v33  ;;  %1752 = vmatprep.subr.bf16.mxu0 %v1607_v30 }
 0x3a8   :  { %v4418_v46 = vpop.eup %4417  ;;  %v3982_v47 = vadd.f32 -1.0, %v4416_v10  ;;  %1753 = vmatpush1.bf16.msra.mxu0 %v1543_v55 }
 0x3a9   :  { %v4420_v12 = vpop.eup %4419  ;;  %v3979_v19 = vadd.f32 -1.0, %v4418_v46  ;;  %1863 = vmatprep.subr.bf16.mxu0 %v1607_v30  ;;  %v1669_v48 = vsel %vm1661_vm8, %v1655_v24, %v3978_v14 }
 0x3aa   :  { %v3983_v0 = vadd.f32 -1.0, %v4420_v12  ;;  %v1733_v29 = vsel %vm1725_vm10, %v1719_v56, %v3982_v47 }
 0x3ab   :  { %v1670_v54 = vsel %vm1662_vm9, %v1658_v62, %v3979_v19  ;;  %3984 = vmatmul.mubr.msk.bf16.vlgmr.msra.gmra.mrb[8].mxu0 %vm1748_vm7, %v1742_v51  ;;  %v5893_v19 = vld [vmem:[%s6631_s9 + $0x8] sm:$0xff] }
 0x3ac   :  { %v1671_v39 = vpack.c.bf16 %v1670_v54, %v1669_v48  ;;  %v1734_v45 = vsel %vm1726_vm11, %v1722_v42, %v3983_v0  ;;  %1864 = vmatpush1.bf16.msra.mxu0 %v1543_v55  ;;  %1895 = vmatprep.mubr.bf16.mxu0 %v6648_v37 }
 0x3ad   :  { %v1735_v53 = vpack.c.bf16 %v1734_v45, %v1733_v29  ;;  %1974 = vmatprep.subr.bf16.mxu0 %v1607_v30 }
 0x3af   :  { %1793 = vmatprep.subr.bf16.mxu1 %v1735_v53 }
 0x3b0   :  { %1794 = vmatpush1.bf16.msra.mxu1 %v1671_v39 }
 0x3b1   :  { %1904 = vmatprep.subr.bf16.mxu1 %v1735_v53 }
 0x3b3   :  { %3985 = vmatmul.mubr.msk.bf16.vlgmr.msra.gmra.mrb[8].mxu1 %vm1748_vm7, %v1742_v51  ;;  %3990 = vmatmul.mubr.msk.bf16.vlgmr.msra.gmra.mrb[12].mxu0 %vm1748_vm7, %v1859_v57 }
 0x3b4   :  { %1975 = vmatpush1.bf16.msra.mxu0 %v1543_v55  ;;  %1905 = vmatpush1.bf16.msra.mxu1 %v1671_v39 }
 0x3b5   :  { %2085 = vmatprep.subr.bf16.mxu0 %v1607_v30  ;;  %2015 = vmatprep.subr.bf16.mxu1 %v1735_v53 }
 0x3b6   :  { %1936 = vmatprep.mubr.bf16.mxu1 %v6648_v37  ;;  %2006 = vmatprep.mubr.bf16.mxu0 %v6648_v37 }
 0x3bb   :  { %3991 = vmatmul.mubr.msk.bf16.vlgmr.msra.gmra.mrb[12].mxu1 %vm1748_vm7, %v1859_v57  ;;  %3996 = vmatmul.mubr.msk.bf16.vlgmr.msra.gmra.mrb[16].mxu0 %vm1748_vm7, %v1970_v52 }
 0x3bc   :  { %2016 = vmatpush1.bf16.msra.mxu1 %v1671_v39  ;;  %2086 = vmatpush1.bf16.msra.mxu0 %v1543_v55 }
 0x3bd   :  { %2126 = vmatprep.subr.bf16.mxu1 %v1735_v53  ;;  %2047 = vmatprep.mubr.bf16.mxu1 %v6648_v37 }
 0x3be   :  { %2117 = vmatprep.mubr.bf16.mxu0 %v6648_v37 }
 0x3c3   :  { %3997 = vmatmul.mubr.msk.bf16.vlgmr.msra.gmra.mrb[16].mxu1 %vm1748_vm7, %v1970_v52  ;;  %4002 = vmatmul.mubr.msk.bf16.vlgmr.msra.gmra.mrb[20].mxu0 %vm1748_vm7, %v2081_v17 }
 0x3c4   :  { %2127 = vmatpush1.bf16.msra.mxu1 %v1671_v39  ;;  %2158 = vmatprep.mubr.bf16.mxu1 %v6648_v37 }
 0x3c5   :  { %2291 = vmatprep.mubr.f32.mxu0 %v4717_v49 }
 0x3cb   :  { %4003 = vmatmul.mubr.msk.bf16.vlgmr.msra.gmra.mrb[20].mxu1 %vm1748_vm7, %v2081_v17 }
 0x3cc   :  { %2368 = vmatprep.mubr.f32.mxu1 %v4717_v49 }
 0x47e   :  { %v1786_v41 = vpop.f32.mrb[8].mxu0 }
 0x47f   :  { %v1787_v15 = vadd.f32 %v1786_v41, %v5846_v44  ;;  %v1788_v60 = vpop.f32.mrb[9].mxu0 }
 0x480   :  { %v1789_v9 = vadd.f32 %v1788_v60, %v5846_v44  ;;  %v1790_v7 = vpop.f32.mrb[10].mxu0 }
 0x481   :  { %v1838_v20 = vmul.f32 1.442695, %v1787_v15  ;;  %v1791_v22 = vpop.f32.mrb[11].mxu0  ;;  %vm1834_vm13 = vcmp.gt.f32.partialorder %v1787_v15, 0.0 }
 0x482   :  { %v1840_v50 = vmul.f32 1.442695, %v1789_v9  ;;  %vm1835_vm14 = vcmp.gt.f32.partialorder %v1789_v9, 0.0 }
 0x483   :  { %4421 = vpow2.f32 %v1838_v20 }
 0x484   :  { %4423 = vpow2.f32 %v1840_v50 }
 0x486   :  { %v1827_v37 = vpop.f32.mrb[8].mxu1  ;;  %v1897_v27 = vpop.f32.mrb[12].mxu0 }
 0x487   :  { %v5851_v21 = vadd.f32 %v1827_v37, %v5846_v44  ;;  %v5854_v3 = vadd.f32 %v1897_v27, %v5846_v44  ;;  %v1829_v36 = vpop.f32.mrb[9].mxu1  ;;  %v1899_v32 = vpop.f32.mrb[13].mxu0 }
 0x488   :  { %v5857_v63 = vadd.f32 %v1829_v36, %v5846_v44  ;;  %v5860_v35 = vadd.f32 %v1899_v32, %v5846_v44  ;;  %v1831_v24 = vpop.f32.mrb[10].mxu1  ;;  %v1901_v56 = vpop.f32.mrb[14].mxu0 }
 0x489   :  { %v1842_v61 = vmul.f32 1.442695, %v5851_v21  ;;  %v1949_v6 = vmul.f32 1.442695, %v5854_v3  ;;  %v1832_v18 = vpop.f32.mrb[11].mxu1  ;;  %v1902_v28 = vpop.f32.mrb[15].mxu0 }
 0x48a   :  { %v1844_v8 = vmul.f32 1.442695, %v5857_v63  ;;  %v1951_v2 = vmul.f32 1.442695, %v5860_v35  ;;  %vm1836_vm0 = vcmp.gt.f32.partialorder %v5851_v21, 0.0  ;;  %vm1837_vm1 = vcmp.gt.f32.partialorder %v5857_v63, 0.0 }
 0x48b   :  { %4425 = vpow2.f32 %v1842_v61  ;;  %vm1946_vm2 = vcmp.gt.f32.partialorder %v5860_v35, 0.0  ;;  %vm1945_vm3 = vcmp.gt.f32.partialorder %v5854_v3, 0.0 }
 0x48c   :  { %4427 = vpow2.f32 %v1949_v6 }
 0x48d   :  { %v4422_v62 = vpop.eup %4421  ;;  %4429 = vpow2.f32 %v1844_v8 }
 0x48e   :  { %v4424_v42 = vpop.eup %4423  ;;  %4431 = vpow2.f32 %v1951_v2  ;;  %v1938_v31 = vpop.f32.mrb[12].mxu1  ;;  %v3986_v26 = vadd.f32 -1.0, %v4422_v62 }
 0x48f   :  { %v2008_v23 = vpop.f32.mrb[16].mxu0  ;;  %v5867_v43 = vadd.f32 %v1938_v31, %v5846_v44  ;;  %v1940_v13 = vpop.f32.mrb[13].mxu1  ;;  %v3987_v58 = vadd.f32 -1.0, %v4424_v42 }
 0x490   :  { %v5870_v4 = vadd.f32 %v2008_v23, %v5846_v44  ;;  %v2010_v34 = vpop.f32.mrb[17].mxu0  ;;  %v5873_v5 = vadd.f32 %v1940_v13, %v5846_v44  ;;  %v1942_v40 = vpop.f32.mrb[14].mxu1  ;;  %v1850_v14 = vsel %vm1834_vm13, %v1787_v15, %v3986_v26 }
 0x491   :  { %v5876_v59 = vadd.f32 %v2010_v34, %v5846_v44  ;;  %v2012_v11 = vpop.f32.mrb[18].mxu0  ;;  %v1953_v1 = vmul.f32 1.442695, %v5867_v43  ;;  %v1943_v33 = vpop.f32.mrb[15].mxu1  ;;  %v1851_v30 = vsel %vm1835_vm14, %v1789_v9, %v3987_v58  ;;  %vm1947_vm4 = vcmp.gt.f32.partialorder %v5867_v43, 0.0 }
 0x492   :  { %v2060_v38 = vmul.f32 1.442695, %v5870_v4  ;;  %v1955_v55 = vmul.f32 1.442695, %v5873_v5  ;;  %v2013_v10 = vpop.f32.mrb[19].mxu0  ;;  %2227 = vmatprep.subr.mxu0 %v1851_v30  ;;  %vm1948_vm12 = vcmp.gt.f32.partialorder %v5873_v5, 0.0 }
 0x493   :  { %v2062_v25 = vmul.f32 1.442695, %v5876_v59  ;;  %4433 = vpow2.f32 %v1953_v1  ;;  %2228 = vmatpush1.msra.mxu0 %v1850_v14  ;;  %vm2057_vm5 = vcmp.gt.f32.partialorder %v5876_v59, 0.0  ;;  %vm2056_vm6 = vcmp.gt.f32.partialorder %v5870_v4, 0.0 }
 0x494   :  { %4435 = vpow2.f32 %v2060_v38  ;;  %4008 = vmatmul.mubr.msk.f32.vlgmr.msra.gmra.mrb[24].mxu0 %vm249_vm15, %v5881_v16 }
 0x495   :  { %v4426_v46 = vpop.eup %4425  ;;  %4437 = vpow2.f32 %v1955_v55  ;;  %2297 = vmatprep.mubr.f32.mxu0 %v4717_v49 }
 0x496   :  { %v4428_v47 = vpop.eup %4427  ;;  %4439 = vpow2.f32 %v2062_v25  ;;  %v2049_v51 = vpop.f32.mrb[16].mxu1  ;;  %v3988_v45 = vadd.f32 -1.0, %v4426_v46 }
 0x497   :  { %v2119_v12 = vpop.f32.mrb[20].mxu0  ;;  %v4430_v0 = vpop.eup %4429  ;;  %v5896_v48 = vadd.f32 %v2049_v51, %v5846_v44  ;;  %v3992_v7 = vadd.f32 -1.0, %v4428_v47 }
 0x498   :  { %v5899_v54 = vadd.f32 %v2119_v12, %v5846_v44  ;;  %v2051_v29 = vpop.f32.mrb[17].mxu1  ;;  %v2121_v39 = vpop.f32.mrb[21].mxu0  ;;  %v3989_v41 = vadd.f32 -1.0, %v4430_v0  ;;  %4009 = vmatmul.mubr.msk.f32.gmra.mrb[26].mxu0 %vm249_vm15, %v5893_v19  ;;  %v1852_v36 = vsel %vm1836_vm0, %v5851_v21, %v3988_v45 }
 0x499   :  { %v4432_v53 = vpop.eup %4431  ;;  %v5903_v57 = vadd.f32 %v2051_v29, %v5846_v44  ;;  %v5906_v52 = vadd.f32 %v2121_v39, %v5846_v44  ;;  %v2053_v17 = vpop.f32.mrb[18].mxu1  ;;  %v2064_v60 = vmul.f32 1.442695, %v5896_v48  ;;  %2445 = vmatprep.mubr.f32.mxu0 %v4717_v49  ;;  %vm2058_vm9 = vcmp.gt.f32.partialorder %v5896_v48, 0.0 }
 0x49a   :  { %v2123_v15 = vpop.f32.mrb[22].mxu0  ;;  %v2171_v9 = vmul.f32 1.442695, %v5899_v54  ;;  %v2054_v50 = vpop.f32.mrb[19].mxu1  ;;  %v1853_v37 = vsel %vm1837_vm1, %v5857_v63, %v3989_v41  ;;  %v3993_v27 = vadd.f32 -1.0, %v4432_v53  ;;  %v1961_v63 = vsel %vm1945_vm3, %v5854_v3, %v3992_v7 }
 0x49b   :  { %v2066_v20 = vmul.f32 1.442695, %v5903_v57  ;;  %v2173_v22 = vmul.f32 1.442695, %v5906_v52  ;;  %4441 = vpow2.f32 %v2064_v60  ;;  %2304 = vmatprep.subr.mxu1 %v1853_v37  ;;  %v2124_v32 = vpop.f32.mrb[23].mxu0  ;;  %vm2059_vm8 = vcmp.gt.f32.partialorder %v5903_v57, 0.0  ;;  %v5997_v53 = vpop.permute.xlu0 %2218 }
 0x49c   :  { %4443 = vpow2.f32 %v2171_v9  ;;  %v1962_v24 = vsel %vm1946_vm2, %v5860_v35, %v3993_v27  ;;  %2305 = vmatpush1.msra.mxu1 %v1852_v36  ;;  %vm2168_vm10 = vcmp.gt.f32.partialorder %v5906_v52, 0.0  ;;  %vm2167_vm11 = vcmp.gt.f32.partialorder %v5899_v54, 0.0 }
 0x49d   :  { %v4434_v56 = vpop.eup %4433  ;;  %4445 = vpow2.f32 %v2066_v20  ;;  %2381 = vmatprep.subr.mxu0 %v1962_v24  ;;  %4010 = vmatmul.mubr.msk.f32.vlgmr.msra.gmra.mrb[24].mxu1 %vm249_vm15, %v5881_v16 }
 0x49e   :  { %v4436_v61 = vpop.eup %4435  ;;  %4447 = vpow2.f32 %v2173_v22  ;;  %2382 = vmatpush1.msra.mxu0 %v1961_v63  ;;  %v2160_v6 = vpop.f32.mrb[20].mxu1  ;;  %2374 = vmatprep.mubr.f32.mxu1 %v4717_v49  ;;  %v3994_v2 = vadd.f32 -1.0, %v4434_v56 }
 0x49f   :  { %v4438_v21 = vpop.eup %4437  ;;  %4012 = vmatmul.mubr.msk.f32.vlgmr.msra.gmra.mrb[28].mxu0 %vm249_vm15, %v5881_v16  ;;  %v5930_v35 = vadd.f32 %v2160_v6, %v5846_v44  ;;  %v2162_v8 = vpop.f32.mrb[21].mxu1  ;;  %v3998_v42 = vadd.f32 -1.0, %v4436_v61 }
 0x4a0   :  { %v4440_v18 = vpop.eup %4439  ;;  %v5933_v3 = vadd.f32 %v2162_v8, %v5846_v44  ;;  %2451 = vmatprep.mubr.f32.mxu0 %v4717_v49  ;;  %v2164_v28 = vpop.f32.mrb[22].mxu1  ;;  %v3995_v62 = vadd.f32 -1.0, %v4438_v21  ;;  %v1963_v26 = vsel %vm1947_vm4, %v5867_v43, %v3994_v2 }
 0x4a1   :  { %v2175_v31 = vmul.f32 1.442695, %v5930_v35  ;;  %4011 = vmatmul.mubr.msk.f32.gmra.mrb[26].mxu1 %vm249_vm15, %v5893_v19  ;;  %v2165_v23 = vpop.f32.mrb[23].mxu1  ;;  %v3999_v13 = vadd.f32 -1.0, %v4440_v18  ;;  %vm2169_vm14 = vcmp.gt.f32.partialorder %v5930_v35, 0.0 }
 0x4a2   :  { %v2177_v34 = vmul.f32 1.442695, %v5933_v3  ;;  %v1964_v44 = vsel %vm1948_vm12, %v5873_v5, %v3995_v62  ;;  %2522 = vmatprep.mubr.f32.mxu1 %v4717_v49  ;;  %v2072_v5 = vsel %vm2056_vm6, %v5870_v4, %v3998_v42  ;;  %vm2170_vm13 = vcmp.gt.f32.partialorder %v5933_v3, 0.0 }
 0x4a3   :  { %4449 = vpow2.f32 %v2175_v31  ;;  %4013 = vmatmul.mubr.msk.f32.gmra.mrb[30].mxu0 %vm249_vm15, %v5893_v19  ;;  %2458 = vmatprep.subr.mxu1 %v1964_v44  ;;  %v2073_v58 = vsel %vm2057_vm5, %v5876_v59, %v3999_v13 }
 0x4a4   :  { %4451 = vpow2.f32 %v2177_v34  ;;  %2535 = vmatprep.subr.mxu0 %v2073_v58  ;;  %2459 = vmatpush1.msra.mxu1 %v1963_v26 }
 0x4a5   :  { %v4442_v40 = vpop.eup %4441  ;;  %2536 = vmatpush1.msra.mxu0 %v2072_v5  ;;  %2599 = vmatprep.mubr.f32.mxu0 %v4717_v49 }
 0x4a6   :  { %v4444_v11 = vpop.eup %4443  ;;  %4014 = vmatmul.mubr.msk.f32.vlgmr.msra.gmra.mrb[28].mxu1 %vm249_vm15, %v5881_v16  ;;  %v4000_v43 = vadd.f32 -1.0, %v4442_v40 }
 0x4a7   :  { %v4446_v1 = vpop.eup %4445  ;;  %4016 = vmatmul.mubr.msk.f32.vlgmr.msra.gmra.mrb[32].mxu0 %vm249_vm15, %v5881_v16  ;;  %2528 = vmatprep.mubr.f32.mxu1 %v4717_v49  ;;  %v4004_v4 = vadd.f32 -1.0, %v4444_v11 }
 0x4a8   :  { %v4448_v59 = vpop.eup %4447  ;;  %2605 = vmatprep.mubr.f32.mxu0 %v4717_v49  ;;  %v4001_v38 = vadd.f32 -1.0, %v4446_v1  ;;  %v2074_v30 = vsel %vm2058_vm9, %v5896_v48, %v4000_v43  ;;  %v5994_v48 = vpop.permute.xlu1 %2213 }
 0x4a9   :  { %v4005_v55 = vadd.f32 -1.0, %v4448_v59  ;;  %v2183_v10 = vsel %vm2167_vm11, %v5899_v54, %v4004_v4 }
 0x4aa   :  { %4015 = vmatmul.mubr.msk.f32.gmra.mrb[30].mxu1 %vm249_vm15, %v5893_v19  ;;  %v2075_v25 = vsel %vm2059_vm8, %v5903_v57, %v4001_v38 }
 0x4ab   :  { %4017 = vmatmul.mubr.msk.f32.gmra.mrb[34].mxu0 %vm249_vm15, %v5893_v19  ;;  %2612 = vmatprep.subr.mxu1 %v2075_v25  ;;  %v2184_v33 = vsel %vm2168_vm10, %v5906_v52, %v4005_v55 }
 0x4ac   :  { %2689 = vmatprep.subr.mxu0 %v2184_v33  ;;  %2613 = vmatpush1.msra.mxu1 %v2074_v30 }
 0x4ad   :  { %v4450_v14 = vpop.eup %4449  ;;  %2676 = vmatprep.mubr.f32.mxu1 %v4717_v49  ;;  %2690 = vmatpush1.msra.mxu0 %v2183_v10 }
 0x4ae   :  { %v4452_v46 = vpop.eup %4451  ;;  %2753 = vmatprep.mubr.f32.mxu0 %v4717_v49  ;;  %4018 = vmatmul.mubr.msk.f32.vlgmr.msra.gmra.mrb[32].mxu1 %vm249_vm15, %v5881_v16  ;;  %v4006_v47 = vadd.f32 -1.0, %v4450_v14 }
 0x4af   :  { %4020 = vmatmul.mubr.msk.f32.vlgmr.msra.gmra.mrb[36].mxu0 %vm249_vm15, %v5881_v16  ;;  %2682 = vmatprep.mubr.f32.mxu1 %v4717_v49  ;;  %v4007_v51 = vadd.f32 -1.0, %v4452_v46 }
 0x4b0   :  { %2759 = vmatprep.mubr.f32.mxu0 %v4717_v49  ;;  %v2185_v0 = vsel %vm2169_vm14, %v5930_v35, %v4006_v47 }
 0x4b1   :  { %v2186_v12 = vsel %vm2170_vm13, %v5933_v3, %v4007_v51 }
 0x4b2   :  { %4019 = vmatmul.mubr.msk.f32.gmra.mrb[34].mxu1 %vm249_vm15, %v5893_v19  ;;  %2766 = vmatprep.subr.mxu1 %v2186_v12 }
 0x4b3   :  { %4021 = vmatmul.mubr.msk.f32.gmra.mrb[38].mxu0 %vm249_vm15, %v5893_v19  ;;  %2767 = vmatpush1.msra.mxu1 %v2185_v0 }
 0x4b4   :  { %2830 = vmatprep.mubr.f32.mxu1 %v4717_v49  ;;  %3149 = vmatprep.mubr.f32.mxu0 %v4717_v49 }
 0x4b6   :  { %4022 = vmatmul.mubr.msk.f32.vlgmr.msra.gmra.mrb[36].mxu1 %vm249_vm15, %v5881_v16 }
 0x4b7   :  { %2836 = vmatprep.mubr.f32.mxu1 %v4717_v49 }
 0x4ba   :  { %4023 = vmatmul.mubr.msk.f32.gmra.mrb[38].mxu1 %vm249_vm15, %v5893_v19 }
 0x4bb   :  { %3226 = vmatprep.mubr.f32.mxu1 %v4717_v49 }
 0x567   :  { %v2293_v54 = vpop.f32.mrb[24].mxu0 }
 0x568   :  { %v2294_v29 = vadd.f32 %v2293_v54, %v5994_v48  ;;  %v2295_v39 = vpop.f32.mrb[25].mxu0 }
 0x569   :  { %v6001_v17 = vadd.f32 %v2295_v39, %v5994_v48 }
 0x56a   :  { %v2875_v45 = vmul.f32 1.442695, %v2294_v29  ;;  %vm2843_vm15 = vcmp.gt.f32.partialorder %v2294_v29, 0.0 }
 0x56b   :  { %v2299_v57 = vpop.f32.mrb[26].mxu0  ;;  %v2877_v7 = vmul.f32 1.442695, %v6001_v17  ;;  %vm2844_vm4 = vcmp.gt.f32.partialorder %v6001_v17, 0.0 }
 0x56c   :  { %4453 = vpow2.f32 %v2875_v45  ;;  %v2300_v16 = vadd.f32 %v2299_v57, %v5997_v53  ;;  %v2301_v52 = vpop.f32.mrb[27].mxu0 }
 0x56d   :  { %v6004_v41 = vadd.f32 %v2301_v52, %v5997_v53 }
 0x56e   :  { %v2907_v19 = vmul.f32 1.442695, %v2300_v16  ;;  %vm2859_vm0 = vcmp.gt.f32.partialorder %v2300_v16, 0.0 }
 0x56f   :  { %v2909_v27 = vmul.f32 1.442695, %v6004_v41  ;;  %vm2860_vm5 = vcmp.gt.f32.partialorder %v6004_v41, 0.0 }
 0x570   :  { %v2370_v15 = vpop.f32.mrb[24].mxu1  ;;  %4455 = vpow2.f32 %v2907_v19 }
 0x571   :  { %v6007_v60 = vadd.f32 %v2370_v15, %v5994_v48  ;;  %v2372_v9 = vpop.f32.mrb[25].mxu1 }
 0x572   :  { %v2447_v20 = vpop.f32.mrb[28].mxu0  ;;  %v6016_v36 = vadd.f32 %v2372_v9, %v5994_v48 }
 0x573   :  { %v2879_v22 = vmul.f32 1.442695, %v6007_v60  ;;  %v6012_v50 = vadd.f32 %v2447_v20, %v5994_v48  ;;  %v2449_v37 = vpop.f32.mrb[29].mxu0  ;;  %vm2845_vm1 = vcmp.gt.f32.partialorder %v6007_v60, 0.0 }
 0x574   :  { %v2376_v32 = vpop.f32.mrb[26].mxu1  ;;  %v6020_v56 = vadd.f32 %v2449_v37, %v5994_v48  ;;  %v2881_v3 = vmul.f32 1.442695, %v6016_v36  ;;  %vm2846_vm10 = vcmp.gt.f32.partialorder %v6016_v36, 0.0 }
 0x575   :  { %4457 = vpow2.f32 %v2879_v22  ;;  %v2883_v24 = vmul.f32 1.442695, %v6012_v50  ;;  %v6023_v63 = vadd.f32 %v2376_v32, %v5997_v53  ;;  %v2378_v61 = vpop.f32.mrb[27].mxu1  ;;  %vm2847_vm2 = vcmp.gt.f32.partialorder %v6012_v50, 0.0 }
 0x576   :  { %4459 = vpow2.f32 %v2877_v7  ;;  %v2453_v6 = vpop.f32.mrb[30].mxu0  ;;  %v6026_v21 = vadd.f32 %v2378_v61, %v5997_v53  ;;  %v4454_v35 = vpop.eup %4453  ;;  %v2885_v28 = vmul.f32 1.442695, %v6020_v56  ;;  %vm2848_vm14 = vcmp.gt.f32.partialorder %v6020_v56, 0.0 }
 0x577   :  { %4461 = vpow2.f32 %v2883_v24  ;;  %v2911_v8 = vmul.f32 1.442695, %v6023_v63  ;;  %v6030_v2 = vadd.f32 %v2453_v6, %v5997_v53  ;;  %v2455_v18 = vpop.f32.mrb[31].mxu0  ;;  %v4024_v31 = vadd.f32 -1.0, %v4454_v35 }
 0x578   :  { %4463 = vpow2.f32 %v2909_v27  ;;  %v2913_v23 = vmul.f32 1.442695, %v6026_v21  ;;  %v6037_v13 = vadd.f32 %v2455_v18, %v5997_v53  ;;  %vm2861_vm3 = vcmp.gt.f32.partialorder %v6023_v63, 0.0 }
 0x579   :  { %4465 = vpow2.f32 %v2911_v8  ;;  %v2915_v62 = vmul.f32 1.442695, %v6030_v2  ;;  %v2524_v42 = vpop.f32.mrb[28].mxu1  ;;  %v6050_v38 = vsel %vm2843_vm15, %v2294_v29, %v4024_v31  ;;  %vm2863_vm12 = vcmp.gt.f32.partialorder %v6030_v2, 0.0 }
 0x57a   :  { %v6040_v34 = vadd.f32 %v2524_v42, %v5994_v48  ;;  %v2601_v44 = vpop.f32.mrb[32].mxu0  ;;  %v2526_v58 = vpop.f32.mrb[29].mxu1  ;;  %v2917_v55 = vmul.f32 1.442695, %v6037_v13  ;;  %vm2862_vm11 = vcmp.gt.f32.partialorder %v6026_v21, 0.0  ;;  %vm2864_vm15 = vcmp.gt.f32.partialorder %v6037_v13, 0.0 }
 0x57b   :  { %v4456_v26 = vpop.eup %4455  ;;  %4467 = vpow2.f32 %v2915_v62  ;;  %v6043_v5 = vadd.f32 %v2601_v44, %v5994_v48  ;;  %v6046_v40 = vadd.f32 %v2526_v58, %v5994_v48  ;;  %v2603_v11 = vpop.f32.mrb[33].mxu0 }
 0x57c   :  { %v4040_v1 = vadd.f32 -1.0, %v4456_v26  ;;  %4469 = vpow2.f32 %v2881_v3  ;;  %v2887_v43 = vmul.f32 1.442695, %v6040_v34  ;;  %v6059_v46 = vadd.f32 %v2603_v11, %v5994_v48 }
 0x57d   :  { %4471 = vpow2.f32 %v2885_v28  ;;  %v2891_v59 = vmul.f32 1.442695, %v6043_v5  ;;  %v2530_v25 = vpop.f32.mrb[30].mxu1  ;;  %v2889_v14 = vmul.f32 1.442695, %v6046_v40  ;;  %vm2849_vm6 = vcmp.gt.f32.partialorder %v6040_v34, 0.0 }
 0x57e   :  { %v6052_v4 = vsel %vm2859_vm0, %v2300_v16, %v4040_v1  ;;  %4473 = vpow2.f32 %v2913_v23  ;;  %v2607_v33 = vpop.f32.mrb[34].mxu0  ;;  %v6062_v47 = vadd.f32 %v2530_v25, %v5997_v53  ;;  %v2532_v51 = vpop.f32.mrb[31].mxu1  ;;  %v2893_v20 = vmul.f32 1.442695, %v6059_v46 }
 0x57f   :  { %v4458_v30 = vpop.eup %4457  ;;  %v4151_v10 = vpack.c.bf16 %v6052_v4, %v6050_v38  ;;  %v2609_v12 = vpop.f32.mrb[35].mxu0  ;;  %4475 = vpow2.f32 %v2887_v43  ;;  %v6065_v54 = vadd.f32 %v2607_v33, %v5997_v53  ;;  %v6069_v45 = vadd.f32 %v2532_v51, %v5997_v53 }
 0x580   :  { %v4460_v0 = vpop.eup %4459  ;;  %v4026_v39 = vadd.f32 -1.0, %v4458_v30  ;;  %4477 = vpow2.f32 %v2891_v59  ;;  %v2919_v52 = vmul.f32 1.442695, %v6062_v47  ;;  %v6084_v35 = vadd.f32 %v2609_v12, %v5997_v53 }
 0x581   :  { %v4462_v29 = vpop.eup %4461  ;;  %v2678_v57 = vpop.f32.mrb[32].mxu1  ;;  %4479 = vpow2.f32 %v2917_v55  ;;  %v4025_v7 = vadd.f32 -1.0, %v4460_v0  ;;  %v2923_v22 = vmul.f32 1.442695, %v6065_v54  ;;  %v2921_v6 = vmul.f32 1.442695, %v6069_v45 }
 0x582   :  { %v4464_v16 = vpop.eup %4463  ;;  %v2755_v19 = vpop.f32.mrb[36].mxu0  ;;  %4481 = vpow2.f32 %v2889_v14  ;;  %v4028_v27 = vadd.f32 -1.0, %v4462_v29  ;;  %v6080_v61 = vsel %vm2845_vm1, %v6007_v60, %v4026_v39  ;;  %v6092_v62 = vadd.f32 %v2678_v57, %v5994_v48 }
 0x583   :  { %v2680_v15 = vpop.f32.mrb[33].mxu1  ;;  %v4466_v9 = vpop.eup %4465  ;;  %4483 = vpow2.f32 %v2919_v52  ;;  %v6095_v60 = vadd.f32 %v2755_v19, %v5994_v48  ;;  %v4041_v44 = vadd.f32 -1.0, %v4464_v16  ;;  %v2925_v26 = vmul.f32 1.442695, %v6084_v35 }
 0x584   :  { %v2757_v37 = vpop.f32.mrb[37].mxu0  ;;  %v4042_v32 = vadd.f32 -1.0, %v4466_v9  ;;  %4485 = vpow2.f32 %v2923_v22  ;;  %v6105_v1 = vsel %vm2847_vm2, %v6012_v50, %v4028_v27  ;;  %v2895_v59 = vmul.f32 1.442695, %v6092_v62 }
 0x585   :  { %v4468_v24 = vpop.eup %4467  ;;  %v2684_v8 = vpop.f32.mrb[34].mxu1  ;;  %4487 = vpow2.f32 %v2893_v20  ;;  %v2899_v25 = vmul.f32 1.442695, %v6095_v60  ;;  %v6119_v50 = vadd.f32 %v2680_v15, %v5994_v48  ;;  %v2972_v12 = vsel %vm2844_vm4, %v6001_v17, %v4025_v7 }
 0x586   :  { %v4470_v18 = vpop.eup %4469  ;;  %v6089_v3 = vsel %vm2861_vm3, %v6023_v63, %v4042_v32  ;;  %v4044_v28 = vadd.f32 -1.0, %v4468_v24  ;;  %v2761_v42 = vpop.f32.mrb[38].mxu0  ;;  %4489 = vpow2.f32 %v2921_v6  ;;  %v2988_v0 = vsel %vm2860_vm5, %v6004_v41, %v4041_v44 }
 0x587   :  { %v2686_v31 = vpop.f32.mrb[35].mxu1  ;;  %v6097_v23 = vpop.eup %4471  ;;  %v4155_v58 = vpack.c.bf16 %v6089_v3, %v6080_v61  ;;  %4491 = vpow2.f32 %v2925_v26  ;;  %v6130_v29 = vadd.f32 %v2684_v8, %v5997_v53  ;;  %v6132_v57 = vadd.f32 -1.0, %v4470_v18 }
 0x588   :  { %v2763_v63 = vpop.f32.mrb[39].mxu0  ;;  %v4474_v11 = vpop.eup %4473  ;;  %v6110_v43 = vsel %vm2863_vm12, %v6030_v2, %v4044_v28  ;;  %4493 = vpow2.f32 %v2895_v59  ;;  %v6122_v2 = vadd.f32 %v2757_v37, %v5994_v48  ;;  %vm2851_vm8 = vcmp.gt.f32.partialorder %v6043_v5, 0.0  ;;  %v6158_v28 = vld [vmem:[#allocation12] sm:$0xff] }
 0x589   :  { %v4159_v55 = vpack.c.bf16 %v6110_v43, %v6105_v1  ;;  %v2832_v33 = vpop.f32.mrb[36].mxu1  ;;  %v4476_v30 = vpop.eup %4475  ;;  %vm2865_vm9 = vcmp.gt.f32.partialorder %v6062_v47, 0.0  ;;  %v2897_v16 = vmul.f32 1.442695, %v6119_v50  ;;  %4495 = vpow2.f32 %v2899_v25 }
 0x58a   :  { %v6124_v14 = vpop.f32.mrb[37].mxu1  ;;  %v4478_v51 = vpop.eup %4477  ;;  %v4030_v17 = vadd.f32 -1.0, %v4476_v30  ;;  %v2901_v41 = vmul.f32 1.442695, %v6122_v2  ;;  %v4149_v19 = vpack.c.bf16 %v2988_v0, %v2972_v12  ;;  %v4043_v7 = vadd.f32 -1.0, %v4474_v11 }
 0x58b   :  { %v4480_v39 = vpop.eup %4479  ;;  %v4032_v20 = vadd.f32 -1.0, %v4478_v51  ;;  %vm2867_vm13 = vcmp.gt.f32.partialorder %v6065_v54, 0.0  ;;  %v2927_v22 = vmul.f32 1.442695, %v6130_v29  ;;  %4497 = vpow2.f32 %v2897_v16 }
 0x58c   :  { %v4482_v52 = vpop.eup %4481  ;;  %4150 = vmatprep.subr.bf16.mxu0 %v4149_v19  ;;  %v6147_v24 = vadd.f32 %v2761_v42, %v5997_v53  ;;  %v6150_v6 = vadd.f32 %v2686_v31, %v5997_v53  ;;  %v6156_v18 = vadd.f32 %v2763_v63, %v5997_v53  ;;  %v6161_v44 = vadd.f32 %v2832_v33, %v5994_v48 }
 0x58d   :  { %v6140_v15 = vpop.f32.mrb[38].mxu1  ;;  %v4484_v9 = vpop.eup %4483  ;;  %4152 = vmatpush1.bf16.msra.mxu0 %v4151_v10  ;;  %4499 = vpow2.f32 %v2927_v22  ;;  %v6166_v42 = vsel %vm2849_vm6, %v6040_v34, %v4030_v17  ;;  %v6177_v31 = vsel %vm2851_vm8, %v6043_v5, %v4032_v20  ;;  %vm2850_vm0 = vcmp.gt.f32.partialorder %v6046_v40, 0.0 }
 0x58e   :  { %v2840_v37 = vpop.f32.mrb[39].mxu1  ;;  %v4486_v27 = vpop.eup %4485  ;;  %v4046_v32 = vadd.f32 -1.0, %v4484_v9  ;;  %4501 = vpow2.f32 %v2901_v41  ;;  %v2931_v4 = vmul.f32 1.442695, %v6147_v24  ;;  %v4029_v59 = vadd.f32 -1.0, %v6097_v23  ;;  %v6198_v23 = vld [vmem:[#allocation12 + $0x8] sm:$0xff] }
 0x58f   :  { %v4048_v8 = vadd.f32 -1.0, %v4486_v27  ;;  %v4488_v26 = vpop.eup %4487  ;;  %vm2852_vm1 = vcmp.gt.f32.partialorder %v6059_v46, 0.0  ;;  %v2933_v25 = vmul.f32 1.442695, %v6156_v18  ;;  %v4045_v30 = vadd.f32 -1.0, %v4480_v39 }
 0x590   :  { %v6171_v38 = vsel %vm2865_vm9, %v6062_v47, %v4046_v32  ;;  %v4490_v10 = vpop.eup %4489  ;;  %v2929_v47 = vmul.f32 1.442695, %v6150_v6  ;;  %4503 = vpow2.f32 %v2931_v4  ;;  %4057 = vmatmul.mubr.msk.f32.vlgmr.msra.gmra.mrb[40].mxu0 %vm1748_vm7, %v6158_v28  ;;  %vm2866_vm2 = vcmp.gt.f32.partialorder %v6069_v45, 0.0 }
 0x591   :  { %v4163_v34 = vpack.c.bf16 %v6171_v38, %v6166_v42  ;;  %v6185_v63 = vsel %vm2867_vm13, %v6065_v54, %v4048_v8  ;;  %v4492_v11 = vpop.eup %4491  ;;  %v2903_v54 = vmul.f32 1.442695, %v6161_v44  ;;  %3155 = vmatprep.mubr.f32.mxu0 %v4717_v49  ;;  %v4031_v51 = vadd.f32 -1.0, %v4482_v52 }
 0x592   :  { %v4167_v5 = vpack.c.bf16 %v6185_v63, %v6177_v31  ;;  %v4494_v33 = vpop.eup %4493  ;;  %4505 = vpow2.f32 %v2929_v47  ;;  %v4033_v12 = vadd.f32 -1.0, %v4488_v26  ;;  %v6202_v0 = vadd.f32 %v6124_v14, %v5994_v48 }
 0x593   :  { %4507 = vpow2.f32 %v2933_v25  ;;  %v4047_v16 = vadd.f32 -1.0, %v4490_v10  ;;  %v4034_v17 = vadd.f32 -1.0, %v4494_v33  ;;  %v2974_v39 = vsel %vm2846_vm10, %v6016_v36, %v6132_v57  ;;  %v4496_v19 = vpop.eup %4495 }
 0x594   :  { %v2990_v41 = vsel %vm2862_vm11, %v6026_v21, %v4043_v7  ;;  %v4049_v9 = vadd.f32 -1.0, %v4492_v11  ;;  %4509 = vpow2.f32 %v2903_v54  ;;  %v2905_v52 = vmul.f32 1.442695, %v6202_v0  ;;  %4058 = vmatmul.mubr.msk.f32.gmra.mrb[42].mxu0 %vm1748_vm7, %v6198_v23 }
 0x595   :  { %v4153_v48 = vpack.c.bf16 %v2990_v41, %v2974_v39  ;;  %v2976_v14 = vsel %vm2848_vm14, %v6020_v56, %v4029_v59  ;;  %v2992_v36 = vsel %vm2864_vm15, %v6037_v13, %v4045_v30  ;;  %v6222_v21 = vadd.f32 %v6140_v15, %v5997_v53  ;;  %3303 = vmatprep.mubr.f32.mxu0 %v4717_v49  ;;  %v4498_v7 = vpop.eup %4497 }
 0x596   :  { %v6225_v57 = vadd.f32 %v2840_v37, %v5997_v53  ;;  %vm2868_vm3 = vcmp.gt.f32.partialorder %v6084_v35, 0.0  ;;  %vm2853_vm12 = vcmp.gt.f32.partialorder %v6092_v62, 0.0  ;;  %4511 = vpow2.f32 %v2905_v52 }
 0x597   :  { %4154 = vmatprep.subr.bf16.mxu1 %v4153_v48  ;;  %v4157_v56 = vpack.c.bf16 %v2992_v36, %v2976_v14  ;;  %v4500_v20 = vpop.eup %4499  ;;  %v6231_v13 = vsel %vm2853_vm12, %v6092_v62, %v4034_v17  ;;  %v4036_v22 = vadd.f32 -1.0, %v4496_v19  ;;  %vm2869_vm4 = vcmp.gt.f32.partialorder %v6130_v29, 0.0 }
 0x598   :  { %4156 = vmatpush1.bf16.msra.mxu1 %v4155_v58  ;;  %v2935_v53 = vmul.f32 1.442695, %v6222_v21  ;;  %v4502_v15 = vpop.eup %4501  ;;  %v4050_v37 = vadd.f32 -1.0, %v4500_v20  ;;  %v2937_v27 = vmul.f32 1.442695, %v6225_v57  ;;  %v2978_v32 = vsel %vm2850_vm0, %v6046_v40, %v4031_v51 }
 0x599   :  { %4158 = vmatprep.subr.bf16.mxu0 %v4157_v56  ;;  %v2994_v62 = vsel %vm2866_vm2, %v6069_v45, %v4047_v16  ;;  %v2980_v3 = vsel %vm2852_vm1, %v6059_v46, %v4033_v12  ;;  %v2996_v58 = vsel %vm2868_vm3, %v6084_v35, %v4049_v9  ;;  %v4035_v40 = vadd.f32 -1.0, %v4498_v7 }
 0x59a   :  { %4160 = vmatpush1.bf16.msra.mxu0 %v4159_v55  ;;  %4513 = vpow2.f32 %v2935_v53  ;;  %v4161_v61 = vpack.c.bf16 %v2994_v62, %v2978_v32  ;;  %v4504_v8 = vpop.eup %4503  ;;  %v2997_v45 = vsel %vm2869_vm4, %v6130_v29, %v4050_v37  ;;  %v4165_v1 = vpack.c.bf16 %v2996_v58, %v2980_v3 }
 0x59b   :  { %4515 = vpow2.f32 %v2937_v27  ;;  %4059 = vmatmul.mubr.msk.f32.vlgmr.msra.gmra.mrb[40].mxu1 %vm1748_vm7, %v6158_v28  ;;  %vm2855_vm5 = vcmp.gt.f32.partialorder %v6095_v60, 0.0  ;;  %v4037_v55 = vadd.f32 -1.0, %v4502_v15  ;;  %v4171_v46 = vpack.c.bf16 %v2997_v45, %v6231_v13 }
 0x59c   :  { %v4506_v43 = vpop.eup %4505  ;;  %v4052_v26 = vadd.f32 -1.0, %v4504_v8  ;;  %3232 = vmatprep.mubr.f32.mxu1 %v4717_v49  ;;  %4162 = vmatprep.subr.bf16.mxu1 %v4161_v61  ;;  %vm2854_vm6 = vcmp.gt.f32.partialorder %v6119_v50, 0.0  ;;  %vm2856_vm8 = vcmp.gt.f32.partialorder %v6122_v2, 0.0  ;;  %vm2871_vm9 = vcmp.gt.f32.partialorder %v6147_v24, 0.0 }
 0x59d   :  { %v4508_v35 = vpop.eup %4507  ;;  %v4051_v29 = vadd.f32 -1.0, %v4506_v43  ;;  %4061 = vmatmul.mubr.msk.f32.vlgmr.msra.gmra.mrb[44].mxu0 %vm1748_vm7, %v6158_v28  ;;  %4166 = vmatprep.subr.bf16.mxu0 %v4165_v1  ;;  %v2983_v4 = vsel %vm2855_vm5, %v6095_v60, %v4036_v22  ;;  %vm2870_vm10 = vcmp.gt.f32.partialorder %v6150_v6, 0.0  ;;  %vm2872_vm11 = vcmp.gt.f32.partialorder %v6156_v18, 0.0 }
 0x59e   :  { %v2999_v10 = vsel %vm2871_vm9, %v6147_v24, %v4052_v26  ;;  %v4053_v47 = vadd.f32 -1.0, %v4508_v35  ;;  %3309 = vmatprep.mubr.f32.mxu0 %v4717_v49  ;;  %4164 = vmatpush1.bf16.msra.mxu1 %v4163_v34  ;;  %v4510_v11 = vpop.eup %4509  ;;  %v2982_v60 = vsel %vm2854_vm6, %v6119_v50, %v4035_v40  ;;  %v2984_v38 = vsel %vm2856_vm8, %v6122_v2, %v4037_v55 }
 0x59f   :  { %v4175_v59 = vpack.c.bf16 %v2999_v10, %v2983_v4  ;;  %4060 = vmatmul.mubr.msk.f32.gmra.mrb[42].mxu1 %vm1748_vm7, %v6198_v23  ;;  %4168 = vmatpush1.bf16.msra.mxu0 %v4167_v5  ;;  %v2998_v24 = vsel %vm2870_vm10, %v6150_v6, %v4051_v29  ;;  %v4038_v50 = vadd.f32 -1.0, %v4510_v11  ;;  %vm2857_vm13 = vcmp.gt.f32.partialorder %v6161_v44, 0.0 }
 0x5a0   :  { %3380 = vmatprep.mubr.f32.mxu1 %v4717_v49  ;;  %v4169_v42 = vpack.c.bf16 %v2998_v24, %v2982_v60  ;;  %v3000_v34 = vsel %vm2872_vm11, %v6156_v18, %v4053_v47  ;;  %v4512_v25 = vpop.eup %4511  ;;  %vm2873_vm14 = vcmp.gt.f32.partialorder %v6222_v21, 0.0  ;;  %vm2858_vm15 = vcmp.gt.f32.partialorder %v6202_v0, 0.0 }
 0x5a1   :  { %4062 = vmatmul.mubr.msk.f32.gmra.mrb[46].mxu0 %vm1748_vm7, %v6198_v23  ;;  %v4173_v31 = vpack.c.bf16 %v3000_v34, %v2984_v38  ;;  %v4039_v63 = vadd.f32 -1.0, %v4512_v25  ;;  %v2985_v33 = vsel %vm2857_vm13, %v6161_v44, %v4038_v50  ;;  %vm2874_vm0 = vcmp.gt.f32.partialorder %v6225_v57, 0.0 }
 0x5a2   :  { %3457 = vmatprep.mubr.f32.mxu0 %v4717_v49  ;;  %4170 = vmatprep.subr.bf16.mxu1 %v4169_v42 }
 0x5a3   :  { %4063 = vmatmul.mubr.msk.f32.vlgmr.msra.gmra.mrb[44].mxu1 %vm1748_vm7, %v6158_v28  ;;  %4174 = vmatprep.subr.bf16.mxu0 %v4173_v31  ;;  %v2986_v51 = vsel %vm2858_vm15, %v6202_v0, %v4039_v63  ;;  %v6328_v0 = vpop.permute.xlu1 %3076 }
 0x5a4   :  { %v4514_v6 = vpop.eup %4513  ;;  %3386 = vmatprep.mubr.f32.mxu1 %v4717_v49  ;;  %4172 = vmatpush1.bf16.msra.mxu1 %v4171_v46 }
 0x5a5   :  { %v4516_v2 = vpop.eup %4515  ;;  %v4054_v18 = vadd.f32 -1.0, %v4514_v6  ;;  %4065 = vmatmul.mubr.msk.f32.vlgmr.msra.gmra.mrb[48].mxu0 %vm1748_vm7, %v6158_v28 }
 0x5a6   :  { %v4055_v5 = vadd.f32 -1.0, %v4516_v2  ;;  %3463 = vmatprep.mubr.f32.mxu0 %v4717_v49  ;;  %4176 = vmatpush1.bf16.msra.mxu0 %v4175_v59 }
 0x5a7   :  { %v3001_v30 = vsel %vm2873_vm14, %v6222_v21, %v4054_v18  ;;  %4064 = vmatmul.mubr.msk.f32.gmra.mrb[46].mxu1 %vm1748_vm7, %v6198_v23 }
 0x5a8   :  { %v4179_v54 = vpack.c.bf16 %v3001_v30, %v2985_v33  ;;  %3534 = vmatprep.mubr.f32.mxu1 %v4717_v49  ;;  %v3002_v12 = vsel %vm2874_vm0, %v6225_v57, %v4055_v5 }
 0x5a9   :  { %4066 = vmatmul.mubr.msk.f32.gmra.mrb[50].mxu0 %vm1748_vm7, %v6198_v23  ;;  %v4177_v44 = vpack.c.bf16 %v3002_v12, %v2986_v51 }
 0x5aa   :  { %3611 = vmatprep.mubr.f32.mxu0 %v4717_v49 }
 0x5ab   :  { %4067 = vmatmul.mubr.msk.f32.vlgmr.msra.gmra.mrb[48].mxu1 %vm1748_vm7, %v6158_v28  ;;  %4178 = vmatprep.subr.bf16.mxu1 %v4177_v44 }
 0x5ac   :  { %3540 = vmatprep.mubr.f32.mxu1 %v4717_v49  ;;  %4180 = vmatpush1.bf16.msra.mxu1 %v4179_v54 }
 0x5ad   :  { %4069 = vmatmul.mubr.msk.f32.vlgmr.msra.gmra.mrb[52].mxu0 %vm1748_vm7, %v6158_v28 }
 0x5ae   :  { %3617 = vmatprep.mubr.f32.mxu0 %v4717_v49 }
 0x5af   :  { %4068 = vmatmul.mubr.msk.f32.gmra.mrb[50].mxu1 %vm1748_vm7, %v6198_v23 }
 0x5b0   :  { %3688 = vmatprep.mubr.f32.mxu1 %v4717_v49 }
 0x5b1   :  { %4070 = vmatmul.mubr.msk.f32.gmra.mrb[54].mxu0 %vm1748_vm7, %v6198_v23 }
 0x5b3   :  { %4071 = vmatmul.mubr.msk.f32.vlgmr.msra.gmra.mrb[52].mxu1 %vm1748_vm7, %v6158_v28 }
 0x5b4   :  { %3694 = vmatprep.mubr.f32.mxu1 %v4717_v49 }
 0x5b7   :  { %4072 = vmatmul.mubr.msk.f32.gmra.mrb[54].mxu1 %vm1748_vm7, %v6198_v23 }
 0x663   :  { %v3151_v16 = vpop.f32.mrb[40].mxu0 }
 0x664   :  { %v3152_v17 = vadd.f32 %v3151_v16, %v6328_v0  ;;  %v3153_v39 = vpop.f32.mrb[41].mxu0 }
 0x665   :  { %v3154_v41 = vadd.f32 %v3153_v39, %v6328_v0 }
 0x666   :  { %v3733_v19 = vmul.f32 1.442695, %v3152_v17  ;;  %vm3701_vm7 = vcmp.gt.f32.partialorder %v3152_v17, 0.0 }
 0x667   :  { %v3735_v9 = vmul.f32 1.442695, %v3154_v41  ;;  %v3157_v52 = vpop.f32.mrb[42].mxu0  ;;  %vm3702_vm1 = vcmp.gt.f32.partialorder %v3154_v41, 0.0 }
 0x668   :  { %4517 = vpow2.f32 %v3733_v19  ;;  %v3158_v48 = vadd.f32 %v3157_v52, %v6328_v0  ;;  %v3159_v28 = vpop.f32.mrb[43].mxu0 }
 0x669   :  { %4519 = vpow2.f32 %v3735_v9  ;;  %v3160_v49 = vadd.f32 %v3159_v28, %v6328_v0 }
 0x66a   :  { %v3765_v14 = vmul.f32 1.442695, %v3158_v48  ;;  %vm3717_vm2 = vcmp.gt.f32.partialorder %v3158_v48, 0.0 }
 0x66b   :  { %v3767_v23 = vmul.f32 1.442695, %v3160_v49  ;;  %vm3718_vm3 = vcmp.gt.f32.partialorder %v3160_v49, 0.0 }
 0x66c   :  { %4521 = vpow2.f32 %v3765_v14 }
 0x66d   :  { %4523 = vpow2.f32 %v3767_v23 }
 0x66e   :  { %v3228_v36 = vpop.f32.mrb[40].mxu1 }
 0x66f   :  { %v6335_v21 = vadd.f32 %v3228_v36, %v6328_v0  ;;  %v3230_v57 = vpop.f32.mrb[41].mxu1 }
 0x670   :  { %v3305_v7 = vpop.f32.mrb[44].mxu0  ;;  %v6338_v56 = vadd.f32 %v3230_v57, %v6328_v0 }
 0x671   :  { %v3737_v20 = vmul.f32 1.442695, %v6335_v21  ;;  %v6342_v13 = vadd.f32 %v3305_v7, %v6328_v0  ;;  %v3307_v22 = vpop.f32.mrb[45].mxu0  ;;  %vm3703_vm12 = vcmp.gt.f32.partialorder %v6335_v21, 0.0 }
 0x672   :  { %v3739_v53 = vmul.f32 1.442695, %v6338_v56  ;;  %v6346_v15 = vadd.f32 %v3307_v22, %v6328_v0  ;;  %v3234_v37 = vpop.f32.mrb[42].mxu1  ;;  %v4518_v27 = vpop.eup %4517  ;;  %vm3704_vm4 = vcmp.gt.f32.partialorder %v6338_v56, 0.0 }
 0x673   :  { %4525 = vpow2.f32 %v3737_v20  ;;  %v3741_v32 = vmul.f32 1.442695, %v6342_v13  ;;  %v6350_v62 = vadd.f32 %v3234_v37, %v6328_v0  ;;  %v3236_v61 = vpop.f32.mrb[43].mxu1  ;;  %v4520_v3 = vpop.eup %4519  ;;  %v4073_v58 = vadd.f32 -1.0, %v4518_v27 }
 0x674   :  { %4527 = vpow2.f32 %v3739_v53  ;;  %v3743_v8 = vmul.f32 1.442695, %v6346_v15  ;;  %v3311_v40 = vpop.f32.mrb[46].mxu0  ;;  %v4074_v45 = vadd.f32 -1.0, %v4520_v3  ;;  %v6358_v26 = vadd.f32 %v3236_v61, %v6328_v0 }
 0x675   :  { %4529 = vpow2.f32 %v3741_v32  ;;  %v3769_v1 = vmul.f32 1.442695, %v6350_v62  ;;  %v3313_v43 = vpop.f32.mrb[47].mxu0  ;;  %v3829_v55 = vsel %vm3701_vm7, %v3152_v17, %v4073_v58  ;;  %v6355_v46 = vadd.f32 %v3311_v40, %v6328_v0 }
 0x676   :  { %4531 = vpow2.f32 %v3743_v8  ;;  %v3382_v35 = vpop.f32.mrb[44].mxu1  ;;  %v4522_v29 = vpop.eup %4521  ;;  %3861 = vst [vmem:[%s6635_s13] sm:$0xff] %v3829_v55  ;;  %v3830_v4 = vsel %vm3702_vm1, %v3154_v41, %v4074_v45  ;;  %v6364_v10 = vadd.f32 %v3313_v43, %v6328_v0  ;;  %v3771_v34 = vmul.f32 1.442695, %v6358_v26 }
 0x677   :  { %4533 = vpow2.f32 %v3769_v1  ;;  %v6367_v47 = vadd.f32 %v3382_v35, %v6328_v0  ;;  %v3384_v11 = vpop.f32.mrb[45].mxu1  ;;  %v4524_v59 = vpop.eup %4523  ;;  %3862 = vst [vmem:[%s6635_s13 + $0x8] sm:$0xff] %v3830_v4  ;;  %v4089_v60 = vadd.f32 -1.0, %v4522_v29  ;;  %v3773_v24 = vmul.f32 1.442695, %v6355_v46 }
 0x678   :  { %v3459_v42 = vpop.f32.mrb[48].mxu0  ;;  %v4090_v38 = vadd.f32 -1.0, %v4524_v59  ;;  %v3775_v25 = vmul.f32 1.442695, %v6364_v10  ;;  %v6384_v5 = vadd.f32 %v3384_v11, %v6328_v0  ;;  %vm3705_vm5 = vcmp.gt.f32.partialorder %v6342_v13, 0.0 }
 0x679   :  { %v3845_v31 = vsel %vm3717_vm2, %v3158_v48, %v4089_v60  ;;  %4535 = vpow2.f32 %v3773_v24  ;;  %v3745_v50 = vmul.f32 1.442695, %v6367_v47  ;;  %v3461_v6 = vpop.f32.mrb[49].mxu0  ;;  %v6381_v18 = vadd.f32 %v3459_v42, %v6328_v0 }
 0x67a   :  { %v3388_v63 = vpop.f32.mrb[46].mxu1  ;;  %3877 = vst [vmem:[%s6635_s13 + $0x80] sm:$0xff] %v3845_v31  ;;  %v3846_v2 = vsel %vm3718_vm3, %v3160_v49, %v4090_v38  ;;  %4537 = vpow2.f32 %v3771_v34  ;;  %v6391_v30 = vadd.f32 %v3461_v6, %v6328_v0  ;;  %vm3706_vm6 = vcmp.gt.f32.partialorder %v6346_v15, 0.0 }
 0x67b   :  { %v3390_v33 = vpop.f32.mrb[47].mxu1  ;;  %3878 = vst [vmem:[%s6635_s13 + $0x88] sm:$0xff] %v3846_v2  ;;  %4539 = vpow2.f32 %v3775_v25  ;;  %v6394_v54 = vadd.f32 %v3388_v63, %v6328_v0  ;;  %v3749_v44 = vmul.f32 1.442695, %v6381_v18  ;;  %vm3719_vm8 = vcmp.gt.f32.partialorder %v6350_v62, 0.0 }
 0x67c   :  { %v3465_v51 = vpop.f32.mrb[50].mxu0  ;;  %4541 = vpow2.f32 %v3745_v50  ;;  %v3747_v41 = vmul.f32 1.442695, %v6384_v5  ;;  %v3751_v19 = vmul.f32 1.442695, %v6391_v30  ;;  %v6404_v28 = vadd.f32 %v3390_v33, %v6328_v0 }
 0x67d   :  { %v4526_v12 = vpop.eup %4525  ;;  %v3467_v16 = vpop.f32.mrb[51].mxu0  ;;  %4543 = vpow2.f32 %v3749_v44  ;;  %v3777_v48 = vmul.f32 1.442695, %v6394_v54  ;;  %v6410_v57 = vadd.f32 %v3465_v51, %v6328_v0  ;;  %vm3721_vm9 = vcmp.gt.f32.partialorder %v6355_v46, 0.0 }
 0x67e   :  { %v4528_v17 = vpop.eup %4527  ;;  %v4075_v39 = vadd.f32 -1.0, %v4526_v12  ;;  %v3536_v49 = vpop.f32.mrb[48].mxu1  ;;  %4545 = vpow2.f32 %v3747_v41  ;;  %vm3720_vm10 = vcmp.gt.f32.partialorder %v6358_v26, 0.0  ;;  %v6435_v58 = vadd.f32 %v3467_v16, %v6328_v0 }
 0x67f   :  { %v4530_v9 = vpop.eup %4529  ;;  %v4076_v52 = vadd.f32 -1.0, %v4528_v17  ;;  %v3538_v20 = vpop.f32.mrb[49].mxu1  ;;  %4547 = vpow2.f32 %v3751_v19  ;;  %v3781_v3 = vmul.f32 1.442695, %v6410_v57  ;;  %vm3722_vm11 = vcmp.gt.f32.partialorder %v6364_v10, 0.0 }
 0x680   :  { %v4532_v14 = vpop.eup %4531  ;;  %v3831_v23 = vsel %vm3703_vm12, %v6335_v21, %v4075_v39  ;;  %v4077_v36 = vadd.f32 -1.0, %v4530_v9  ;;  %v3613_v7 = vpop.f32.mrb[52].mxu0  ;;  %4549 = vpow2.f32 %v3777_v48  ;;  %v3783_v29 = vmul.f32 1.442695, %v6435_v58 }
 0x681   :  { %v4534_v22 = vpop.eup %4533  ;;  %3863 = vst [vmem:[%s6635_s13 + $0x10] sm:$0xff] %v3831_v23  ;;  %v3832_v53 = vsel %vm3704_vm4, %v6338_v56, %v4076_v52  ;;  %v4078_v37 = vadd.f32 -1.0, %v4532_v14  ;;  %v3615_v21 = vpop.f32.mrb[53].mxu0  ;;  %v6450_v1 = vadd.f32 %v3613_v7, %v6328_v0  ;;  %4551 = vpow2.f32 %v3781_v3 }
 0x682   :  { %v3833_v27 = vsel %vm3705_vm5, %v6342_v13, %v4077_v36  ;;  %3864 = vst [vmem:[%s6635_s13 + $0x18] sm:$0xff] %v3832_v53  ;;  %v4091_v32 = vadd.f32 -1.0, %v4534_v22  ;;  %v3542_v61 = vpop.f32.mrb[50].mxu1  ;;  %v3779_v13 = vmul.f32 1.442695, %v6404_v28  ;;  %vm3707_vm13 = vcmp.gt.f32.partialorder %v6367_v47, 0.0 }
 0x683   :  { %3865 = vst [vmem:[%s6635_s13 + $0x20] sm:$0xff] %v3833_v27  ;;  %v3834_v56 = vsel %vm3706_vm6, %v6346_v15, %v4078_v37  ;;  %v6437_v8 = vpop.f32.mrb[51].mxu1  ;;  %v4536_v40 = vpop.eup %4535  ;;  %v6447_v15 = vadd.f32 %v3536_v49, %v6328_v0  ;;  %vm3709_vm14 = vcmp.gt.f32.partialorder %v6381_v18, 0.0  ;;  %v3757_v6 = vmul.f32 1.442695, %v6450_v1 }
 0x684   :  { %3866 = vst [vmem:[%s6635_s13 + $0x28] sm:$0xff] %v3834_v56  ;;  %v3847_v45 = vsel %vm3719_vm8, %v6350_v62, %v4091_v32  ;;  %v3619_v43 = vpop.f32.mrb[54].mxu0  ;;  %v4538_v55 = vpop.eup %4537  ;;  %v4093_v35 = vadd.f32 -1.0, %v4536_v40  ;;  %v6457_v62 = vadd.f32 %v3538_v20, %v6328_v0  ;;  %4553 = vpow2.f32 %v3779_v13 }
 0x685   :  { %3879 = vst [vmem:[%s6635_s13 + $0x90] sm:$0xff] %v3847_v45  ;;  %v3621_v4 = vpop.f32.mrb[55].mxu0  ;;  %v4540_v11 = vpop.eup %4539  ;;  %v4092_v59 = vadd.f32 -1.0, %v4538_v55  ;;  %v3753_v60 = vmul.f32 1.442695, %v6447_v15  ;;  %4555 = vpow2.f32 %v3783_v29  ;;  %vm3708_vm15 = vcmp.gt.f32.partialorder %v6384_v5, 0.0 }
 0x686   :  { %v3690_v24 = vpop.f32.mrb[52].mxu1  ;;  %v4542_v42 = vpop.eup %4541  ;;  %v3849_v38 = vsel %vm3721_vm9, %v6355_v46, %v4093_v35  ;;  %v4094_v34 = vadd.f32 -1.0, %v4540_v11  ;;  %v3755_v2 = vmul.f32 1.442695, %v6457_v62  ;;  %v6483_v33 = vadd.f32 %v3615_v21, %v6328_v0 }
 0x687   :  { %v6465_v25 = vpop.f32.mrb[53].mxu1  ;;  %3881 = vst [vmem:[%s6635_s13 + $0xa0] sm:$0xff] %v3849_v38  ;;  %v3848_v31 = vsel %vm3720_vm10, %v6358_v26, %v4092_v59  ;;  %v4079_v50 = vadd.f32 -1.0, %v4542_v42  ;;  %4557 = vpow2.f32 %v3753_v60  ;;  %v4544_v63 = vpop.eup %4543  ;;  %vm3710_vm0 = vcmp.gt.f32.partialorder %v6391_v30, 0.0 }
 0x688   :  { %3880 = vst [vmem:[%s6635_s13 + $0x98] sm:$0xff] %v3848_v31  ;;  %v3850_v46 = vsel %vm3722_vm11, %v6364_v10, %v4094_v34  ;;  %v4546_v26 = vpop.eup %4545  ;;  %v4081_v12 = vadd.f32 -1.0, %v4544_v63  ;;  %4559 = vpow2.f32 %v3757_v6  ;;  %v6492_v10 = vadd.f32 %v3542_v61, %v6328_v0 }
 0x689   :  { %3882 = vst [vmem:[%s6635_s13 + $0xa8] sm:$0xff] %v3850_v46  ;;  %v3835_v51 = vsel %vm3707_vm13, %v6367_v47, %v4079_v50  ;;  %v4548_v16 = vpop.eup %4547  ;;  %v4080_v17 = vadd.f32 -1.0, %v4546_v26  ;;  %4561 = vpow2.f32 %v3755_v2  ;;  %v3759_v39 = vmul.f32 1.442695, %v6483_v33 }
 0x68a   :  { %v3696_v44 = vpop.f32.mrb[54].mxu1  ;;  %3867 = vst [vmem:[%s6635_s13 + $0x30] sm:$0xff] %v3835_v51  ;;  %v4550_v19 = vpop.eup %4549  ;;  %v3837_v47 = vsel %vm3709_vm14, %v6381_v18, %v4081_v12  ;;  %v4082_v9 = vadd.f32 -1.0, %v4548_v16  ;;  %vm3723_vm7 = vcmp.gt.f32.partialorder %v6394_v54, 0.0  ;;  %v3785_v52 = vmul.f32 1.442695, %v6492_v10 }
 0x68b   :  { %v3698_v41 = vpop.f32.mrb[55].mxu1  ;;  %3869 = vst [vmem:[%s6635_s13 + $0x40] sm:$0xff] %v3837_v47  ;;  %v3836_v48 = vsel %vm3708_vm15, %v6384_v5, %v4080_v17  ;;  %v4095_v49 = vadd.f32 -1.0, %v4550_v19  ;;  %4563 = vpow2.f32 %v3759_v39  ;;  %v6511_v14 = vadd.f32 %v3619_v43, %v6328_v0  ;;  %v4552_v5 = vpop.eup %4551 }
 0x68c   :  { %3868 = vst [vmem:[%s6635_s13 + $0x38] sm:$0xff] %v3836_v48  ;;  %v3838_v18 = vsel %vm3710_vm0, %v6391_v30, %v4082_v9  ;;  %4565 = vpow2.f32 %v3785_v52  ;;  %v6519_v23 = vadd.f32 %v6437_v8, %v6328_v0  ;;  %v6522_v36 = vadd.f32 %v3621_v4, %v6328_v0 }
 0x68d   :  { %3870 = vst [vmem:[%s6635_s13 + $0x48] sm:$0xff] %v3838_v18  ;;  %v3851_v7 = vsel %vm3723_vm7, %v6394_v54, %v4095_v49  ;;  %vm3724_vm1 = vcmp.gt.f32.partialorder %v6404_v28, 0.0  ;;  %v3789_v20 = vmul.f32 1.442695, %v6511_v14  ;;  %v6531_v30 = vadd.f32 %v3690_v24, %v6328_v0 }
 0x68e   :  { %v4554_v22 = vpop.eup %4553  ;;  %3883 = vst [vmem:[%s6635_s13 + $0xb0] sm:$0xff] %v3851_v7  ;;  %vm3725_vm2 = vcmp.gt.f32.partialorder %v6410_v57, 0.0  ;;  %v4097_v53 = vadd.f32 -1.0, %v4552_v5  ;;  %vm3726_vm3 = vcmp.gt.f32.partialorder %v6435_v58, 0.0  ;;  %v3787_v37 = vmul.f32 1.442695, %v6519_v23 }
 0x68f   :  { %v4556_v54 = vpop.eup %4555  ;;  %v4096_v21 = vadd.f32 -1.0, %v4554_v22  ;;  %vm3711_vm12 = vcmp.gt.f32.partialorder %v6447_v15, 0.0  ;;  %4567 = vpow2.f32 %v3789_v20  ;;  %v3791_v27 = vmul.f32 1.442695, %v6522_v36 }
 0x690   :  { %v3853_v61 = vsel %vm3725_vm2, %v6410_v57, %v4097_v53  ;;  %v4098_v56 = vadd.f32 -1.0, %v4556_v54  ;;  %4569 = vpow2.f32 %v3787_v37  ;;  %v3761_v3 = vmul.f32 1.442695, %v6531_v30 }
 0x691   :  { %v4558_v32 = vpop.eup %4557  ;;  %3885 = vst [vmem:[%s6635_s13 + $0xc0] sm:$0xff] %v3853_v61  ;;  %v3852_v13 = vsel %vm3724_vm1, %v6404_v28, %v4096_v21  ;;  %4571 = vpow2.f32 %v3791_v27  ;;  %v3693_v40 = vadd.f32 %v6465_v25, %v6328_v0  ;;  %v3697_v43 = vadd.f32 %v3696_v44, %v6328_v0 }
 0x692   :  { %v4083_v8 = vadd.f32 -1.0, %v4558_v32  ;;  %v4560_v45 = vpop.eup %4559  ;;  %3884 = vst [vmem:[%s6635_s13 + $0xb8] sm:$0xff] %v3852_v13  ;;  %v3854_v57 = vsel %vm3726_vm3, %v6435_v58, %v4098_v56  ;;  %4573 = vpow2.f32 %v3761_v3  ;;  %v6559_v55 = vadd.f32 %v3698_v41, %v6328_v0 }
 0x693   :  { %v4562_v28 = vpop.eup %4561  ;;  %3886 = vst [vmem:[%s6635_s13 + $0xc8] sm:$0xff] %v3854_v57  ;;  %v4085_v29 = vadd.f32 -1.0, %v4560_v45  ;;  %v3763_v4 = vmul.f32 1.442695, %v3693_v40  ;;  %vm3713_vm4 = vcmp.gt.f32.partialorder %v6450_v1, 0.0  ;;  %vm3712_vm5 = vcmp.gt.f32.partialorder %v6457_v62, 0.0 }
 0x694   :  { %v3839_v35 = vsel %vm3711_vm12, %v6447_v15, %v4083_v8  ;;  %v4084_v58 = vadd.f32 -1.0, %v4562_v28  ;;  %v3793_v0 = vmul.f32 1.442695, %v3697_v43  ;;  %v3795_v60 = vmul.f32 1.442695, %v6559_v55 }
 0x695   :  { %3871 = vst [vmem:[%s6635_s13 + $0x50] sm:$0xff] %v3839_v35  ;;  %v4564_v11 = vpop.eup %4563  ;;  %v3841_v59 = vsel %vm3713_vm4, %v6450_v1, %v4085_v29  ;;  %4575 = vpow2.f32 %v3763_v4  ;;  %vm3714_vm6 = vcmp.gt.f32.partialorder %v6483_v33, 0.0  ;;  %vm3727_vm8 = vcmp.gt.f32.partialorder %v6492_v10, 0.0 }
 0x696   :  { %v4566_v24 = vpop.eup %4565  ;;  %3873 = vst [vmem:[%s6635_s13 + $0x60] sm:$0xff] %v3841_v59  ;;  %v3840_v15 = vsel %vm3712_vm5, %v6457_v62, %v4084_v58  ;;  %v4086_v42 = vadd.f32 -1.0, %v4564_v11  ;;  %4577 = vpow2.f32 %v3793_v0  ;;  %vm3729_vm9 = vcmp.gt.f32.partialorder %v6511_v14, 0.0 }
 0x697   :  { %3872 = vst [vmem:[%s6635_s13 + $0x58] sm:$0xff] %v3840_v15  ;;  %v4099_v1 = vadd.f32 -1.0, %v4566_v24  ;;  %4579 = vpow2.f32 %v3795_v60  ;;  %vm3728_vm10 = vcmp.gt.f32.partialorder %v6519_v23, 0.0  ;;  %vm3730_vm11 = vcmp.gt.f32.partialorder %v6522_v36, 0.0 }
 0x698   :  { %v3842_v38 = vsel %vm3714_vm6, %v6483_v33, %v4086_v42  ;;  %vm3715_vm13 = vcmp.gt.f32.partialorder %v6531_v30, 0.0  ;;  %vm3716_vm14 = vcmp.gt.f32.partialorder %v3693_v40, 0.0  ;;  %vm3731_vm15 = vcmp.gt.f32.partialorder %v3697_v43, 0.0 }
 0x699   :  { %v4568_v34 = vpop.eup %4567  ;;  %3874 = vst [vmem:[%s6635_s13 + $0x68] sm:$0xff] %v3842_v38  ;;  %v3855_v62 = vsel %vm3727_vm8, %v6492_v10, %v4099_v1  ;;  %vm3732_vm0 = vcmp.gt.f32.partialorder %v6559_v55, 0.0 }
 0x69a   :  { %v4570_v25 = vpop.eup %4569  ;;  %3887 = vst [vmem:[%s6635_s13 + $0xd0] sm:$0xff] %v3855_v62  ;;  %v4101_v31 = vadd.f32 -1.0, %v4568_v34 }
 0x69b   :  { %v4572_v50 = vpop.eup %4571  ;;  %v4100_v6 = vadd.f32 -1.0, %v4570_v25 }
 0x69c   :  { %v4574_v63 = vpop.eup %4573  ;;  %v3857_v46 = vsel %vm3729_vm9, %v6511_v14, %v4101_v31  ;;  %v4102_v2 = vadd.f32 -1.0, %v4572_v50 }
 0x69d   :  { %3889 = vst [vmem:[%s6635_s13 + $0xe0] sm:$0xff] %v3857_v46  ;;  %v3856_v33 = vsel %vm3728_vm10, %v6519_v23, %v4100_v6  ;;  %v4087_v26 = vadd.f32 -1.0, %v4574_v63 }
 0x69e   :  { %3888 = vst [vmem:[%s6635_s13 + $0xd8] sm:$0xff] %v3856_v33  ;;  %v3858_v51 = vsel %vm3730_vm11, %v6522_v36, %v4102_v2 }
 0x69f   :  { %v4576_v12 = vpop.eup %4575  ;;  %3890 = vst [vmem:[%s6635_s13 + $0xe8] sm:$0xff] %v3858_v51  ;;  %v3843_v10 = vsel %vm3715_vm13, %v6531_v30, %v4087_v26 }
 0x6a0   :  { %v4578_v44 = vpop.eup %4577  ;;  %3875 = vst [vmem:[%s6635_s13 + $0x70] sm:$0xff] %v3843_v10  ;;  %v4088_v16 = vadd.f32 -1.0, %v4576_v12 }
 0x6a1   :  { %v4580_v17 = vpop.eup %4579  ;;  %v4103_v39 = vadd.f32 -1.0, %v4578_v44 }
 0x6a2   :  { %v3844_v41 = vsel %vm3716_vm14, %v3693_v40, %v4088_v16  ;;  %v4104_v19 = vadd.f32 -1.0, %v4580_v17 }
 0x6a3   :  { %3876 = vst [vmem:[%s6635_s13 + $0x78] sm:$0xff] %v3844_v41  ;;  %v3859_v47 = vsel %vm3731_vm15, %v3697_v43, %v4103_v39 }
 0x6a4   :  { %3891 = vst [vmem:[%s6635_s13 + $0xf0] sm:$0xff] %v3859_v47  ;;  %v3860_v9 = vsel %vm3732_vm0, %v6559_v55, %v4104_v19 }
 0x6a5   :  { %3892 = vst [vmem:[%s6635_s13 + $0xf8] sm:$0xff] %v3860_v9 }
 0x6a6   :  { %3897 = vsyncpa [#allocation8], 1 }
 0x6a7   :  { %3898 = vsyncpa [#allocation10], 1 }
 0x6a8   :  { %3899 = vsyncpa [#allocation13], 1 }

</bundles_post_ra>
